<compile_context>
chip_gen: v7x
topology: tpu7x:2x2x1
jax: 0.10.0
libtpu: 0.0.40
codegen_flags: <defaults>
</compile_context>

<pallas_src>
import functools

import jax
import jax.numpy as jnp
from jax.experimental import pallas as pl
from jax.experimental.pallas import tpu as pltpu


# ----------------------------------------------------------------------------
# Fused Pallas matmul kernel (batched over a leading "phase" axis)
#   out[p] = act(A[p] @ B[p] * scale + shift)
# A/B are bf16, accumulation is f32 (MXU-native), epilogue on the VPU/EUP.
# ----------------------------------------------------------------------------
def _round_up(x, m):
    return ((x + m - 1) // m) * m


def _pick_tile(dim, align, max_tile):
    """Return (tile, padded_dim) with tile | padded_dim and tile % align == 0."""
    dp = _round_up(dim, align)
    if dp <= max_tile:
        return dp, dp
    return max_tile, _round_up(dim, max_tile)


def _mm_fused_kernel(a_ref, b_ref, s_ref, t_ref, o_ref, acc_ref, *, act):
    @pl.when(pl.program_id(3) == 0)
    def _():
        acc_ref[...] = jnp.zeros_like(acc_ref)

    acc_ref[...] += jnp.dot(a_ref[0], b_ref[0],
                            preferred_element_type=jnp.float32)

    @pl.when(pl.program_id(3) == pl.num_programs(3) - 1)
    def _():
        y = acc_ref[...] * s_ref[0] + t_ref[0]
        if act == "leaky_relu":
            y = jnp.where(y >= 0, y, 0.2 * y)
        elif act == "relu":
            y = jnp.maximum(y, 0.0)
        elif act == "tanh":
            y = jnp.tanh(y)
        o_ref[0] = y.astype(o_ref.dtype)


def batched_matmul_fused(A, B, scale=None, shift=None, act=None):
    """A: [P, M, K], B: [P, K, N] -> [P, M, N] f32, with fused epilogue
    out = act(A @ B * scale + shift), scale/shift broadcast over rows."""
    P, M, K = A.shape
    _, _, N = B.shape
    if scale is None:
        scale = jnp.ones((N,), jnp.float32)
    if shift is None:
        shift = jnp.zeros((N,), jnp.float32)

    # Per-layer tile selection: avoid padding tiny deep-UNet layers to 128/256;
    # for big layers use large MXU-friendly tiles (still well within VMEM:
    # worst case ~ (256x1024 + 1024x512) bf16 double-buffered + 256x512 f32).
    tm, Mp = _pick_tile(M, 16, 256)
    tk, Kp = _pick_tile(K, 128, 1024)
    tn, Np = _pick_tile(N, 128, 512)

    A_p = jnp.pad(A.astype(jnp.bfloat16), ((0, 0), (0, Mp - M), (0, Kp - K)))
    B_p = jnp.pad(B.astype(jnp.bfloat16), ((0, 0), (0, Kp - K), (0, Np - N)))
    S_p = jnp.pad(jnp.broadcast_to(scale.astype(jnp.float32), (P, 1, N)),
                  ((0, 0), (0, 0), (0, Np - N)))
    T_p = jnp.pad(jnp.broadcast_to(shift.astype(jnp.float32), (P, 1, N)),
                  ((0, 0), (0, 0), (0, Np - N)))

    grid = (P, Mp // tm, Np // tn, Kp // tk)

    flops = 2 * P * Mp * Kp * Np
    transcendentals = P * Mp * Np if act == "tanh" else 0
    bytes_accessed = (A_p.size * 2 + B_p.size * 2 + P * Mp * Np * 4
                      + S_p.size * 4 + T_p.size * 4)

    out = pl.pallas_call(
        functools.partial(_mm_fused_kernel, act=act),
        out_shape=jax.ShapeDtypeStruct((P, Mp, Np), jnp.float32),
        grid_spec=pltpu.PrefetchScalarGridSpec(
            num_scalar_prefetch=0,
            grid=grid,
            in_specs=[
                pl.BlockSpec((1, tm, tk), lambda p, i, j, k: (p, i, k)),
                pl.BlockSpec((1, tk, tn), lambda p, i, j, k: (p, k, j)),
                pl.BlockSpec((1, 1, tn), lambda p, i, j, k: (p, 0, j)),
                pl.BlockSpec((1, 1, tn), lambda p, i, j, k: (p, 0, j)),
            ],
            out_specs=pl.BlockSpec((1, tm, tn), lambda p, i, j, k: (p, i, j)),
            scratch_shapes=[pltpu.VMEM((tm, tn), jnp.float32)],
        ),
        compiler_params=pltpu.CompilerParams(
            dimension_semantics=("parallel", "parallel", "parallel",
                                 "arbitrary"),
        ),
        cost_estimate=pl.CostEstimate(flops=flops,
                                      transcendentals=transcendentals,
                                      bytes_accessed=bytes_accessed),
    )(A_p, B_p, S_p, T_p)
    return out[:, :M, :N]


# ----------------------------------------------------------------------------
# jnp glue: elementwise / BN statistics (XLA fuses these into adjacent copies)
# ----------------------------------------------------------------------------
def leaky_relu(x):
    return jnp.where(x >= 0, x, 0.2 * x)


def relu(x):
    return jnp.maximum(x, 0.0)


def batchnorm_train(x_nhwc, gamma, beta, eps=1e-5):
    """PyTorch BatchNorm2d training-mode forward (batch stats, biased var)."""
    C = x_nhwc.shape[-1]
    x2 = x_nhwc.reshape(-1, C)
    mean = jnp.mean(x2, axis=0)
    var = jnp.maximum(jnp.mean(jnp.square(x2), axis=0) - jnp.square(mean), 0.0)
    scale = gamma * jax.lax.rsqrt(var + eps)
    shift = beta - mean * scale
    return x_nhwc * scale + shift


# ----------------------------------------------------------------------------
# Conv2d(k=4, s=2, p=1)  via im2col + fused Pallas matmul
# ----------------------------------------------------------------------------
def _im2col(x_nhwc, k, stride, pad):
    x = jnp.pad(x_nhwc, ((0, 0), (pad, pad), (pad, pad), (0, 0)))
    N, Hp, Wp, C = x.shape
    Ho = (Hp - k) // stride + 1
    Wo = (Wp - k) // stride + 1
    cols = []
    for di in range(k):
        for dj in range(k):
            cols.append(
                x[:, di:di + stride * (Ho - 1) + 1:stride,
                  dj:dj + stride * (Wo - 1) + 1:stride, :]
            )
    patches = jnp.stack(cols, axis=3)  # [N, Ho, Wo, k*k, C]
    return patches.reshape(N * Ho * Wo, k * k * C), (N, Ho, Wo)


def conv2d_k4s2p1(x_nhwc, w_pt, scale=None, shift=None, act=None):
    """PyTorch Conv2d(k=4, s=2, p=1, bias=False). w_pt: [Cout, Cin, 4, 4].
    Optional fused epilogue act(y*scale+shift)."""
    patches, (N, Ho, Wo) = _im2col(x_nhwc, k=4, stride=2, pad=1)
    Cout = w_pt.shape[0]
    wmat = jnp.transpose(w_pt, (2, 3, 1, 0)).reshape(-1, Cout)
    y = batched_matmul_fused(patches[None], wmat[None], scale, shift, act)
    return y[0].reshape(N, Ho, Wo, Cout)


# ----------------------------------------------------------------------------
# ConvTranspose2d(k=4, s=2, p=1) via sub-pixel (4-phase) decomposition:
# no dilated zeros, 4x fewer MXU FLOPs, all 4 phases in ONE pallas_call.
# ----------------------------------------------------------------------------
_TAP_OFF = ((0, 1), (1, 2))   # padded-input tap offsets for output phase 0 / 1
_TAP_K = ((3, 1), (2, 0))     # matching transposed-conv kernel indices


def convT2d_k4s2p1(x_nhwc, w_pt, bias=None, act=None):
    """PyTorch ConvTranspose2d(k=4, s=2, p=1). w_pt: [Cin, Cout, 4, 4].
    out[:, 2i+r, 2j+s] = sum over a 2x2 tap window of the (1-padded) input
    times the phase-(r,s) 2x2 sub-kernel.  Optional fused bias + act."""
    N, H, W, Cin = x_nhwc.shape
    Cout = w_pt.shape[1]
    xp = jnp.pad(x_nhwc, ((0, 0), (1, 1), (1, 1), (0, 0)))

    a_phases, b_phases = [], []
    for r in range(2):
        for s in range(2):
            taps, wtaps = [], []
            for a in range(2):
                for b in range(2):
                    oy, ox = _TAP_OFF[r][a], _TAP_OFF[s][b]
                    taps.append(xp[:, oy:oy + H, ox:ox + W, :])
                    wtaps.append(w_pt[:, :, _TAP_K[r][a], _TAP_K[s][b]])
            a_phases.append(
                jnp.concatenate(taps, axis=-1).reshape(N * H * W, 4 * Cin))
            b_phases.append(jnp.concatenate(wtaps, axis=0))   # [4*Cin, Cout]

    A = jnp.stack(a_phases)        # [4, N*H*W, 4*Cin]
    B = jnp.stack(b_phases)        # [4, 4*Cin, Cout]
    Y = batched_matmul_fused(A, B, scale=None, shift=bias, act=act)
    Y = Y.reshape(2, 2, N, H, W, Cout)
    Y = Y.transpose(2, 3, 0, 4, 1, 5).reshape(N, 2 * H, 2 * W, Cout)
    return Y


# ----------------------------------------------------------------------------
# UNet (generator) parameters & functional forward, mirroring UNetBlock/UNet
# ----------------------------------------------------------------------------
def build_unet_params(key, input_channels=1, output_channels=2,
                      num_downsampling=5, nf=8):
    keys = iter(jax.random.split(key, 4 * (num_downsampling + 2)))

    def conv_w(cout, cin):
        return 0.05 * jax.random.normal(next(keys), (cout, cin, 4, 4),
                                        jnp.float32)

    def convt_w(cin, cout):
        return 0.05 * jax.random.normal(next(keys), (cin, cout, 4, 4),
                                        jnp.float32)

    def bn(c):
        return (jnp.ones((c,), jnp.float32), jnp.zeros((c,), jnp.float32))

    # innermost block
    block = dict(downconv=conv_w(nf * 8, nf * 8),
                 upconv_w=convt_w(nf * 8, nf * 8),
                 upnorm=bn(nf * 8), submodule=None)
    # middle 8*nf-channel blocks (dropout=True in torch)
    for _ in range(num_downsampling - 5):
        block = dict(downconv=conv_w(nf * 8, nf * 8), downnorm=bn(nf * 8),
                     upconv_w=convt_w(nf * 8 * 2, nf * 8), upnorm=bn(nf * 8),
                     submodule=block)
    # channel-halving blocks
    out_f = nf * 8
    for _ in range(3):
        block = dict(downconv=conv_w(out_f, out_f // 2), downnorm=bn(out_f),
                     upconv_w=convt_w(out_f * 2, out_f // 2),
                     upnorm=bn(out_f // 2), submodule=block)
        out_f //= 2
    # outermost block (upconv has a bias, followed by Tanh)
    block = dict(downconv=conv_w(out_f, input_channels),
                 upconv_w=convt_w(out_f * 2, output_channels),
                 upconv_b=jnp.zeros((output_channels,), jnp.float32),
                 submodule=block)
    return block


def unet_block_apply(p, x):
    """x is NHWC. Mirrors UNetBlock.forward (training-mode BatchNorm)."""
    outermost = "upconv_b" in p
    innermost = p["submodule"] is None

    if outermost:
        h = conv2d_k4s2p1(x, p["downconv"])
        h = unet_block_apply(p["submodule"], h)
        h = relu(h)                                             # uprelu
        # bias + Tanh fused into the matmul epilogue
        h = convT2d_k4s2p1(h, p["upconv_w"], bias=p["upconv_b"], act="tanh")
        return h
    elif innermost:
        h = leaky_relu(x)                                       # downrelu
        # uprelu fused into the downconv epilogue (no norm in between)
        h = conv2d_k4s2p1(h, p["downconv"], act="relu")
        h = convT2d_k4s2p1(h, p["upconv_w"])
        h = batchnorm_train(h, *p["upnorm"])
        return jnp.concatenate([x, h], axis=-1)
    else:
        h = leaky_relu(x)                                       # downrelu
        h = conv2d_k4s2p1(h, p["downconv"])
        h = batchnorm_train(h, *p["downnorm"])
        h = unet_block_apply(p["submodule"], h)
        h = relu(h)                                             # uprelu
        h = convT2d_k4s2p1(h, p["upconv_w"])
        h = batchnorm_train(h, *p["upnorm"])
        # TODO(synk): nn.Dropout(0.5) is stochastic in train mode; applied as
        # identity (eval semantics) to keep the kernel deterministic.
        return jnp.concatenate([x, h], axis=-1)


def main_model_forward(params, L_nchw):
    """MainModel.forward(): fake_color = generator_model(L)."""
    x = jnp.transpose(L_nchw, (0, 2, 3, 1))      # NCHW -> NHWC
    y = unet_block_apply(params, x)
    return jnp.transpose(y, (0, 3, 1, 2))        # NHWC -> NCHW


# ----------------------------------------------------------------------------
if __name__ == "__main__":
    key = jax.random.PRNGKey(0)
    k_params, k_input = jax.random.split(key)

    # Small config (same architecture, smallest legal depth) so the script
    # finishes quickly.  Full pix2pix config would be num_downsampling=8,
    # nf=64, 256x256 input.
    NUM_DOWN = 5
    NF = 8
    SPATIAL = 2 ** NUM_DOWN          # 32: innermost block reaches 1x1

    params = build_unet_params(k_params, input_channels=1, output_channels=2,
                               num_downsampling=NUM_DOWN, nf=NF)
    L = jax.random.normal(k_input, (2, 1, SPATIAL, SPATIAL), jnp.float32)

    fwd = jax.jit(main_model_forward)
    fake_color = jax.block_until_ready(fwd(params, L))

    assert fake_color.shape == (2, 2, SPATIAL, SPATIAL), fake_color.shape
    assert bool(jnp.all(jnp.isfinite(fake_color)))
    # Tanh output must be bounded.
    assert bool(jnp.all(jnp.abs(fake_color) <= 1.0 + 1e-5))
    print("KERNEL_OK")
</pallas_src>

<mosaic_0001>
module attributes {stable_mosaic.version = 11 : i64} {
  func.func @_mm_fused_kernel(%arg0: i32, %arg1: i32, %arg2: i32, %arg3: i32, %arg4: memref<1x256x128xbf16, #tpu.memory_space<vmem>>, %arg5: memref<1x128x128xbf16, #tpu.memory_space<vmem>>, %arg6: memref<1x1x128xf32, #tpu.memory_space<vmem>>, %arg7: memref<1x1x128xf32, #tpu.memory_space<vmem>>, %arg8: memref<1x256x128xf32, #tpu.memory_space<vmem>>, %arg9: memref<256x128xf32, #tpu.memory_space<vmem>>) attributes {dimension_semantics = [#tpu.dimension_semantics<parallel>, #tpu.dimension_semantics<parallel>, #tpu.dimension_semantics<parallel>, #tpu.dimension_semantics<arbitrary>], iteration_bounds = array<i64: 1, 2, 1, 1>, scalar_prefetch = 0 : i64, scratch_operands = 1 : i64, tpu.core_type = #tpu.core_type<tc>, window_params = [{transform_indices = @transform_0, window_bounds = array<i64: 1, 256, 128>}, {transform_indices = @transform_1, window_bounds = array<i64: 1, 128, 128>}, {transform_indices = @transform_2, window_bounds = array<i64: 1, 1, 128>}, {transform_indices = @transform_3, window_bounds = array<i64: 1, 1, 128>}, {transform_indices = @transform_4, window_bounds = array<i64: 1, 256, 128>}]} {
    %c0_i32 = arith.constant 0 : i32
    %0 = arith.cmpi eq, %arg3, %c0_i32 : i32
    %1 = arith.extui %0 : i1 to i32
    %c0_i32_0 = arith.constant 0 : i32
    %2 = arith.cmpi ne, %1, %c0_i32_0 : i32
    scf.if %2 {
      %cst_12 = arith.constant 0.000000e+00 : f32
      %14 = vector.broadcast %cst_12 : f32 to vector<256x128xf32>
      %c0_13 = arith.constant 0 : index
      %c0_14 = arith.constant 0 : index
      %15 = vector.load %arg9[%c0_13, %c0_14] : memref<256x128xf32, #tpu.memory_space<vmem>>, vector<256x128xf32>
      tpu.vector_store %arg9[%c0_13, %c0_14], %14 {strides = array<i32>} : memref<256x128xf32, #tpu.memory_space<vmem>>, vector<256x128xf32>,
    } else {
    }
    %c0 = arith.constant 0 : index
    %c0_1 = arith.constant 0 : index
    %3 = vector.load %arg9[%c0, %c0_1] : memref<256x128xf32, #tpu.memory_space<vmem>>, vector<256x128xf32>
    %c0_2 = arith.constant 0 : index
    %c0_3 = arith.constant 0 : index
    %c0_4 = arith.constant 0 : index
    %4 = vector.load %arg4[%c0_2, %c0_3, %c0_4] : memref<1x256x128xbf16, #tpu.memory_space<vmem>>, vector<1x256x128xbf16>
    %5 = vector.shape_cast %4 : vector<1x256x128xbf16> to vector<256x128xbf16>
    %c0_5 = arith.constant 0 : index
    %c0_6 = arith.constant 0 : index
    %c0_7 = arith.constant 0 : index
    %6 = vector.load %arg5[%c0_5, %c0_6, %c0_7] : memref<1x128x128xbf16, #tpu.memory_space<vmem>>, vector<1x128x128xbf16>
    %7 = vector.shape_cast %6 : vector<1x128x128xbf16> to vector<128x128xbf16>
    %cst = arith.constant dense<0.000000e+00> : vector<256x128xf32>
    %8 = tpu.matmul %5, %7, %cst {dimension_numbers = #tpu.dot_dimension_numbers<[1], [0], [0], [1], [0, 0, 1, 1], [], []>} : vector<256x128xbf16>, vector<128x128xbf16>, vector<256x128xf32> -> vector<256x128xf32>
    %9 = arith.addf %3, %8 : vector<256x128xf32>
    %c0_8 = arith.constant 0 : index
    %c0_9 = arith.constant 0 : index
    %10 = vector.load %arg9[%c0_8, %c0_9] : memref<256x128xf32, #tpu.memory_space<vmem>>, vector<256x128xf32>
    tpu.vector_store %arg9[%c0_8, %c0_9], %9 {strides = array<i32>} : memref<256x128xf32, #tpu.memory_space<vmem>>, vector<256x128xf32>,
    %c0_i32_10 = arith.constant 0 : i32
    %11 = arith.cmpi eq, %arg3, %c0_i32_10 : i32
    %12 = arith.extui %11 : i1 to i32
    %c0_i32_11 = arith.constant 0 : i32
    %13 = arith.cmpi ne, %12, %c0_i32_11 : i32
    scf.if %13 {
      %c0_12 = arith.constant 0 : index
      %c0_13 = arith.constant 0 : index
      %14 = vector.load %arg9[%c0_12, %c0_13] : memref<256x128xf32, #tpu.memory_space<vmem>>, vector<256x128xf32>
      %c0_14 = arith.constant 0 : index
      %c0_15 = arith.constant 0 : index
      %c0_16 = arith.constant 0 : index
      %15 = vector.load %arg6[%c0_14, %c0_15, %c0_16] : memref<1x1x128xf32, #tpu.memory_space<vmem>>, vector<1x1x128xf32>
      %16 = vector.shape_cast %15 : vector<1x1x128xf32> to vector<1x128xf32>
      %17 = vector.broadcast %16 : vector<1x128xf32> to vector<256x128xf32>
      %18 = arith.mulf %14, %17 : vector<256x128xf32>
      %c0_17 = arith.constant 0 : index
      %c0_18 = arith.constant 0 : index
      %c0_19 = arith.constant 0 : index
      %19 = vector.load %arg7[%c0_17, %c0_18, %c0_19] : memref<1x1x128xf32, #tpu.memory_space<vmem>>, vector<1x1x128xf32>
      %20 = vector.shape_cast %19 : vector<1x1x128xf32> to vector<1x128xf32>
      %21 = vector.broadcast %20 : vector<1x128xf32> to vector<256x128xf32>
      %22 = arith.addf %18, %21 : vector<256x128xf32>
      %c0_20 = arith.constant 0 : index
      %c0_21 = arith.constant 0 : index
      %c0_22 = arith.constant 0 : index
      %23 = vector.load %arg8[%c0_20, %c0_21, %c0_22] : memref<1x256x128xf32, #tpu.memory_space<vmem>>, vector<1x256x128xf32>
      %24 = vector.shape_cast %23 : vector<1x256x128xf32> to vector<256x128xf32>
      %25 = vector.shape_cast %22 : vector<256x128xf32> to vector<1x256x128xf32>
      tpu.vector_store %arg8[%c0_20, %c0_21, %c0_22], %25 {strides = array<i32>} : memref<1x256x128xf32, #tpu.memory_space<vmem>>, vector<1x256x128xf32>,
    } else {
    }
    return
  }
  func.func @transform_0(%arg0: i32, %arg1: i32, %arg2: i32, %arg3: i32) -> (i32, i32, i32) {
    %c0_i32 = arith.constant 0 : i32
    return %arg0, %arg1, %arg3 : i32, i32, i32
  }
  func.func @transform_1(%arg0: i32, %arg1: i32, %arg2: i32, %arg3: i32) -> (i32, i32, i32) {
    %c0_i32 = arith.constant 0 : i32
    return %arg0, %arg3, %arg2 : i32, i32, i32
  }
  func.func @transform_2(%arg0: i32, %arg1: i32, %arg2: i32, %arg3: i32) -> (i32, i32, i32) {
    %c0_i32 = arith.constant 0 : i32
    %c0_i32_0 = arith.constant 0 : i32
    return %arg0, %c0_i32, %arg2 : i32, i32, i32
  }
  func.func @transform_3(%arg0: i32, %arg1: i32, %arg2: i32, %arg3: i32) -> (i32, i32, i32) {
    %c0_i32 = arith.constant 0 : i32
    %c0_i32_0 = arith.constant 0 : i32
    return %arg0, %c0_i32, %arg2 : i32, i32, i32
  }
  func.func @transform_4(%arg0: i32, %arg1: i32, %arg2: i32, %arg3: i32) -> (i32, i32, i32) {
    %c0_i32 = arith.constant 0 : i32
    return %arg0, %arg1, %arg2 : i32, i32, i32
  }
}

module attributes {stable_mosaic.version = 11 : i64} {
  func.func @_mm_fused_kernel(%arg0: i32, %arg1: i32, %arg2: i32, %arg3: i32, %arg4: memref<1x128x128xbf16, #tpu.memory_space<vmem>>, %arg5: memref<1x128x128xbf16, #tpu.memory_space<vmem>>, %arg6: memref<1x1x128xf32, #tpu.memory_space<vmem>>, %arg7: memref<1x1x128xf32, #tpu.memory_space<vmem>>, %arg8: memref<1x128x128xf32, #tpu.memory_space<vmem>>, %arg9: memref<128x128xf32, #tpu.memory_space<vmem>>) attributes {dimension_semantics = [#tpu.dimension_semantics<parallel>, #tpu.dimension_semantics<parallel>, #tpu.dimension_semantics<parallel>, #tpu.dimension_semantics<arbitrary>], iteration_bounds = array<i64: 1, 1, 1, 1>, scalar_prefetch = 0 : i64, scratch_operands = 1 : i64, tpu.core_type = #tpu.core_type<tc>, window_params = [{transform_indices = @transform_0, window_bounds = array<i64: 1, 128, 128>}, {transform_indices = @transform_1, window_bounds = array<i64: 1, 128, 128>}, {transform_indices = @transform_2, window_bounds = array<i64: 1, 1, 128>}, {transform_indices = @transform_3, window_bounds = array<i64: 1, 1, 128>}, {transform_indices = @transform_4, window_bounds = array<i64: 1, 128, 128>}]} {
    %c0_i32 = arith.constant 0 : i32
    %0 = arith.cmpi eq, %arg3, %c0_i32 : i32
    %1 = arith.extui %0 : i1 to i32
    %c0_i32_0 = arith.constant 0 : i32
    %2 = arith.cmpi ne, %1, %c0_i32_0 : i32
    scf.if %2 {
      %cst_12 = arith.constant 0.000000e+00 : f32
      %14 = vector.broadcast %cst_12 : f32 to vector<128x128xf32>
      %c0_13 = arith.constant 0 : index
      %c0_14 = arith.constant 0 : index
      %15 = vector.load %arg9[%c0_13, %c0_14] : memref<128x128xf32, #tpu.memory_space<vmem>>, vector<128x128xf32>
      tpu.vector_store %arg9[%c0_13, %c0_14], %14 {strides = array<i32>} : memref<128x128xf32, #tpu.memory_space<vmem>>, vector<128x128xf32>,
    } else {
    }
    %c0 = arith.constant 0 : index
    %c0_1 = arith.constant 0 : index
    %3 = vector.load %arg9[%c0, %c0_1] : memref<128x128xf32, #tpu.memory_space<vmem>>, vector<128x128xf32>
    %c0_2 = arith.constant 0 : index
    %c0_3 = arith.constant 0 : index
    %c0_4 = arith.constant 0 : index
    %4 = vector.load %arg4[%c0_2, %c0_3, %c0_4] : memref<1x128x128xbf16, #tpu.memory_space<vmem>>, vector<1x128x128xbf16>
    %5 = vector.shape_cast %4 : vector<1x128x128xbf16> to vector<128x128xbf16>
    %c0_5 = arith.constant 0 : index
    %c0_6 = arith.constant 0 : index
    %c0_7 = arith.constant 0 : index
    %6 = vector.load %arg5[%c0_5, %c0_6, %c0_7] : memref<1x128x128xbf16, #tpu.memory_space<vmem>>, vector<1x128x128xbf16>
    %7 = vector.shape_cast %6 : vector<1x128x128xbf16> to vector<128x128xbf16>
    %cst = arith.constant dense<0.000000e+00> : vector<128x128xf32>
    %8 = tpu.matmul %5, %7, %cst {dimension_numbers = #tpu.dot_dimension_numbers<[1], [0], [0], [1], [0, 0, 1, 1], [], []>} : vector<128x128xbf16>, vector<128x128xbf16>, vector<128x128xf32> -> vector<128x128xf32>
    %9 = arith.addf %3, %8 : vector<128x128xf32>
    %c0_8 = arith.constant 0 : index
    %c0_9 = arith.constant 0 : index
    %10 = vector.load %arg9[%c0_8, %c0_9] : memref<128x128xf32, #tpu.memory_space<vmem>>, vector<128x128xf32>
    tpu.vector_store %arg9[%c0_8, %c0_9], %9 {strides = array<i32>} : memref<128x128xf32, #tpu.memory_space<vmem>>, vector<128x128xf32>,
    %c0_i32_10 = arith.constant 0 : i32
    %11 = arith.cmpi eq, %arg3, %c0_i32_10 : i32
    %12 = arith.extui %11 : i1 to i32
    %c0_i32_11 = arith.constant 0 : i32
    %13 = arith.cmpi ne, %12, %c0_i32_11 : i32
    scf.if %13 {
      %c0_12 = arith.constant 0 : index
      %c0_13 = arith.constant 0 : index
      %14 = vector.load %arg9[%c0_12, %c0_13] : memref<128x128xf32, #tpu.memory_space<vmem>>, vector<128x128xf32>
      %c0_14 = arith.constant 0 : index
      %c0_15 = arith.constant 0 : index
      %c0_16 = arith.constant 0 : index
      %15 = vector.load %arg6[%c0_14, %c0_15, %c0_16] : memref<1x1x128xf32, #tpu.memory_space<vmem>>, vector<1x1x128xf32>
      %16 = vector.shape_cast %15 : vector<1x1x128xf32> to vector<1x128xf32>
      %17 = vector.broadcast %16 : vector<1x128xf32> to vector<128x128xf32>
      %18 = arith.mulf %14, %17 : vector<128x128xf32>
      %c0_17 = arith.constant 0 : index
      %c0_18 = arith.constant 0 : index
      %c0_19 = arith.constant 0 : index
      %19 = vector.load %arg7[%c0_17, %c0_18, %c0_19] : memref<1x1x128xf32, #tpu.memory_space<vmem>>, vector<1x1x128xf32>
      %20 = vector.shape_cast %19 : vector<1x1x128xf32> to vector<1x128xf32>
      %21 = vector.broadcast %20 : vector<1x128xf32> to vector<128x128xf32>
      %22 = arith.addf %18, %21 : vector<128x128xf32>
      %c0_20 = arith.constant 0 : index
      %c0_21 = arith.constant 0 : index
      %c0_22 = arith.constant 0 : index
      %23 = vector.load %arg8[%c0_20, %c0_21, %c0_22] : memref<1x128x128xf32, #tpu.memory_space<vmem>>, vector<1x128x128xf32>
      %24 = vector.shape_cast %23 : vector<1x128x128xf32> to vector<128x128xf32>
      %25 = vector.shape_cast %22 : vector<128x128xf32> to vector<1x128x128xf32>
      tpu.vector_store %arg8[%c0_20, %c0_21, %c0_22], %25 {strides = array<i32>} : memref<1x128x128xf32, #tpu.memory_space<vmem>>, vector<1x128x128xf32>,
    } else {
    }
    return
  }
  func.func @transform_0(%arg0: i32, %arg1: i32, %arg2: i32, %arg3: i32) -> (i32, i32, i32) {
    %c0_i32 = arith.constant 0 : i32
    return %arg0, %arg1, %arg3 : i32, i32, i32
  }
  func.func @transform_1(%arg0: i32, %arg1: i32, %arg2: i32, %arg3: i32) -> (i32, i32, i32) {
    %c0_i32 = arith.constant 0 : i32
    return %arg0, %arg3, %arg2 : i32, i32, i32
  }
  func.func @transform_2(%arg0: i32, %arg1: i32, %arg2: i32, %arg3: i32) -> (i32, i32, i32) {
    %c0_i32 = arith.constant 0 : i32
    %c0_i32_0 = arith.constant 0 : i32
    return %arg0, %c0_i32, %arg2 : i32, i32, i32
  }
  func.func @transform_3(%arg0: i32, %arg1: i32, %arg2: i32, %arg3: i32) -> (i32, i32, i32) {
    %c0_i32 = arith.constant 0 : i32
    %c0_i32_0 = arith.constant 0 : i32
    return %arg0, %c0_i32, %arg2 : i32, i32, i32
  }
  func.func @transform_4(%arg0: i32, %arg1: i32, %arg2: i32, %arg3: i32) -> (i32, i32, i32) {
    %c0_i32 = arith.constant 0 : i32
    return %arg0, %arg1, %arg2 : i32, i32, i32
  }
}

module attributes {stable_mosaic.version = 11 : i64} {
  func.func @_mm_fused_kernel(%arg0: i32, %arg1: i32, %arg2: i32, %arg3: i32, %arg4: memref<1x32x256xbf16, #tpu.memory_space<vmem>>, %arg5: memref<1x256x128xbf16, #tpu.memory_space<vmem>>, %arg6: memref<1x1x128xf32, #tpu.memory_space<vmem>>, %arg7: memref<1x1x128xf32, #tpu.memory_space<vmem>>, %arg8: memref<1x32x128xf32, #tpu.memory_space<vmem>>, %arg9: memref<32x128xf32, #tpu.memory_space<vmem>>) attributes {dimension_semantics = [#tpu.dimension_semantics<parallel>, #tpu.dimension_semantics<parallel>, #tpu.dimension_semantics<parallel>, #tpu.dimension_semantics<arbitrary>], iteration_bounds = array<i64: 1, 1, 1, 1>, scalar_prefetch = 0 : i64, scratch_operands = 1 : i64, tpu.core_type = #tpu.core_type<tc>, window_params = [{transform_indices = @transform_0, window_bounds = array<i64: 1, 32, 256>}, {transform_indices = @transform_1, window_bounds = array<i64: 1, 256, 128>}, {transform_indices = @transform_2, window_bounds = array<i64: 1, 1, 128>}, {transform_indices = @transform_3, window_bounds = array<i64: 1, 1, 128>}, {transform_indices = @transform_4, window_bounds = array<i64: 1, 32, 128>}]} {
    %c0_i32 = arith.constant 0 : i32
    %0 = arith.cmpi eq, %arg3, %c0_i32 : i32
    %1 = arith.extui %0 : i1 to i32
    %c0_i32_0 = arith.constant 0 : i32
    %2 = arith.cmpi ne, %1, %c0_i32_0 : i32
    scf.if %2 {
      %cst_12 = arith.constant 0.000000e+00 : f32
      %14 = vector.broadcast %cst_12 : f32 to vector<32x128xf32>
      %c0_13 = arith.constant 0 : index
      %c0_14 = arith.constant 0 : index
      %15 = vector.load %arg9[%c0_13, %c0_14] : memref<32x128xf32, #tpu.memory_space<vmem>>, vector<32x128xf32>
      tpu.vector_store %arg9[%c0_13, %c0_14], %14 {strides = array<i32>} : memref<32x128xf32, #tpu.memory_space<vmem>>, vector<32x128xf32>,
    } else {
    }
    %c0 = arith.constant 0 : index
    %c0_1 = arith.constant 0 : index
    %3 = vector.load %arg9[%c0, %c0_1] : memref<32x128xf32, #tpu.memory_space<vmem>>, vector<32x128xf32>
    %c0_2 = arith.constant 0 : index
    %c0_3 = arith.constant 0 : index
    %c0_4 = arith.constant 0 : index
    %4 = vector.load %arg4[%c0_2, %c0_3, %c0_4] : memref<1x32x256xbf16, #tpu.memory_space<vmem>>, vector<1x32x256xbf16>
    %5 = vector.shape_cast %4 : vector<1x32x256xbf16> to vector<32x256xbf16>
    %c0_5 = arith.constant 0 : index
    %c0_6 = arith.constant 0 : index
    %c0_7 = arith.constant 0 : index
    %6 = vector.load %arg5[%c0_5, %c0_6, %c0_7] : memref<1x256x128xbf16, #tpu.memory_space<vmem>>, vector<1x256x128xbf16>
    %7 = vector.shape_cast %6 : vector<1x256x128xbf16> to vector<256x128xbf16>
    %cst = arith.constant dense<0.000000e+00> : vector<32x128xf32>
    %8 = tpu.matmul %5, %7, %cst {dimension_numbers = #tpu.dot_dimension_numbers<[1], [0], [0], [1], [0, 0, 1, 1], [], []>} : vector<32x256xbf16>, vector<256x128xbf16>, vector<32x128xf32> -> vector<32x128xf32>
    %9 = arith.addf %3, %8 : vector<32x128xf32>
    %c0_8 = arith.constant 0 : index
    %c0_9 = arith.constant 0 : index
    %10 = vector.load %arg9[%c0_8, %c0_9] : memref<32x128xf32, #tpu.memory_space<vmem>>, vector<32x128xf32>
    tpu.vector_store %arg9[%c0_8, %c0_9], %9 {strides = array<i32>} : memref<32x128xf32, #tpu.memory_space<vmem>>, vector<32x128xf32>,
    %c0_i32_10 = arith.constant 0 : i32
    %11 = arith.cmpi eq, %arg3, %c0_i32_10 : i32
    %12 = arith.extui %11 : i1 to i32
    %c0_i32_11 = arith.constant 0 : i32
    %13 = arith.cmpi ne, %12, %c0_i32_11 : i32
    scf.if %13 {
      %c0_12 = arith.constant 0 : index
      %c0_13 = arith.constant 0 : index
      %14 = vector.load %arg9[%c0_12, %c0_13] : memref<32x128xf32, #tpu.memory_space<vmem>>, vector<32x128xf32>
      %c0_14 = arith.constant 0 : index
      %c0_15 = arith.constant 0 : index
      %c0_16 = arith.constant 0 : index
      %15 = vector.load %arg6[%c0_14, %c0_15, %c0_16] : memref<1x1x128xf32, #tpu.memory_space<vmem>>, vector<1x1x128xf32>
      %16 = vector.shape_cast %15 : vector<1x1x128xf32> to vector<1x128xf32>
      %17 = vector.broadcast %16 : vector<1x128xf32> to vector<32x128xf32>
      %18 = arith.mulf %14, %17 : vector<32x128xf32>
      %c0_17 = arith.constant 0 : index
      %c0_18 = arith.constant 0 : index
      %c0_19 = arith.constant 0 : index
      %19 = vector.load %arg7[%c0_17, %c0_18, %c0_19] : memref<1x1x128xf32, #tpu.memory_space<vmem>>, vector<1x1x128xf32>
      %20 = vector.shape_cast %19 : vector<1x1x128xf32> to vector<1x128xf32>
      %21 = vector.broadcast %20 : vector<1x128xf32> to vector<32x128xf32>
      %22 = arith.addf %18, %21 : vector<32x128xf32>
      %c0_20 = arith.constant 0 : index
      %c0_21 = arith.constant 0 : index
      %c0_22 = arith.constant 0 : index
      %23 = vector.load %arg8[%c0_20, %c0_21, %c0_22] : memref<1x32x128xf32, #tpu.memory_space<vmem>>, vector<1x32x128xf32>
      %24 = vector.shape_cast %23 : vector<1x32x128xf32> to vector<32x128xf32>
      %25 = vector.shape_cast %22 : vector<32x128xf32> to vector<1x32x128xf32>
      tpu.vector_store %arg8[%c0_20, %c0_21, %c0_22], %25 {strides = array<i32>} : memref<1x32x128xf32, #tpu.memory_space<vmem>>, vector<1x32x128xf32>,
    } else {
    }
    return
  }
  func.func @transform_0(%arg0: i32, %arg1: i32, %arg2: i32, %arg3: i32) -> (i32, i32, i32) {
    %c0_i32 = arith.constant 0 : i32
    return %arg0, %arg1, %arg3 : i32, i32, i32
  }
  func.func @transform_1(%arg0: i32, %arg1: i32, %arg2: i32, %arg3: i32) -> (i32, i32, i32) {
    %c0_i32 = arith.constant 0 : i32
    return %arg0, %arg3, %arg2 : i32, i32, i32
  }
  func.func @transform_2(%arg0: i32, %arg1: i32, %arg2: i32, %arg3: i32) -> (i32, i32, i32) {
    %c0_i32 = arith.constant 0 : i32
    %c0_i32_0 = arith.constant 0 : i32
    return %arg0, %c0_i32, %arg2 : i32, i32, i32
  }
  func.func @transform_3(%arg0: i32, %arg1: i32, %arg2: i32, %arg3: i32) -> (i32, i32, i32) {
    %c0_i32 = arith.constant 0 : i32
    %c0_i32_0 = arith.constant 0 : i32
    return %arg0, %c0_i32, %arg2 : i32, i32, i32
  }
  func.func @transform_4(%arg0: i32, %arg1: i32, %arg2: i32, %arg3: i32) -> (i32, i32, i32) {
    %c0_i32 = arith.constant 0 : i32
    return %arg0, %arg1, %arg2 : i32, i32, i32
  }
}

module attributes {stable_mosaic.version = 11 : i64} {
  func.func @_mm_fused_kernel(%arg0: i32, %arg1: i32, %arg2: i32, %arg3: i32, %arg4: memref<1x16x512xbf16, #tpu.memory_space<vmem>>, %arg5: memref<1x512x128xbf16, #tpu.memory_space<vmem>>, %arg6: memref<1x1x128xf32, #tpu.memory_space<vmem>>, %arg7: memref<1x1x128xf32, #tpu.memory_space<vmem>>, %arg8: memref<1x16x128xf32, #tpu.memory_space<vmem>>, %arg9: memref<16x128xf32, #tpu.memory_space<vmem>>) attributes {dimension_semantics = [#tpu.dimension_semantics<parallel>, #tpu.dimension_semantics<parallel>, #tpu.dimension_semantics<parallel>, #tpu.dimension_semantics<arbitrary>], iteration_bounds = array<i64: 1, 1, 1, 1>, scalar_prefetch = 0 : i64, scratch_operands = 1 : i64, tpu.core_type = #tpu.core_type<tc>, window_params = [{transform_indices = @transform_0, window_bounds = array<i64: 1, 16, 512>}, {transform_indices = @transform_1, window_bounds = array<i64: 1, 512, 128>}, {transform_indices = @transform_2, window_bounds = array<i64: 1, 1, 128>}, {transform_indices = @transform_3, window_bounds = array<i64: 1, 1, 128>}, {transform_indices = @transform_4, window_bounds = array<i64: 1, 16, 128>}]} {
    %c0_i32 = arith.constant 0 : i32
    %0 = arith.cmpi eq, %arg3, %c0_i32 : i32
    %1 = arith.extui %0 : i1 to i32
    %c0_i32_0 = arith.constant 0 : i32
    %2 = arith.cmpi ne, %1, %c0_i32_0 : i32
    scf.if %2 {
      %cst_12 = arith.constant 0.000000e+00 : f32
      %14 = vector.broadcast %cst_12 : f32 to vector<16x128xf32>
      %c0_13 = arith.constant 0 : index
      %c0_14 = arith.constant 0 : index
      %15 = vector.load %arg9[%c0_13, %c0_14] : memref<16x128xf32, #tpu.memory_space<vmem>>, vector<16x128xf32>
      tpu.vector_store %arg9[%c0_13, %c0_14], %14 {strides = array<i32>} : memref<16x128xf32, #tpu.memory_space<vmem>>, vector<16x128xf32>,
    } else {
    }
    %c0 = arith.constant 0 : index
    %c0_1 = arith.constant 0 : index
    %3 = vector.load %arg9[%c0, %c0_1] : memref<16x128xf32, #tpu.memory_space<vmem>>, vector<16x128xf32>
    %c0_2 = arith.constant 0 : index
    %c0_3 = arith.constant 0 : index
    %c0_4 = arith.constant 0 : index
    %4 = vector.load %arg4[%c0_2, %c0_3, %c0_4] : memref<1x16x512xbf16, #tpu.memory_space<vmem>>, vector<1x16x512xbf16>
    %5 = vector.shape_cast %4 : vector<1x16x512xbf16> to vector<16x512xbf16>
    %c0_5 = arith.constant 0 : index
    %c0_6 = arith.constant 0 : index
    %c0_7 = arith.constant 0 : index
    %6 = vector.load %arg5[%c0_5, %c0_6, %c0_7] : memref<1x512x128xbf16, #tpu.memory_space<vmem>>, vector<1x512x128xbf16>
    %7 = vector.shape_cast %6 : vector<1x512x128xbf16> to vector<512x128xbf16>
    %cst = arith.constant dense<0.000000e+00> : vector<16x128xf32>
    %8 = tpu.matmul %5, %7, %cst {dimension_numbers = #tpu.dot_dimension_numbers<[1], [0], [0], [1], [0, 0, 1, 1], [], []>} : vector<16x512xbf16>, vector<512x128xbf16>, vector<16x128xf32> -> vector<16x128xf32>
    %9 = arith.addf %3, %8 : vector<16x128xf32>
    %c0_8 = arith.constant 0 : index
    %c0_9 = arith.constant 0 : index
    %10 = vector.load %arg9[%c0_8, %c0_9] : memref<16x128xf32, #tpu.memory_space<vmem>>, vector<16x128xf32>
    tpu.vector_store %arg9[%c0_8, %c0_9], %9 {strides = array<i32>} : memref<16x128xf32, #tpu.memory_space<vmem>>, vector<16x128xf32>,
    %c0_i32_10 = arith.constant 0 : i32
    %11 = arith.cmpi eq, %arg3, %c0_i32_10 : i32
    %12 = arith.extui %11 : i1 to i32
    %c0_i32_11 = arith.constant 0 : i32
    %13 = arith.cmpi ne, %12, %c0_i32_11 : i32
    scf.if %13 {
      %c0_12 = arith.constant 0 : index
      %c0_13 = arith.constant 0 : index
      %14 = vector.load %arg9[%c0_12, %c0_13] : memref<16x128xf32, #tpu.memory_space<vmem>>, vector<16x128xf32>
      %c0_14 = arith.constant 0 : index
      %c0_15 = arith.constant 0 : index
      %c0_16 = arith.constant 0 : index
      %15 = vector.load %arg6[%c0_14, %c0_15, %c0_16] : memref<1x1x128xf32, #tpu.memory_space<vmem>>, vector<1x1x128xf32>
      %16 = vector.shape_cast %15 : vector<1x1x128xf32> to vector<1x128xf32>
      %17 = vector.broadcast %16 : vector<1x128xf32> to vector<16x128xf32>
      %18 = arith.mulf %14, %17 : vector<16x128xf32>
      %c0_17 = arith.constant 0 : index
      %c0_18 = arith.constant 0 : index
      %c0_19 = arith.constant 0 : index
      %19 = vector.load %arg7[%c0_17, %c0_18, %c0_19] : memref<1x1x128xf32, #tpu.memory_space<vmem>>, vector<1x1x128xf32>
      %20 = vector.shape_cast %19 : vector<1x1x128xf32> to vector<1x128xf32>
      %21 = vector.broadcast %20 : vector<1x128xf32> to vector<16x128xf32>
      %22 = arith.addf %18, %21 : vector<16x128xf32>
      %c0_20 = arith.constant 0 : index
      %c0_21 = arith.constant 0 : index
      %c0_22 = arith.constant 0 : index
      %23 = vector.load %arg8[%c0_20, %c0_21, %c0_22] : memref<1x16x128xf32, #tpu.memory_space<vmem>>, vector<1x16x128xf32>
      %24 = vector.shape_cast %23 : vector<1x16x128xf32> to vector<16x128xf32>
      %25 = vector.shape_cast %22 : vector<16x128xf32> to vector<1x16x128xf32>
      tpu.vector_store %arg8[%c0_20, %c0_21, %c0_22], %25 {strides = array<i32>} : memref<1x16x128xf32, #tpu.memory_space<vmem>>, vector<1x16x128xf32>,
    } else {
    }
    return
  }
  func.func @transform_0(%arg0: i32, %arg1: i32, %arg2: i32, %arg3: i32) -> (i32, i32, i32) {
    %c0_i32 = arith.constant 0 : i32
    return %arg0, %arg1, %arg3 : i32, i32, i32
  }
  func.func @transform_1(%arg0: i32, %arg1: i32, %arg2: i32, %arg3: i32) -> (i32, i32, i32) {
    %c0_i32 = arith.constant 0 : i32
    return %arg0, %arg3, %arg2 : i32, i32, i32
  }
  func.func @transform_2(%arg0: i32, %arg1: i32, %arg2: i32, %arg3: i32) -> (i32, i32, i32) {
    %c0_i32 = arith.constant 0 : i32
    %c0_i32_0 = arith.constant 0 : i32
    return %arg0, %c0_i32, %arg2 : i32, i32, i32
  }
  func.func @transform_3(%arg0: i32, %arg1: i32, %arg2: i32, %arg3: i32) -> (i32, i32, i32) {
    %c0_i32 = arith.constant 0 : i32
    %c0_i32_0 = arith.constant 0 : i32
    return %arg0, %c0_i32, %arg2 : i32, i32, i32
  }
  func.func @transform_4(%arg0: i32, %arg1: i32, %arg2: i32, %arg3: i32) -> (i32, i32, i32) {
    %c0_i32 = arith.constant 0 : i32
    return %arg0, %arg1, %arg2 : i32, i32, i32
  }
}

module attributes {stable_mosaic.version = 11 : i64} {
  func.func @_mm_fused_kernel(%arg0: i32, %arg1: i32, %arg2: i32, %arg3: i32, %arg4: memref<1x16x1024xbf16, #tpu.memory_space<vmem>>, %arg5: memref<1x1024x128xbf16, #tpu.memory_space<vmem>>, %arg6: memref<1x1x128xf32, #tpu.memory_space<vmem>>, %arg7: memref<1x1x128xf32, #tpu.memory_space<vmem>>, %arg8: memref<1x16x128xf32, #tpu.memory_space<vmem>>, %arg9: memref<16x128xf32, #tpu.memory_space<vmem>>) attributes {dimension_semantics = [#tpu.dimension_semantics<parallel>, #tpu.dimension_semantics<parallel>, #tpu.dimension_semantics<parallel>, #tpu.dimension_semantics<arbitrary>], iteration_bounds = array<i64: 1, 1, 1, 1>, scalar_prefetch = 0 : i64, scratch_operands = 1 : i64, tpu.core_type = #tpu.core_type<tc>, window_params = [{transform_indices = @transform_0, window_bounds = array<i64: 1, 16, 1024>}, {transform_indices = @transform_1, window_bounds = array<i64: 1, 1024, 128>}, {transform_indices = @transform_2, window_bounds = array<i64: 1, 1, 128>}, {transform_indices = @transform_3, window_bounds = array<i64: 1, 1, 128>}, {transform_indices = @transform_4, window_bounds = array<i64: 1, 16, 128>}]} {
    %c0_i32 = arith.constant 0 : i32
    %0 = arith.cmpi eq, %arg3, %c0_i32 : i32
    %1 = arith.extui %0 : i1 to i32
    %c0_i32_0 = arith.constant 0 : i32
    %2 = arith.cmpi ne, %1, %c0_i32_0 : i32
    scf.if %2 {
      %cst_12 = arith.constant 0.000000e+00 : f32
      %14 = vector.broadcast %cst_12 : f32 to vector<16x128xf32>
      %c0_13 = arith.constant 0 : index
      %c0_14 = arith.constant 0 : index
      %15 = vector.load %arg9[%c0_13, %c0_14] : memref<16x128xf32, #tpu.memory_space<vmem>>, vector<16x128xf32>
      tpu.vector_store %arg9[%c0_13, %c0_14], %14 {strides = array<i32>} : memref<16x128xf32, #tpu.memory_space<vmem>>, vector<16x128xf32>,
    } else {
    }
    %c0 = arith.constant 0 : index
    %c0_1 = arith.constant 0 : index
    %3 = vector.load %arg9[%c0, %c0_1] : memref<16x128xf32, #tpu.memory_space<vmem>>, vector<16x128xf32>
    %c0_2 = arith.constant 0 : index
    %c0_3 = arith.constant 0 : index
    %c0_4 = arith.constant 0 : index
    %4 = vector.load %arg4[%c0_2, %c0_3, %c0_4] : memref<1x16x1024xbf16, #tpu.memory_space<vmem>>, vector<1x16x1024xbf16>
    %5 = vector.shape_cast %4 : vector<1x16x1024xbf16> to vector<16x1024xbf16>
    %c0_5 = arith.constant 0 : index
    %c0_6 = arith.constant 0 : index
    %c0_7 = arith.constant 0 : index
    %6 = vector.load %arg5[%c0_5, %c0_6, %c0_7] : memref<1x1024x128xbf16, #tpu.memory_space<vmem>>, vector<1x1024x128xbf16>
    %7 = vector.shape_cast %6 : vector<1x1024x128xbf16> to vector<1024x128xbf16>
    %cst = arith.constant dense<0.000000e+00> : vector<16x128xf32>
    %8 = tpu.matmul %5, %7, %cst {dimension_numbers = #tpu.dot_dimension_numbers<[1], [0], [0], [1], [0, 0, 1, 1], [], []>} : vector<16x1024xbf16>, vector<1024x128xbf16>, vector<16x128xf32> -> vector<16x128xf32>
    %9 = arith.addf %3, %8 : vector<16x128xf32>
    %c0_8 = arith.constant 0 : index
    %c0_9 = arith.constant 0 : index
    %10 = vector.load %arg9[%c0_8, %c0_9] : memref<16x128xf32, #tpu.memory_space<vmem>>, vector<16x128xf32>
    tpu.vector_store %arg9[%c0_8, %c0_9], %9 {strides = array<i32>} : memref<16x128xf32, #tpu.memory_space<vmem>>, vector<16x128xf32>,
    %c0_i32_10 = arith.constant 0 : i32
    %11 = arith.cmpi eq, %arg3, %c0_i32_10 : i32
    %12 = arith.extui %11 : i1 to i32
    %c0_i32_11 = arith.constant 0 : i32
    %13 = arith.cmpi ne, %12, %c0_i32_11 : i32
    scf.if %13 {
      %c0_12 = arith.constant 0 : index
      %c0_13 = arith.constant 0 : index
      %14 = vector.load %arg9[%c0_12, %c0_13] : memref<16x128xf32, #tpu.memory_space<vmem>>, vector<16x128xf32>
      %c0_14 = arith.constant 0 : index
      %c0_15 = arith.constant 0 : index
      %c0_16 = arith.constant 0 : index
      %15 = vector.load %arg6[%c0_14, %c0_15, %c0_16] : memref<1x1x128xf32, #tpu.memory_space<vmem>>, vector<1x1x128xf32>
      %16 = vector.shape_cast %15 : vector<1x1x128xf32> to vector<1x128xf32>
      %17 = vector.broadcast %16 : vector<1x128xf32> to vector<16x128xf32>
      %18 = arith.mulf %14, %17 : vector<16x128xf32>
      %c0_17 = arith.constant 0 : index
      %c0_18 = arith.constant 0 : index
      %c0_19 = arith.constant 0 : index
      %19 = vector.load %arg7[%c0_17, %c0_18, %c0_19] : memref<1x1x128xf32, #tpu.memory_space<vmem>>, vector<1x1x128xf32>
      %20 = vector.shape_cast %19 : vector<1x1x128xf32> to vector<1x128xf32>
      %21 = vector.broadcast %20 : vector<1x128xf32> to vector<16x128xf32>
      %22 = arith.addf %18, %21 : vector<16x128xf32>
      %cst_20 = arith.constant 0.000000e+00 : f32
      %23 = vector.broadcast %cst_20 : f32 to vector<16x128xf32>
      %24 = arith.maximumf %22, %23 : vector<16x128xf32>
      %c0_21 = arith.constant 0 : index
      %c0_22 = arith.constant 0 : index
      %c0_23 = arith.constant 0 : index
      %25 = vector.load %arg8[%c0_21, %c0_22, %c0_23] : memref<1x16x128xf32, #tpu.memory_space<vmem>>, vector<1x16x128xf32>
      %26 = vector.shape_cast %25 : vector<1x16x128xf32> to vector<16x128xf32>
      %27 = vector.shape_cast %24 : vector<16x128xf32> to vector<1x16x128xf32>
      tpu.vector_store %arg8[%c0_21, %c0_22, %c0_23], %27 {strides = array<i32>} : memref<1x16x128xf32, #tpu.memory_space<vmem>>, vector<1x16x128xf32>,
    } else {
    }
    return
  }
  func.func @transform_0(%arg0: i32, %arg1: i32, %arg2: i32, %arg3: i32) -> (i32, i32, i32) {
    %c0_i32 = arith.constant 0 : i32
    return %arg0, %arg1, %arg3 : i32, i32, i32
  }
  func.func @transform_1(%arg0: i32, %arg1: i32, %arg2: i32, %arg3: i32) -> (i32, i32, i32) {
    %c0_i32 = arith.constant 0 : i32
    return %arg0, %arg3, %arg2 : i32, i32, i32
  }
  func.func @transform_2(%arg0: i32, %arg1: i32, %arg2: i32, %arg3: i32) -> (i32, i32, i32) {
    %c0_i32 = arith.constant 0 : i32
    %c0_i32_0 = arith.constant 0 : i32
    return %arg0, %c0_i32, %arg2 : i32, i32, i32
  }
  func.func @transform_3(%arg0: i32, %arg1: i32, %arg2: i32, %arg3: i32) -> (i32, i32, i32) {
    %c0_i32 = arith.constant 0 : i32
    %c0_i32_0 = arith.constant 0 : i32
    return %arg0, %c0_i32, %arg2 : i32, i32, i32
  }
  func.func @transform_4(%arg0: i32, %arg1: i32, %arg2: i32, %arg3: i32) -> (i32, i32, i32) {
    %c0_i32 = arith.constant 0 : i32
    return %arg0, %arg1, %arg2 : i32, i32, i32
  }
}

module attributes {stable_mosaic.version = 11 : i64} {
  func.func @_mm_fused_kernel(%arg0: i32, %arg1: i32, %arg2: i32, %arg3: i32, %arg4: memref<1x16x256xbf16, #tpu.memory_space<vmem>>, %arg5: memref<1x256x128xbf16, #tpu.memory_space<vmem>>, %arg6: memref<1x1x128xf32, #tpu.memory_space<vmem>>, %arg7: memref<1x1x128xf32, #tpu.memory_space<vmem>>, %arg8: memref<1x16x128xf32, #tpu.memory_space<vmem>>, %arg9: memref<16x128xf32, #tpu.memory_space<vmem>>) attributes {dimension_semantics = [#tpu.dimension_semantics<parallel>, #tpu.dimension_semantics<parallel>, #tpu.dimension_semantics<parallel>, #tpu.dimension_semantics<arbitrary>], iteration_bounds = array<i64: 4, 1, 1, 1>, scalar_prefetch = 0 : i64, scratch_operands = 1 : i64, tpu.core_type = #tpu.core_type<tc>, window_params = [{transform_indices = @transform_0, window_bounds = array<i64: 1, 16, 256>}, {transform_indices = @transform_1, window_bounds = array<i64: 1, 256, 128>}, {transform_indices = @transform_2, window_bounds = array<i64: 1, 1, 128>}, {transform_indices = @transform_3, window_bounds = array<i64: 1, 1, 128>}, {transform_indices = @transform_4, window_bounds = array<i64: 1, 16, 128>}]} {
    %c0_i32 = arith.constant 0 : i32
    %0 = arith.cmpi eq, %arg3, %c0_i32 : i32
    %1 = arith.extui %0 : i1 to i32
    %c0_i32_0 = arith.constant 0 : i32
    %2 = arith.cmpi ne, %1, %c0_i32_0 : i32
    scf.if %2 {
      %cst_12 = arith.constant 0.000000e+00 : f32
      %14 = vector.broadcast %cst_12 : f32 to vector<16x128xf32>
      %c0_13 = arith.constant 0 : index
      %c0_14 = arith.constant 0 : index
      %15 = vector.load %arg9[%c0_13, %c0_14] : memref<16x128xf32, #tpu.memory_space<vmem>>, vector<16x128xf32>
      tpu.vector_store %arg9[%c0_13, %c0_14], %14 {strides = array<i32>} : memref<16x128xf32, #tpu.memory_space<vmem>>, vector<16x128xf32>,
    } else {
    }
    %c0 = arith.constant 0 : index
    %c0_1 = arith.constant 0 : index
    %3 = vector.load %arg9[%c0, %c0_1] : memref<16x128xf32, #tpu.memory_space<vmem>>, vector<16x128xf32>
    %c0_2 = arith.constant 0 : index
    %c0_3 = arith.constant 0 : index
    %c0_4 = arith.constant 0 : index
    %4 = vector.load %arg4[%c0_2, %c0_3, %c0_4] : memref<1x16x256xbf16, #tpu.memory_space<vmem>>, vector<1x16x256xbf16>
    %5 = vector.shape_cast %4 : vector<1x16x256xbf16> to vector<16x256xbf16>
    %c0_5 = arith.constant 0 : index
    %c0_6 = arith.constant 0 : index
    %c0_7 = arith.constant 0 : index
    %6 = vector.load %arg5[%c0_5, %c0_6, %c0_7] : memref<1x256x128xbf16, #tpu.memory_space<vmem>>, vector<1x256x128xbf16>
    %7 = vector.shape_cast %6 : vector<1x256x128xbf16> to vector<256x128xbf16>
    %cst = arith.constant dense<0.000000e+00> : vector<16x128xf32>
    %8 = tpu.matmul %5, %7, %cst {dimension_numbers = #tpu.dot_dimension_numbers<[1], [0], [0], [1], [0, 0, 1, 1], [], []>} : vector<16x256xbf16>, vector<256x128xbf16>, vector<16x128xf32> -> vector<16x128xf32>
    %9 = arith.addf %3, %8 : vector<16x128xf32>
    %c0_8 = arith.constant 0 : index
    %c0_9 = arith.constant 0 : index
    %10 = vector.load %arg9[%c0_8, %c0_9] : memref<16x128xf32, #tpu.memory_space<vmem>>, vector<16x128xf32>
    tpu.vector_store %arg9[%c0_8, %c0_9], %9 {strides = array<i32>} : memref<16x128xf32, #tpu.memory_space<vmem>>, vector<16x128xf32>,
    %c0_i32_10 = arith.constant 0 : i32
    %11 = arith.cmpi eq, %arg3, %c0_i32_10 : i32
    %12 = arith.extui %11 : i1 to i32
    %c0_i32_11 = arith.constant 0 : i32
    %13 = arith.cmpi ne, %12, %c0_i32_11 : i32
    scf.if %13 {
      %c0_12 = arith.constant 0 : index
      %c0_13 = arith.constant 0 : index
      %14 = vector.load %arg9[%c0_12, %c0_13] : memref<16x128xf32, #tpu.memory_space<vmem>>, vector<16x128xf32>
      %c0_14 = arith.constant 0 : index
      %c0_15 = arith.constant 0 : index
      %c0_16 = arith.constant 0 : index
      %15 = vector.load %arg6[%c0_14, %c0_15, %c0_16] : memref<1x1x128xf32, #tpu.memory_space<vmem>>, vector<1x1x128xf32>
      %16 = vector.shape_cast %15 : vector<1x1x128xf32> to vector<1x128xf32>
      %17 = vector.broadcast %16 : vector<1x128xf32> to vector<16x128xf32>
      %18 = arith.mulf %14, %17 : vector<16x128xf32>
      %c0_17 = arith.constant 0 : index
      %c0_18 = arith.constant 0 : index
      %c0_19 = arith.constant 0 : index
      %19 = vector.load %arg7[%c0_17, %c0_18, %c0_19] : memref<1x1x128xf32, #tpu.memory_space<vmem>>, vector<1x1x128xf32>
      %20 = vector.shape_cast %19 : vector<1x1x128xf32> to vector<1x128xf32>
      %21 = vector.broadcast %20 : vector<1x128xf32> to vector<16x128xf32>
      %22 = arith.addf %18, %21 : vector<16x128xf32>
      %c0_20 = arith.constant 0 : index
      %c0_21 = arith.constant 0 : index
      %c0_22 = arith.constant 0 : index
      %23 = vector.load %arg8[%c0_20, %c0_21, %c0_22] : memref<1x16x128xf32, #tpu.memory_space<vmem>>, vector<1x16x128xf32>
      %24 = vector.shape_cast %23 : vector<1x16x128xf32> to vector<16x128xf32>
      %25 = vector.shape_cast %22 : vector<16x128xf32> to vector<1x16x128xf32>
      tpu.vector_store %arg8[%c0_20, %c0_21, %c0_22], %25 {strides = array<i32>} : memref<1x16x128xf32, #tpu.memory_space<vmem>>, vector<1x16x128xf32>,
    } else {
    }
    return
  }
  func.func @transform_0(%arg0: i32, %arg1: i32, %arg2: i32, %arg3: i32) -> (i32, i32, i32) {
    %c0_i32 = arith.constant 0 : i32
    return %arg0, %arg1, %arg3 : i32, i32, i32
  }
  func.func @transform_1(%arg0: i32, %arg1: i32, %arg2: i32, %arg3: i32) -> (i32, i32, i32) {
    %c0_i32 = arith.constant 0 : i32
    return %arg0, %arg3, %arg2 : i32, i32, i32
  }
  func.func @transform_2(%arg0: i32, %arg1: i32, %arg2: i32, %arg3: i32) -> (i32, i32, i32) {
    %c0_i32 = arith.constant 0 : i32
    %c0_i32_0 = arith.constant 0 : i32
    return %arg0, %c0_i32, %arg2 : i32, i32, i32
  }
  func.func @transform_3(%arg0: i32, %arg1: i32, %arg2: i32, %arg3: i32) -> (i32, i32, i32) {
    %c0_i32 = arith.constant 0 : i32
    %c0_i32_0 = arith.constant 0 : i32
    return %arg0, %c0_i32, %arg2 : i32, i32, i32
  }
  func.func @transform_4(%arg0: i32, %arg1: i32, %arg2: i32, %arg3: i32) -> (i32, i32, i32) {
    %c0_i32 = arith.constant 0 : i32
    return %arg0, %arg1, %arg2 : i32, i32, i32
  }
}

module attributes {stable_mosaic.version = 11 : i64} {
  func.func @_mm_fused_kernel(%arg0: i32, %arg1: i32, %arg2: i32, %arg3: i32, %arg4: memref<1x16x512xbf16, #tpu.memory_space<vmem>>, %arg5: memref<1x512x128xbf16, #tpu.memory_space<vmem>>, %arg6: memref<1x1x128xf32, #tpu.memory_space<vmem>>, %arg7: memref<1x1x128xf32, #tpu.memory_space<vmem>>, %arg8: memref<1x16x128xf32, #tpu.memory_space<vmem>>, %arg9: memref<16x128xf32, #tpu.memory_space<vmem>>) attributes {dimension_semantics = [#tpu.dimension_semantics<parallel>, #tpu.dimension_semantics<parallel>, #tpu.dimension_semantics<parallel>, #tpu.dimension_semantics<arbitrary>], iteration_bounds = array<i64: 4, 1, 1, 1>, scalar_prefetch = 0 : i64, scratch_operands = 1 : i64, tpu.core_type = #tpu.core_type<tc>, window_params = [{transform_indices = @transform_0, window_bounds = array<i64: 1, 16, 512>}, {transform_indices = @transform_1, window_bounds = array<i64: 1, 512, 128>}, {transform_indices = @transform_2, window_bounds = array<i64: 1, 1, 128>}, {transform_indices = @transform_3, window_bounds = array<i64: 1, 1, 128>}, {transform_indices = @transform_4, window_bounds = array<i64: 1, 16, 128>}]} {
    %c0_i32 = arith.constant 0 : i32
    %0 = arith.cmpi eq, %arg3, %c0_i32 : i32
    %1 = arith.extui %0 : i1 to i32
    %c0_i32_0 = arith.constant 0 : i32
    %2 = arith.cmpi ne, %1, %c0_i32_0 : i32
    scf.if %2 {
      %cst_12 = arith.constant 0.000000e+00 : f32
      %14 = vector.broadcast %cst_12 : f32 to vector<16x128xf32>
      %c0_13 = arith.constant 0 : index
      %c0_14 = arith.constant 0 : index
      %15 = vector.load %arg9[%c0_13, %c0_14] : memref<16x128xf32, #tpu.memory_space<vmem>>, vector<16x128xf32>
      tpu.vector_store %arg9[%c0_13, %c0_14], %14 {strides = array<i32>} : memref<16x128xf32, #tpu.memory_space<vmem>>, vector<16x128xf32>,
    } else {
    }
    %c0 = arith.constant 0 : index
    %c0_1 = arith.constant 0 : index
    %3 = vector.load %arg9[%c0, %c0_1] : memref<16x128xf32, #tpu.memory_space<vmem>>, vector<16x128xf32>
    %c0_2 = arith.constant 0 : index
    %c0_3 = arith.constant 0 : index
    %c0_4 = arith.constant 0 : index
    %4 = vector.load %arg4[%c0_2, %c0_3, %c0_4] : memref<1x16x512xbf16, #tpu.memory_space<vmem>>, vector<1x16x512xbf16>
    %5 = vector.shape_cast %4 : vector<1x16x512xbf16> to vector<16x512xbf16>
    %c0_5 = arith.constant 0 : index
    %c0_6 = arith.constant 0 : index
    %c0_7 = arith.constant 0 : index
    %6 = vector.load %arg5[%c0_5, %c0_6, %c0_7] : memref<1x512x128xbf16, #tpu.memory_space<vmem>>, vector<1x512x128xbf16>
    %7 = vector.shape_cast %6 : vector<1x512x128xbf16> to vector<512x128xbf16>
    %cst = arith.constant dense<0.000000e+00> : vector<16x128xf32>
    %8 = tpu.matmul %5, %7, %cst {dimension_numbers = #tpu.dot_dimension_numbers<[1], [0], [0], [1], [0, 0, 1, 1], [], []>} : vector<16x512xbf16>, vector<512x128xbf16>, vector<16x128xf32> -> vector<16x128xf32>
    %9 = arith.addf %3, %8 : vector<16x128xf32>
    %c0_8 = arith.constant 0 : index
    %c0_9 = arith.constant 0 : index
    %10 = vector.load %arg9[%c0_8, %c0_9] : memref<16x128xf32, #tpu.memory_space<vmem>>, vector<16x128xf32>
    tpu.vector_store %arg9[%c0_8, %c0_9], %9 {strides = array<i32>} : memref<16x128xf32, #tpu.memory_space<vmem>>, vector<16x128xf32>,
    %c0_i32_10 = arith.constant 0 : i32
    %11 = arith.cmpi eq, %arg3, %c0_i32_10 : i32
    %12 = arith.extui %11 : i1 to i32
    %c0_i32_11 = arith.constant 0 : i32
    %13 = arith.cmpi ne, %12, %c0_i32_11 : i32
    scf.if %13 {
      %c0_12 = arith.constant 0 : index
      %c0_13 = arith.constant 0 : index
      %14 = vector.load %arg9[%c0_12, %c0_13] : memref<16x128xf32, #tpu.memory_space<vmem>>, vector<16x128xf32>
      %c0_14 = arith.constant 0 : index
      %c0_15 = arith.constant 0 : index
      %c0_16 = arith.constant 0 : index
      %15 = vector.load %arg6[%c0_14, %c0_15, %c0_16] : memref<1x1x128xf32, #tpu.memory_space<vmem>>, vector<1x1x128xf32>
      %16 = vector.shape_cast %15 : vector<1x1x128xf32> to vector<1x128xf32>
      %17 = vector.broadcast %16 : vector<1x128xf32> to vector<16x128xf32>
      %18 = arith.mulf %14, %17 : vector<16x128xf32>
      %c0_17 = arith.constant 0 : index
      %c0_18 = arith.constant 0 : index
      %c0_19 = arith.constant 0 : index
      %19 = vector.load %arg7[%c0_17, %c0_18, %c0_19] : memref<1x1x128xf32, #tpu.memory_space<vmem>>, vector<1x1x128xf32>
      %20 = vector.shape_cast %19 : vector<1x1x128xf32> to vector<1x128xf32>
      %21 = vector.broadcast %20 : vector<1x128xf32> to vector<16x128xf32>
      %22 = arith.addf %18, %21 : vector<16x128xf32>
      %c0_20 = arith.constant 0 : index
      %c0_21 = arith.constant 0 : index
      %c0_22 = arith.constant 0 : index
      %23 = vector.load %arg8[%c0_20, %c0_21, %c0_22] : memref<1x16x128xf32, #tpu.memory_space<vmem>>, vector<1x16x128xf32>
      %24 = vector.shape_cast %23 : vector<1x16x128xf32> to vector<16x128xf32>
      %25 = vector.shape_cast %22 : vector<16x128xf32> to vector<1x16x128xf32>
      tpu.vector_store %arg8[%c0_20, %c0_21, %c0_22], %25 {strides = array<i32>} : memref<1x16x128xf32, #tpu.memory_space<vmem>>, vector<1x16x128xf32>,
    } else {
    }
    return
  }
  func.func @transform_0(%arg0: i32, %arg1: i32, %arg2: i32, %arg3: i32) -> (i32, i32, i32) {
    %c0_i32 = arith.constant 0 : i32
    return %arg0, %arg1, %arg3 : i32, i32, i32
  }
  func.func @transform_1(%arg0: i32, %arg1: i32, %arg2: i32, %arg3: i32) -> (i32, i32, i32) {
    %c0_i32 = arith.constant 0 : i32
    return %arg0, %arg3, %arg2 : i32, i32, i32
  }
  func.func @transform_2(%arg0: i32, %arg1: i32, %arg2: i32, %arg3: i32) -> (i32, i32, i32) {
    %c0_i32 = arith.constant 0 : i32
    %c0_i32_0 = arith.constant 0 : i32
    return %arg0, %c0_i32, %arg2 : i32, i32, i32
  }
  func.func @transform_3(%arg0: i32, %arg1: i32, %arg2: i32, %arg3: i32) -> (i32, i32, i32) {
    %c0_i32 = arith.constant 0 : i32
    %c0_i32_0 = arith.constant 0 : i32
    return %arg0, %c0_i32, %arg2 : i32, i32, i32
  }
  func.func @transform_4(%arg0: i32, %arg1: i32, %arg2: i32, %arg3: i32) -> (i32, i32, i32) {
    %c0_i32 = arith.constant 0 : i32
    return %arg0, %arg1, %arg2 : i32, i32, i32
  }
}

module attributes {stable_mosaic.version = 11 : i64} {
  func.func @_mm_fused_kernel(%arg0: i32, %arg1: i32, %arg2: i32, %arg3: i32, %arg4: memref<1x32x256xbf16, #tpu.memory_space<vmem>>, %arg5: memref<1x256x128xbf16, #tpu.memory_space<vmem>>, %arg6: memref<1x1x128xf32, #tpu.memory_space<vmem>>, %arg7: memref<1x1x128xf32, #tpu.memory_space<vmem>>, %arg8: memref<1x32x128xf32, #tpu.memory_space<vmem>>, %arg9: memref<32x128xf32, #tpu.memory_space<vmem>>) attributes {dimension_semantics = [#tpu.dimension_semantics<parallel>, #tpu.dimension_semantics<parallel>, #tpu.dimension_semantics<parallel>, #tpu.dimension_semantics<arbitrary>], iteration_bounds = array<i64: 4, 1, 1, 1>, scalar_prefetch = 0 : i64, scratch_operands = 1 : i64, tpu.core_type = #tpu.core_type<tc>, window_params = [{transform_indices = @transform_0, window_bounds = array<i64: 1, 32, 256>}, {transform_indices = @transform_1, window_bounds = array<i64: 1, 256, 128>}, {transform_indices = @transform_2, window_bounds = array<i64: 1, 1, 128>}, {transform_indices = @transform_3, window_bounds = array<i64: 1, 1, 128>}, {transform_indices = @transform_4, window_bounds = array<i64: 1, 32, 128>}]} {
    %c0_i32 = arith.constant 0 : i32
    %0 = arith.cmpi eq, %arg3, %c0_i32 : i32
    %1 = arith.extui %0 : i1 to i32
    %c0_i32_0 = arith.constant 0 : i32
    %2 = arith.cmpi ne, %1, %c0_i32_0 : i32
    scf.if %2 {
      %cst_12 = arith.constant 0.000000e+00 : f32
      %14 = vector.broadcast %cst_12 : f32 to vector<32x128xf32>
      %c0_13 = arith.constant 0 : index
      %c0_14 = arith.constant 0 : index
      %15 = vector.load %arg9[%c0_13, %c0_14] : memref<32x128xf32, #tpu.memory_space<vmem>>, vector<32x128xf32>
      tpu.vector_store %arg9[%c0_13, %c0_14], %14 {strides = array<i32>} : memref<32x128xf32, #tpu.memory_space<vmem>>, vector<32x128xf32>,
    } else {
    }
    %c0 = arith.constant 0 : index
    %c0_1 = arith.constant 0 : index
    %3 = vector.load %arg9[%c0, %c0_1] : memref<32x128xf32, #tpu.memory_space<vmem>>, vector<32x128xf32>
    %c0_2 = arith.constant 0 : index
    %c0_3 = arith.constant 0 : index
    %c0_4 = arith.constant 0 : index
    %4 = vector.load %arg4[%c0_2, %c0_3, %c0_4] : memref<1x32x256xbf16, #tpu.memory_space<vmem>>, vector<1x32x256xbf16>
    %5 = vector.shape_cast %4 : vector<1x32x256xbf16> to vector<32x256xbf16>
    %c0_5 = arith.constant 0 : index
    %c0_6 = arith.constant 0 : index
    %c0_7 = arith.constant 0 : index
    %6 = vector.load %arg5[%c0_5, %c0_6, %c0_7] : memref<1x256x128xbf16, #tpu.memory_space<vmem>>, vector<1x256x128xbf16>
    %7 = vector.shape_cast %6 : vector<1x256x128xbf16> to vector<256x128xbf16>
    %cst = arith.constant dense<0.000000e+00> : vector<32x128xf32>
    %8 = tpu.matmul %5, %7, %cst {dimension_numbers = #tpu.dot_dimension_numbers<[1], [0], [0], [1], [0, 0, 1, 1], [], []>} : vector<32x256xbf16>, vector<256x128xbf16>, vector<32x128xf32> -> vector<32x128xf32>
    %9 = arith.addf %3, %8 : vector<32x128xf32>
    %c0_8 = arith.constant 0 : index
    %c0_9 = arith.constant 0 : index
    %10 = vector.load %arg9[%c0_8, %c0_9] : memref<32x128xf32, #tpu.memory_space<vmem>>, vector<32x128xf32>
    tpu.vector_store %arg9[%c0_8, %c0_9], %9 {strides = array<i32>} : memref<32x128xf32, #tpu.memory_space<vmem>>, vector<32x128xf32>,
    %c0_i32_10 = arith.constant 0 : i32
    %11 = arith.cmpi eq, %arg3, %c0_i32_10 : i32
    %12 = arith.extui %11 : i1 to i32
    %c0_i32_11 = arith.constant 0 : i32
    %13 = arith.cmpi ne, %12, %c0_i32_11 : i32
    scf.if %13 {
      %c0_12 = arith.constant 0 : index
      %c0_13 = arith.constant 0 : index
      %14 = vector.load %arg9[%c0_12, %c0_13] : memref<32x128xf32, #tpu.memory_space<vmem>>, vector<32x128xf32>
      %c0_14 = arith.constant 0 : index
      %c0_15 = arith.constant 0 : index
      %c0_16 = arith.constant 0 : index
      %15 = vector.load %arg6[%c0_14, %c0_15, %c0_16] : memref<1x1x128xf32, #tpu.memory_space<vmem>>, vector<1x1x128xf32>
      %16 = vector.shape_cast %15 : vector<1x1x128xf32> to vector<1x128xf32>
      %17 = vector.broadcast %16 : vector<1x128xf32> to vector<32x128xf32>
      %18 = arith.mulf %14, %17 : vector<32x128xf32>
      %c0_17 = arith.constant 0 : index
      %c0_18 = arith.constant 0 : index
      %c0_19 = arith.constant 0 : index
      %19 = vector.load %arg7[%c0_17, %c0_18, %c0_19] : memref<1x1x128xf32, #tpu.memory_space<vmem>>, vector<1x1x128xf32>
      %20 = vector.shape_cast %19 : vector<1x1x128xf32> to vector<1x128xf32>
      %21 = vector.broadcast %20 : vector<1x128xf32> to vector<32x128xf32>
      %22 = arith.addf %18, %21 : vector<32x128xf32>
      %c0_20 = arith.constant 0 : index
      %c0_21 = arith.constant 0 : index
      %c0_22 = arith.constant 0 : index
      %23 = vector.load %arg8[%c0_20, %c0_21, %c0_22] : memref<1x32x128xf32, #tpu.memory_space<vmem>>, vector<1x32x128xf32>
      %24 = vector.shape_cast %23 : vector<1x32x128xf32> to vector<32x128xf32>
      %25 = vector.shape_cast %22 : vector<32x128xf32> to vector<1x32x128xf32>
      tpu.vector_store %arg8[%c0_20, %c0_21, %c0_22], %25 {strides = array<i32>} : memref<1x32x128xf32, #tpu.memory_space<vmem>>, vector<1x32x128xf32>,
    } else {
    }
    return
  }
  func.func @transform_0(%arg0: i32, %arg1: i32, %arg2: i32, %arg3: i32) -> (i32, i32, i32) {
    %c0_i32 = arith.constant 0 : i32
    return %arg0, %arg1, %arg3 : i32, i32, i32
  }
  func.func @transform_1(%arg0: i32, %arg1: i32, %arg2: i32, %arg3: i32) -> (i32, i32, i32) {
    %c0_i32 = arith.constant 0 : i32
    return %arg0, %arg3, %arg2 : i32, i32, i32
  }
  func.func @transform_2(%arg0: i32, %arg1: i32, %arg2: i32, %arg3: i32) -> (i32, i32, i32) {
    %c0_i32 = arith.constant 0 : i32
    %c0_i32_0 = arith.constant 0 : i32
    return %arg0, %c0_i32, %arg2 : i32, i32, i32
  }
  func.func @transform_3(%arg0: i32, %arg1: i32, %arg2: i32, %arg3: i32) -> (i32, i32, i32) {
    %c0_i32 = arith.constant 0 : i32
    %c0_i32_0 = arith.constant 0 : i32
    return %arg0, %c0_i32, %arg2 : i32, i32, i32
  }
  func.func @transform_4(%arg0: i32, %arg1: i32, %arg2: i32, %arg3: i32) -> (i32, i32, i32) {
    %c0_i32 = arith.constant 0 : i32
    return %arg0, %arg1, %arg2 : i32, i32, i32
  }
}

module attributes {stable_mosaic.version = 11 : i64} {
  func.func @_mm_fused_kernel(%arg0: i32, %arg1: i32, %arg2: i32, %arg3: i32, %arg4: memref<1x128x128xbf16, #tpu.memory_space<vmem>>, %arg5: memref<1x128x128xbf16, #tpu.memory_space<vmem>>, %arg6: memref<1x1x128xf32, #tpu.memory_space<vmem>>, %arg7: memref<1x1x128xf32, #tpu.memory_space<vmem>>, %arg8: memref<1x128x128xf32, #tpu.memory_space<vmem>>, %arg9: memref<128x128xf32, #tpu.memory_space<vmem>>) attributes {dimension_semantics = [#tpu.dimension_semantics<parallel>, #tpu.dimension_semantics<parallel>, #tpu.dimension_semantics<parallel>, #tpu.dimension_semantics<arbitrary>], iteration_bounds = array<i64: 4, 1, 1, 1>, scalar_prefetch = 0 : i64, scratch_operands = 1 : i64, tpu.core_type = #tpu.core_type<tc>, window_params = [{transform_indices = @transform_0, window_bounds = array<i64: 1, 128, 128>}, {transform_indices = @transform_1, window_bounds = array<i64: 1, 128, 128>}, {transform_indices = @transform_2, window_bounds = array<i64: 1, 1, 128>}, {transform_indices = @transform_3, window_bounds = array<i64: 1, 1, 128>}, {transform_indices = @transform_4, window_bounds = array<i64: 1, 128, 128>}]} {
    %c0_i32 = arith.constant 0 : i32
    %0 = arith.cmpi eq, %arg3, %c0_i32 : i32
    %1 = arith.extui %0 : i1 to i32
    %c0_i32_0 = arith.constant 0 : i32
    %2 = arith.cmpi ne, %1, %c0_i32_0 : i32
    scf.if %2 {
      %cst_12 = arith.constant 0.000000e+00 : f32
      %14 = vector.broadcast %cst_12 : f32 to vector<128x128xf32>
      %c0_13 = arith.constant 0 : index
      %c0_14 = arith.constant 0 : index
      %15 = vector.load %arg9[%c0_13, %c0_14] : memref<128x128xf32, #tpu.memory_space<vmem>>, vector<128x128xf32>
      tpu.vector_store %arg9[%c0_13, %c0_14], %14 {strides = array<i32>} : memref<128x128xf32, #tpu.memory_space<vmem>>, vector<128x128xf32>,
    } else {
    }
    %c0 = arith.constant 0 : index
    %c0_1 = arith.constant 0 : index
    %3 = vector.load %arg9[%c0, %c0_1] : memref<128x128xf32, #tpu.memory_space<vmem>>, vector<128x128xf32>
    %c0_2 = arith.constant 0 : index
    %c0_3 = arith.constant 0 : index
    %c0_4 = arith.constant 0 : index
    %4 = vector.load %arg4[%c0_2, %c0_3, %c0_4] : memref<1x128x128xbf16, #tpu.memory_space<vmem>>, vector<1x128x128xbf16>
    %5 = vector.shape_cast %4 : vector<1x128x128xbf16> to vector<128x128xbf16>
    %c0_5 = arith.constant 0 : index
    %c0_6 = arith.constant 0 : index
    %c0_7 = arith.constant 0 : index
    %6 = vector.load %arg5[%c0_5, %c0_6, %c0_7] : memref<1x128x128xbf16, #tpu.memory_space<vmem>>, vector<1x128x128xbf16>
    %7 = vector.shape_cast %6 : vector<1x128x128xbf16> to vector<128x128xbf16>
    %cst = arith.constant dense<0.000000e+00> : vector<128x128xf32>
    %8 = tpu.matmul %5, %7, %cst {dimension_numbers = #tpu.dot_dimension_numbers<[1], [0], [0], [1], [0, 0, 1, 1], [], []>} : vector<128x128xbf16>, vector<128x128xbf16>, vector<128x128xf32> -> vector<128x128xf32>
    %9 = arith.addf %3, %8 : vector<128x128xf32>
    %c0_8 = arith.constant 0 : index
    %c0_9 = arith.constant 0 : index
    %10 = vector.load %arg9[%c0_8, %c0_9] : memref<128x128xf32, #tpu.memory_space<vmem>>, vector<128x128xf32>
    tpu.vector_store %arg9[%c0_8, %c0_9], %9 {strides = array<i32>} : memref<128x128xf32, #tpu.memory_space<vmem>>, vector<128x128xf32>,
    %c0_i32_10 = arith.constant 0 : i32
    %11 = arith.cmpi eq, %arg3, %c0_i32_10 : i32
    %12 = arith.extui %11 : i1 to i32
    %c0_i32_11 = arith.constant 0 : i32
    %13 = arith.cmpi ne, %12, %c0_i32_11 : i32
    scf.if %13 {
      %c0_12 = arith.constant 0 : index
      %c0_13 = arith.constant 0 : index
      %14 = vector.load %arg9[%c0_12, %c0_13] : memref<128x128xf32, #tpu.memory_space<vmem>>, vector<128x128xf32>
      %c0_14 = arith.constant 0 : index
      %c0_15 = arith.constant 0 : index
      %c0_16 = arith.constant 0 : index
      %15 = vector.load %arg6[%c0_14, %c0_15, %c0_16] : memref<1x1x128xf32, #tpu.memory_space<vmem>>, vector<1x1x128xf32>
      %16 = vector.shape_cast %15 : vector<1x1x128xf32> to vector<1x128xf32>
      %17 = vector.broadcast %16 : vector<1x128xf32> to vector<128x128xf32>
      %18 = arith.mulf %14, %17 : vector<128x128xf32>
      %c0_17 = arith.constant 0 : index
      %c0_18 = arith.constant 0 : index
      %c0_19 = arith.constant 0 : index
      %19 = vector.load %arg7[%c0_17, %c0_18, %c0_19] : memref<1x1x128xf32, #tpu.memory_space<vmem>>, vector<1x1x128xf32>
      %20 = vector.shape_cast %19 : vector<1x1x128xf32> to vector<1x128xf32>
      %21 = vector.broadcast %20 : vector<1x128xf32> to vector<128x128xf32>
      %22 = arith.addf %18, %21 : vector<128x128xf32>
      %c0_20 = arith.constant 0 : index
      %c0_21 = arith.constant 0 : index
      %c0_22 = arith.constant 0 : index
      %23 = vector.load %arg8[%c0_20, %c0_21, %c0_22] : memref<1x128x128xf32, #tpu.memory_space<vmem>>, vector<1x128x128xf32>
      %24 = vector.shape_cast %23 : vector<1x128x128xf32> to vector<128x128xf32>
      %25 = vector.shape_cast %22 : vector<128x128xf32> to vector<1x128x128xf32>
      tpu.vector_store %arg8[%c0_20, %c0_21, %c0_22], %25 {strides = array<i32>} : memref<1x128x128xf32, #tpu.memory_space<vmem>>, vector<1x128x128xf32>,
    } else {
    }
    return
  }
  func.func @transform_0(%arg0: i32, %arg1: i32, %arg2: i32, %arg3: i32) -> (i32, i32, i32) {
    %c0_i32 = arith.constant 0 : i32
    return %arg0, %arg1, %arg3 : i32, i32, i32
  }
  func.func @transform_1(%arg0: i32, %arg1: i32, %arg2: i32, %arg3: i32) -> (i32, i32, i32) {
    %c0_i32 = arith.constant 0 : i32
    return %arg0, %arg3, %arg2 : i32, i32, i32
  }
  func.func @transform_2(%arg0: i32, %arg1: i32, %arg2: i32, %arg3: i32) -> (i32, i32, i32) {
    %c0_i32 = arith.constant 0 : i32
    %c0_i32_0 = arith.constant 0 : i32
    return %arg0, %c0_i32, %arg2 : i32, i32, i32
  }
  func.func @transform_3(%arg0: i32, %arg1: i32, %arg2: i32, %arg3: i32) -> (i32, i32, i32) {
    %c0_i32 = arith.constant 0 : i32
    %c0_i32_0 = arith.constant 0 : i32
    return %arg0, %c0_i32, %arg2 : i32, i32, i32
  }
  func.func @transform_4(%arg0: i32, %arg1: i32, %arg2: i32, %arg3: i32) -> (i32, i32, i32) {
    %c0_i32 = arith.constant 0 : i32
    return %arg0, %arg1, %arg2 : i32, i32, i32
  }
}

module attributes {stable_mosaic.version = 11 : i64} {
  func.func @_mm_fused_kernel(%arg0: i32, %arg1: i32, %arg2: i32, %arg3: i32, %arg4: memref<1x256x128xbf16, #tpu.memory_space<vmem>>, %arg5: memref<1x128x128xbf16, #tpu.memory_space<vmem>>, %arg6: memref<1x1x128xf32, #tpu.memory_space<vmem>>, %arg7: memref<1x1x128xf32, #tpu.memory_space<vmem>>, %arg8: memref<1x256x128xf32, #tpu.memory_space<vmem>>, %arg9: memref<256x128xf32, #tpu.memory_space<vmem>>) attributes {dimension_semantics = [#tpu.dimension_semantics<parallel>, #tpu.dimension_semantics<parallel>, #tpu.dimension_semantics<parallel>, #tpu.dimension_semantics<arbitrary>], iteration_bounds = array<i64: 4, 2, 1, 1>, scalar_prefetch = 0 : i64, scratch_operands = 1 : i64, tpu.core_type = #tpu.core_type<tc>, window_params = [{transform_indices = @transform_0, window_bounds = array<i64: 1, 256, 128>}, {transform_indices = @transform_1, window_bounds = array<i64: 1, 128, 128>}, {transform_indices = @transform_2, window_bounds = array<i64: 1, 1, 128>}, {transform_indices = @transform_3, window_bounds = array<i64: 1, 1, 128>}, {transform_indices = @transform_4, window_bounds = array<i64: 1, 256, 128>}]} {
    %c0_i32 = arith.constant 0 : i32
    %0 = arith.cmpi eq, %arg3, %c0_i32 : i32
    %1 = arith.extui %0 : i1 to i32
    %c0_i32_0 = arith.constant 0 : i32
    %2 = arith.cmpi ne, %1, %c0_i32_0 : i32
    scf.if %2 {
      %cst_12 = arith.constant 0.000000e+00 : f32
      %14 = vector.broadcast %cst_12 : f32 to vector<256x128xf32>
      %c0_13 = arith.constant 0 : index
      %c0_14 = arith.constant 0 : index
      %15 = vector.load %arg9[%c0_13, %c0_14] : memref<256x128xf32, #tpu.memory_space<vmem>>, vector<256x128xf32>
      tpu.vector_store %arg9[%c0_13, %c0_14], %14 {strides = array<i32>} : memref<256x128xf32, #tpu.memory_space<vmem>>, vector<256x128xf32>,
    } else {
    }
    %c0 = arith.constant 0 : index
    %c0_1 = arith.constant 0 : index
    %3 = vector.load %arg9[%c0, %c0_1] : memref<256x128xf32, #tpu.memory_space<vmem>>, vector<256x128xf32>
    %c0_2 = arith.constant 0 : index
    %c0_3 = arith.constant 0 : index
    %c0_4 = arith.constant 0 : index
    %4 = vector.load %arg4[%c0_2, %c0_3, %c0_4] : memref<1x256x128xbf16, #tpu.memory_space<vmem>>, vector<1x256x128xbf16>
    %5 = vector.shape_cast %4 : vector<1x256x128xbf16> to vector<256x128xbf16>
    %c0_5 = arith.constant 0 : index
    %c0_6 = arith.constant 0 : index
    %c0_7 = arith.constant 0 : index
    %6 = vector.load %arg5[%c0_5, %c0_6, %c0_7] : memref<1x128x128xbf16, #tpu.memory_space<vmem>>, vector<1x128x128xbf16>
    %7 = vector.shape_cast %6 : vector<1x128x128xbf16> to vector<128x128xbf16>
    %cst = arith.constant dense<0.000000e+00> : vector<256x128xf32>
    %8 = tpu.matmul %5, %7, %cst {dimension_numbers = #tpu.dot_dimension_numbers<[1], [0], [0], [1], [0, 0, 1, 1], [], []>} : vector<256x128xbf16>, vector<128x128xbf16>, vector<256x128xf32> -> vector<256x128xf32>
    %9 = arith.addf %3, %8 : vector<256x128xf32>
    %c0_8 = arith.constant 0 : index
    %c0_9 = arith.constant 0 : index
    %10 = vector.load %arg9[%c0_8, %c0_9] : memref<256x128xf32, #tpu.memory_space<vmem>>, vector<256x128xf32>
    tpu.vector_store %arg9[%c0_8, %c0_9], %9 {strides = array<i32>} : memref<256x128xf32, #tpu.memory_space<vmem>>, vector<256x128xf32>,
    %c0_i32_10 = arith.constant 0 : i32
    %11 = arith.cmpi eq, %arg3, %c0_i32_10 : i32
    %12 = arith.extui %11 : i1 to i32
    %c0_i32_11 = arith.constant 0 : i32
    %13 = arith.cmpi ne, %12, %c0_i32_11 : i32
    scf.if %13 {
      %c0_12 = arith.constant 0 : index
      %c0_13 = arith.constant 0 : index
      %14 = vector.load %arg9[%c0_12, %c0_13] : memref<256x128xf32, #tpu.memory_space<vmem>>, vector<256x128xf32>
      %c0_14 = arith.constant 0 : index
      %c0_15 = arith.constant 0 : index
      %c0_16 = arith.constant 0 : index
      %15 = vector.load %arg6[%c0_14, %c0_15, %c0_16] : memref<1x1x128xf32, #tpu.memory_space<vmem>>, vector<1x1x128xf32>
      %16 = vector.shape_cast %15 : vector<1x1x128xf32> to vector<1x128xf32>
      %17 = vector.broadcast %16 : vector<1x128xf32> to vector<256x128xf32>
      %18 = arith.mulf %14, %17 : vector<256x128xf32>
      %c0_17 = arith.constant 0 : index
      %c0_18 = arith.constant 0 : index
      %c0_19 = arith.constant 0 : index
      %19 = vector.load %arg7[%c0_17, %c0_18, %c0_19] : memref<1x1x128xf32, #tpu.memory_space<vmem>>, vector<1x1x128xf32>
      %20 = vector.shape_cast %19 : vector<1x1x128xf32> to vector<1x128xf32>
      %21 = vector.broadcast %20 : vector<1x128xf32> to vector<256x128xf32>
      %22 = arith.addf %18, %21 : vector<256x128xf32>
      %23 = math.tanh %22 : vector<256x128xf32>
      %c0_20 = arith.constant 0 : index
      %c0_21 = arith.constant 0 : index
      %c0_22 = arith.constant 0 : index
      %24 = vector.load %arg8[%c0_20, %c0_21, %c0_22] : memref<1x256x128xf32, #tpu.memory_space<vmem>>, vector<1x256x128xf32>
      %25 = vector.shape_cast %24 : vector<1x256x128xf32> to vector<256x128xf32>
      %26 = vector.shape_cast %23 : vector<256x128xf32> to vector<1x256x128xf32>
      tpu.vector_store %arg8[%c0_20, %c0_21, %c0_22], %26 {strides = array<i32>} : memref<1x256x128xf32, #tpu.memory_space<vmem>>, vector<1x256x128xf32>,
    } else {
    }
    return
  }
  func.func @transform_0(%arg0: i32, %arg1: i32, %arg2: i32, %arg3: i32) -> (i32, i32, i32) {
    %c0_i32 = arith.constant 0 : i32
    return %arg0, %arg1, %arg3 : i32, i32, i32
  }
  func.func @transform_1(%arg0: i32, %arg1: i32, %arg2: i32, %arg3: i32) -> (i32, i32, i32) {
    %c0_i32 = arith.constant 0 : i32
    return %arg0, %arg3, %arg2 : i32, i32, i32
  }
  func.func @transform_2(%arg0: i32, %arg1: i32, %arg2: i32, %arg3: i32) -> (i32, i32, i32) {
    %c0_i32 = arith.constant 0 : i32
    %c0_i32_0 = arith.constant 0 : i32
    return %arg0, %c0_i32, %arg2 : i32, i32, i32
  }
  func.func @transform_3(%arg0: i32, %arg1: i32, %arg2: i32, %arg3: i32) -> (i32, i32, i32) {
    %c0_i32 = arith.constant 0 : i32
    %c0_i32_0 = arith.constant 0 : i32
    return %arg0, %c0_i32, %arg2 : i32, i32, i32
  }
  func.func @transform_4(%arg0: i32, %arg1: i32, %arg2: i32, %arg3: i32) -> (i32, i32, i32) {
    %c0_i32 = arith.constant 0 : i32
    return %arg0, %arg1, %arg2 : i32, i32, i32
  }
}

</mosaic_0001>

<bundles_post_ra>
// kernel: main_model_forward.10
= control target key start
LH: loop header
LB: loop body
LE: loop exit
PB: predicated region body
PF: predicated region fallthrough
CT: control target
= control target key end

     0   :  { %s1383_s15 = smov 0   ;;  %s1385_s16 = smov 0   ;;  %s1570_s0 = inlined_call_operand.vmem [shape: bf16[1,512,128], index: 0, kind: input, shape index: {}]   ;;  %s1571_s1 = inlined_call_operand.vmem [shape: bf16[1,128,128], index: 1, kind: input, shape index: {}]   ;;  %s1572_s2 = inlined_call_operand.vmem [shape: f32[1,1,128], index: 2, kind: input, shape index: {}]   ;;  %s1573_s3 = inlined_call_operand.vmem [shape: f32[1,1,128], index: 3, kind: input, shape index: {}]   ;;  %s1574_s4 = inlined_call_operand.vmem [shape: f32[1,512,128], index: 4, kind: output, shape index: {}]  }
   0x1   :  { %s1387_s17 = smov 0  }
   0x2 LB: > { %s36_s18 = sadd.s32 1, %s1352_s16  ;;  %p1165_p0 = scmp.ge.s32.totalorder %s1356_s17, 1  ;;  %s1356_s17 = sphi %s1387_s17, %s14_s17   ;;  %s1352_s16 = sphi %s1385_s16, %s1576_s16   ;;  %s1348_s15 = sphi %s1383_s15, %s1575_s15  }
   0x3   : > { %p38_p1 = scmp.ge.s32.totalorder %s36_s18, 2  ;;  %p252_p2 = scmp.lt.s32.totalorder %s1356_s17, 3 }
   0x5   : > { %s1578_s18 = smov (%p38_p1, %s36_s18), 0  ;;  %p253_p3 = pnand %p1165_p0, %p252_p2 }
   0x6   : > { %v1310_v0 = vld [vmem:[%s1571_s1] sm:$0xff] (!%p253_p3)   ;;  %s1166_s21 = sshll.u32 (!%p253_p3), %s1348_s15, 5  ;;  %v1311_v1 = vld [vmem:[%s1571_s1 + $0x8] sm:$0xff] (!%p253_p3)   ;;  %v1312_v2 = vld [vmem:[%s1571_s1 + $0x10] sm:$0xff] (!%p253_p3)  }
   0x7   : > { %256 = sbr.rel (%p253_p3) target bundleno = 283 (0x11b), region = 36  ;;  %p319_p4 = scmp.lt.s32.totalorder (!%p253_p3), %s1166_s21, 63  ;;  %1222 = vmatprep.subr.bf16.mxu0 (!%p253_p3), %v1310_v0  ;;  %1270 = vmatprep.subr.bf16.mxu1 (!%p253_p3), %v1310_v0  ;;  %v1313_v3 = vld [vmem:[%s1571_s1 + $0x18] sm:$0xff] (!%p253_p3)   ;;  %v1314_v6 = vld [vmem:[%s1571_s1 + $0x20] sm:$0xff] (!%p253_p3)   ;;  %v1315_v7 = vld [vmem:[%s1571_s1 + $0x28] sm:$0xff] (!%p253_p3)  }
   0x8   : > { %1223 = vmatpush3.bf16.msra.mxu0 (!%p253_p3), %v1310_v0  ;;  %1278 = vmatpush3.bf16.msra.mxu1 (!%p253_p3), %v1310_v0  ;;  %v1316_v8 = vld [vmem:[%s1571_s1 + $0x30] sm:$0xff] (!%p253_p3)   ;;  %v1317_v9 = vld [vmem:[%s1571_s1 + $0x38] sm:$0xff] (!%p253_p3)   ;;  %v1452_v24 = vld [vmem:[%s1572_s2] ss:$0 sm:$0xff] (!%p253_p3) }
   0x9   : > { %1224 = vmatprep.subr.bf16.mxu0 (!%p253_p3), %v1311_v1  ;;  %1271 = vmatprep.subr.bf16.mxu1 (!%p253_p3), %v1311_v1  ;;  %v1458_v26 = vld [vmem:[%s1573_s3] ss:$0 sm:$0xff] (!%p253_p3) }
   0xc   : > { %1225 = vmatpush3.bf16.msra.mxu0 (!%p253_p3), %v1311_v1  ;;  %1279 = vmatpush3.bf16.msra.mxu1 (!%p253_p3), %v1311_v1 }
   0xd   : > { %1226 = vmatprep.subr.bf16.mxu0 (!%p253_p3), %v1312_v2  ;;  %1272 = vmatprep.subr.bf16.mxu1 (!%p253_p3), %v1312_v2 }
   0xe   : > { %s1580_s21 = smov (!%p319_p4, %s1166_s21), 63 }
   0xf   : > { %s1167_s26 = sshll.u32 %s1580_s21, 2  ;;  %s1169_s19 = sshll.u32 %s1580_s21, 3 }
  0x10   : > { %s1416_s29 = scalar_lea.vmem %s1570_s0, %s1167_s26  ;;  %1227 = vmatpush3.bf16.msra.mxu0 %v1312_v2  ;;  %1280 = vmatpush3.bf16.msra.mxu1 %v1312_v2  ;;  %s1465_s25 = scalar_lea.vmem %s1574_s4, %s1169_s19 }
  0x11   : > { %v1318_v4 = vld [vmem:[%s1416_s29] sm:$0xff]   ;;  %1228 = vmatprep.subr.bf16.mxu0 %v1313_v3  ;;  %1273 = vmatprep.subr.bf16.mxu1 %v1313_v3  ;;  %v1320_v10 = vld [vmem:[%s1416_s29 + $0x8] sm:$0xff]   ;;  %v1322_v12 = vld [vmem:[%s1416_s29 + $0x10] sm:$0xff]  }
  0x12   : > { %v1319_v5 = vld [vmem:[%s1416_s29 + $0x40] sm:$0xff]   ;;  %1238 = vmatprep.mubr.bf16.mxu0 %v1318_v4  ;;  %v1321_v11 = vld [vmem:[%s1416_s29 + $0x48] sm:$0xff]   ;;  %v1323_v13 = vld [vmem:[%s1416_s29 + $0x50] sm:$0xff]  }
  0x13   : > { %1254 = vmatprep.mubr.bf16.mxu1 %v1319_v5  ;;  %v1324_v14 = vld [vmem:[%s1416_s29 + $0x18] sm:$0xff]   ;;  %v1326_v16 = vld [vmem:[%s1416_s29 + $0x20] sm:$0xff]   ;;  %v1328_v18 = vld [vmem:[%s1416_s29 + $0x28] sm:$0xff]  }
  0x14   : > { %1229 = vmatpush3.bf16.msra.mxu0 %v1313_v3  ;;  %1281 = vmatpush3.bf16.msra.mxu1 %v1313_v3  ;;  %v1325_v15 = vld [vmem:[%s1416_s29 + $0x58] sm:$0xff]   ;;  %v1327_v17 = vld [vmem:[%s1416_s29 + $0x60] sm:$0xff]   ;;  %v1329_v19 = vld [vmem:[%s1416_s29 + $0x68] sm:$0xff]  }
  0x15   : > { %1230 = vmatprep.subr.bf16.mxu0 %v1314_v6  ;;  %1274 = vmatprep.subr.bf16.mxu1 %v1314_v6  ;;  %v1330_v20 = vld [vmem:[%s1416_s29 + $0x30] sm:$0xff]   ;;  %v1332_v22 = vld [vmem:[%s1416_s29 + $0x38] sm:$0xff]  }
  0x16   : > { %v1331_v21 = vld [vmem:[%s1416_s29 + $0x70] sm:$0xff]   ;;  %v1333_v23 = vld [vmem:[%s1416_s29 + $0x78] sm:$0xff]  }
  0x18   : > { %1231 = vmatpush3.bf16.msra.mxu0 %v1314_v6  ;;  %1282 = vmatpush3.bf16.msra.mxu1 %v1314_v6 }
  0x19   : > { %1232 = vmatprep.subr.bf16.mxu0 %v1315_v7  ;;  %1275 = vmatprep.subr.bf16.mxu1 %v1315_v7 }
  0x1c   : > { %1233 = vmatpush3.bf16.msra.mxu0 %v1315_v7  ;;  %1283 = vmatpush3.bf16.msra.mxu1 %v1315_v7 }
  0x1d   : > { %1234 = vmatprep.subr.bf16.mxu0 %v1316_v8  ;;  %1276 = vmatprep.subr.bf16.mxu1 %v1316_v8 }
  0x20   : > { %1235 = vmatpush3.bf16.msra.mxu0 %v1316_v8  ;;  %1284 = vmatpush3.bf16.msra.mxu1 %v1316_v8 }
  0x21   : > { %1236 = vmatprep.subr.bf16.mxu0 %v1317_v9  ;;  %1277 = vmatprep.subr.bf16.mxu1 %v1317_v9 }
  0x24   : > { %1237 = vmatpush3.bf16.msra.mxu0 %v1317_v9  ;;  %1285 = vmatpush3.bf16.msra.mxu1 %v1317_v9 }
  0x27   : > { %1239 = vmatmul.mubr.bf16.vlgmr.msra.gmra.mrb[0].mxu0 %v1320_v10  ;;  %1255 = vmatmul.mubr.bf16.vlgmr.msra.gmra.mrb[0].mxu1 %v1321_v11 }
  0x28   : > { %1242 = vmatprep.mubr.bf16.mxu0 %v1322_v12  ;;  %1258 = vmatprep.mubr.bf16.mxu1 %v1323_v13 }
  0x2f   : > { %1243 = vmatmul.mubr.bf16.gmra.mrb[4].mxu0 %v1324_v14  ;;  %1259 = vmatmul.mubr.bf16.gmra.mrb[4].mxu1 %v1325_v15 }
  0x30   : > { %1246 = vmatprep.mubr.bf16.mxu0 %v1326_v16  ;;  %1262 = vmatprep.mubr.bf16.mxu1 %v1327_v17 }
  0x37   : > { %1247 = vmatmul.mubr.bf16.gmra.mrb[8].mxu0 %v1328_v18  ;;  %1263 = vmatmul.mubr.bf16.gmra.mrb[8].mxu1 %v1329_v19 }
  0x38   : > { %1250 = vmatprep.mubr.bf16.mxu0 %v1330_v20  ;;  %1266 = vmatprep.mubr.bf16.mxu1 %v1331_v21 }
  0x3f   : > { %1251 = vmatmul.mubr.bf16.gmra.mrb[12].mxu0 %v1332_v22  ;;  %1267 = vmatmul.mubr.bf16.gmra.mrb[12].mxu1 %v1333_v23 }
  0xfa   : > { %v1240_v25 = vpop.f32.mrb[0].mxu0  ;;  %v1256_v27 = vpop.f32.mrb[0].mxu1 }
  0xfb   : > { %v897_v28 = vmul.f32 %v1240_v25, %v1452_v24  ;;  %v913_v29 = vmul.f32 %v1256_v27, %v1452_v24  ;;  %v662_v30 = vpop.f32.mrb[1].mxu0  ;;  %v726_v31 = vpop.f32.mrb[1].mxu1 }
  0xfc   : > { %v895_v32 = vmul.f32 %v1452_v24, %v662_v30  ;;  %v911_v33 = vmul.f32 %v1452_v24, %v726_v31  ;;  %v1241_v34 = vpop.f32.mrb[2].mxu0  ;;  %v1257_v35 = vpop.f32.mrb[2].mxu1 }
  0xfd   : > { %v936_v36 = vadd.f32 %v1458_v26, %v897_v28  ;;  %v952_v37 = vadd.f32 %v1458_v26, %v913_v29  ;;  %v898_v38 = vmul.f32 %v1241_v34, %v1452_v24  ;;  %v914_v39 = vmul.f32 %v1257_v35, %v1452_v24  ;;  %v665_v40 = vpop.f32.mrb[3].mxu0  ;;  %v729_v41 = vpop.f32.mrb[3].mxu1 }
  0xfe   : > { %v934_v42 = vadd.f32 %v1458_v26, %v895_v32  ;;  %v950_v43 = vadd.f32 %v1458_v26, %v911_v33  ;;  %v896_v44 = vmul.f32 %v1452_v24, %v665_v40  ;;  %v912_v45 = vmul.f32 %v1452_v24, %v729_v41 }
  0xff   : > { %968 = vst [vmem:[%s1465_s25 + $0x10] sm:$0xff] %v936_v36  ;;  %984 = vst [vmem:[%s1465_s25 + $0x90] sm:$0xff] %v952_v37  ;;  %v937_v46 = vadd.f32 %v1458_v26, %v898_v38  ;;  %v953_v47 = vadd.f32 %v1458_v26, %v914_v39 }
 0x100   : > { %966 = vst [vmem:[%s1465_s25] sm:$0xff] %v934_v42  ;;  %982 = vst [vmem:[%s1465_s25 + $0x80] sm:$0xff] %v950_v43  ;;  %v935_v48 = vadd.f32 %v1458_v26, %v896_v44  ;;  %v951_v49 = vadd.f32 %v1458_v26, %v912_v45 }
 0x101   : > { %969 = vst [vmem:[%s1465_s25 + $0x18] sm:$0xff] %v937_v46  ;;  %985 = vst [vmem:[%s1465_s25 + $0x98] sm:$0xff] %v953_v47 }
 0x102   : > { %967 = vst [vmem:[%s1465_s25 + $0x8] sm:$0xff] %v935_v48  ;;  %983 = vst [vmem:[%s1465_s25 + $0x88] sm:$0xff] %v951_v49  ;;  %v1244_v50 = vpop.f32.mrb[4].mxu0  ;;  %v1260_v51 = vpop.f32.mrb[4].mxu1 }
 0x103   : > { %v901_v52 = vmul.f32 %v1244_v50, %v1452_v24  ;;  %v917_v53 = vmul.f32 %v1260_v51, %v1452_v24  ;;  %v678_v54 = vpop.f32.mrb[5].mxu0  ;;  %v742_v55 = vpop.f32.mrb[5].mxu1 }
 0x104   : > { %v899_v56 = vmul.f32 %v1452_v24, %v678_v54  ;;  %v915_v57 = vmul.f32 %v1452_v24, %v742_v55  ;;  %v1245_v58 = vpop.f32.mrb[6].mxu0  ;;  %v1261_v59 = vpop.f32.mrb[6].mxu1 }
 0x105   : > { %v940_v60 = vadd.f32 %v1458_v26, %v901_v52  ;;  %v956_v61 = vadd.f32 %v1458_v26, %v917_v53  ;;  %v902_v62 = vmul.f32 %v1245_v58, %v1452_v24  ;;  %v918_v63 = vmul.f32 %v1261_v59, %v1452_v24  ;;  %v681_v0 = vpop.f32.mrb[7].mxu0  ;;  %v745_v1 = vpop.f32.mrb[7].mxu1 }
 0x106   : > { %v938_v2 = vadd.f32 %v1458_v26, %v899_v56  ;;  %v954_v3 = vadd.f32 %v1458_v26, %v915_v57  ;;  %v900_v4 = vmul.f32 %v1452_v24, %v681_v0  ;;  %v916_v5 = vmul.f32 %v1452_v24, %v745_v1 }
 0x107   : > { %972 = vst [vmem:[%s1465_s25 + $0x30] sm:$0xff] %v940_v60  ;;  %988 = vst [vmem:[%s1465_s25 + $0xb0] sm:$0xff] %v956_v61  ;;  %v941_v6 = vadd.f32 %v1458_v26, %v902_v62  ;;  %v957_v7 = vadd.f32 %v1458_v26, %v918_v63 }
 0x108   : > { %970 = vst [vmem:[%s1465_s25 + $0x20] sm:$0xff] %v938_v2  ;;  %986 = vst [vmem:[%s1465_s25 + $0xa0] sm:$0xff] %v954_v3  ;;  %v939_v8 = vadd.f32 %v1458_v26, %v900_v4  ;;  %v955_v9 = vadd.f32 %v1458_v26, %v916_v5 }
 0x109   : > { %973 = vst [vmem:[%s1465_s25 + $0x38] sm:$0xff] %v941_v6  ;;  %989 = vst [vmem:[%s1465_s25 + $0xb8] sm:$0xff] %v957_v7 }
 0x10a   : > { %971 = vst [vmem:[%s1465_s25 + $0x28] sm:$0xff] %v939_v8  ;;  %987 = vst [vmem:[%s1465_s25 + $0xa8] sm:$0xff] %v955_v9  ;;  %v1248_v10 = vpop.f32.mrb[8].mxu0  ;;  %v1264_v11 = vpop.f32.mrb[8].mxu1 }
 0x10b   : > { %v905_v12 = vmul.f32 %v1248_v10, %v1452_v24  ;;  %v921_v13 = vmul.f32 %v1264_v11, %v1452_v24  ;;  %v694_v14 = vpop.f32.mrb[9].mxu0  ;;  %v758_v15 = vpop.f32.mrb[9].mxu1 }
 0x10c   : > { %v903_v16 = vmul.f32 %v1452_v24, %v694_v14  ;;  %v919_v17 = vmul.f32 %v1452_v24, %v758_v15  ;;  %v1249_v18 = vpop.f32.mrb[10].mxu0  ;;  %v1265_v19 = vpop.f32.mrb[10].mxu1 }
 0x10d   : > { %v944_v20 = vadd.f32 %v1458_v26, %v905_v12  ;;  %v960_v21 = vadd.f32 %v1458_v26, %v921_v13  ;;  %v906_v22 = vmul.f32 %v1249_v18, %v1452_v24  ;;  %v922_v23 = vmul.f32 %v1265_v19, %v1452_v24  ;;  %v697_v25 = vpop.f32.mrb[11].mxu0  ;;  %v761_v27 = vpop.f32.mrb[11].mxu1 }
 0x10e   : > { %v942_v28 = vadd.f32 %v1458_v26, %v903_v16  ;;  %v958_v29 = vadd.f32 %v1458_v26, %v919_v17  ;;  %v904_v30 = vmul.f32 %v1452_v24, %v697_v25  ;;  %v920_v31 = vmul.f32 %v1452_v24, %v761_v27 }
 0x10f   : > { %976 = vst [vmem:[%s1465_s25 + $0x50] sm:$0xff] %v944_v20  ;;  %992 = vst [vmem:[%s1465_s25 + $0xd0] sm:$0xff] %v960_v21  ;;  %v945_v32 = vadd.f32 %v1458_v26, %v906_v22  ;;  %v961_v33 = vadd.f32 %v1458_v26, %v922_v23 }
 0x110   : > { %974 = vst [vmem:[%s1465_s25 + $0x40] sm:$0xff] %v942_v28  ;;  %990 = vst [vmem:[%s1465_s25 + $0xc0] sm:$0xff] %v958_v29  ;;  %v943_v34 = vadd.f32 %v1458_v26, %v904_v30  ;;  %v959_v35 = vadd.f32 %v1458_v26, %v920_v31 }
 0x111   : > { %977 = vst [vmem:[%s1465_s25 + $0x58] sm:$0xff] %v945_v32  ;;  %993 = vst [vmem:[%s1465_s25 + $0xd8] sm:$0xff] %v961_v33 }
 0x112   : > { %975 = vst [vmem:[%s1465_s25 + $0x48] sm:$0xff] %v943_v34  ;;  %991 = vst [vmem:[%s1465_s25 + $0xc8] sm:$0xff] %v959_v35  ;;  %v1252_v36 = vpop.f32.mrb[12].mxu0  ;;  %v1268_v37 = vpop.f32.mrb[12].mxu1 }
 0x113   : > { %v909_v38 = vmul.f32 %v1252_v36, %v1452_v24  ;;  %v925_v39 = vmul.f32 %v1268_v37, %v1452_v24  ;;  %v710_v40 = vpop.f32.mrb[13].mxu0  ;;  %v774_v41 = vpop.f32.mrb[13].mxu1 }
 0x114   : > { %v907_v42 = vmul.f32 %v1452_v24, %v710_v40  ;;  %v923_v43 = vmul.f32 %v1452_v24, %v774_v41  ;;  %v1253_v44 = vpop.f32.mrb[14].mxu0  ;;  %v1269_v45 = vpop.f32.mrb[14].mxu1 }
 0x115   : > { %v948_v46 = vadd.f32 %v1458_v26, %v909_v38  ;;  %v964_v47 = vadd.f32 %v1458_v26, %v925_v39  ;;  %v910_v48 = vmul.f32 %v1253_v44, %v1452_v24  ;;  %v926_v49 = vmul.f32 %v1269_v45, %v1452_v24  ;;  %v713_v50 = vpop.f32.mrb[15].mxu0  ;;  %v777_v51 = vpop.f32.mrb[15].mxu1 }
 0x116   : > { %v946_v52 = vadd.f32 %v1458_v26, %v907_v42  ;;  %v962_v53 = vadd.f32 %v1458_v26, %v923_v43  ;;  %v908_v54 = vmul.f32 %v1452_v24, %v713_v50  ;;  %v924_v55 = vmul.f32 %v1452_v24, %v777_v51 }
 0x117   : > { %980 = vst [vmem:[%s1465_s25 + $0x70] sm:$0xff] %v948_v46  ;;  %996 = vst [vmem:[%s1465_s25 + $0xf0] sm:$0xff] %v964_v47  ;;  %v949_v56 = vadd.f32 %v1458_v26, %v910_v48  ;;  %v965_v57 = vadd.f32 %v1458_v26, %v926_v49 }
 0x118   : > { %978 = vst [vmem:[%s1465_s25 + $0x60] sm:$0xff] %v946_v52  ;;  %994 = vst [vmem:[%s1465_s25 + $0xe0] sm:$0xff] %v962_v53  ;;  %v947_v58 = vadd.f32 %v1458_v26, %v908_v54  ;;  %v963_v59 = vadd.f32 %v1458_v26, %v924_v55 }
 0x119   : > { %981 = vst [vmem:[%s1465_s25 + $0x78] sm:$0xff] %v949_v56  ;;  %997 = vst [vmem:[%s1465_s25 + $0xf8] sm:$0xff] %v965_v57 }
 0x11a   : > { %979 = vst [vmem:[%s1465_s25 + $0x68] sm:$0xff] %v947_v58  ;;  %995 = vst [vmem:[%s1465_s25 + $0xe8] sm:$0xff] %v963_v59 }
 0x11b PF: > { %s14_s17 = sadd.s32 1, %s1356_s17   ;;  %s1575_s15 = smov %s1352_s16 }
 0x11c   : > { %p11_p5 = scmp.ge.s32.totalorder %s14_s17, 4   ;;  %s1576_s16 = smov %s1578_s18 }
 0x11e   :  { %13 = sbr.rel (!%p11_p5) target bundleno = 2 (0x2), region = 83 }

// kernel: main_model_forward.11
= control target key start
LH: loop header
LB: loop body
LE: loop exit
PB: predicated region body
PF: predicated region fallthrough
CT: control target
= control target key end

     0   :  { %s621_s1 = inlined_call_operand.vmem [shape: bf16[1,128,128], index: 1, kind: input, shape index: {}]   ;;  %s622_s0 = inlined_call_operand.vmem [shape: bf16[1,128,128], index: 0, kind: input, shape index: {}]   ;;  %s623_s2 = inlined_call_operand.vmem [shape: f32[1,1,128], index: 2, kind: input, shape index: {}]   ;;  %s624_s3 = inlined_call_operand.vmem [shape: f32[1,1,128], index: 3, kind: input, shape index: {}]   ;;  %s625_s4 = inlined_call_operand.vmem [shape: f32[1,128,128], index: 4, kind: output, shape index: {}]  }
   0x1   :  { %v478_v0 = vld [vmem:[%s621_s1] sm:$0xff]   ;;  %v479_v1 = vld [vmem:[%s621_s1 + $0x8] sm:$0xff]   ;;  %v480_v2 = vld [vmem:[%s621_s1 + $0x10] sm:$0xff]  }
   0x2   :  { %430 = vmatprep.subr.bf16.mxu0 %v478_v0  ;;  %462 = vmatprep.subr.bf16.mxu1 %v478_v0  ;;  %v481_v3 = vld [vmem:[%s621_s1 + $0x18] sm:$0xff]   ;;  %v486_v4 = vld [vmem:[%s622_s0] sm:$0xff]   ;;  %v483_v7 = vld [vmem:[%s621_s1 + $0x28] sm:$0xff]  }
   0x3   :  { %431 = vmatpush3.bf16.msra.mxu0 %v478_v0  ;;  %470 = vmatpush3.bf16.msra.mxu1 %v478_v0  ;;  %v487_v5 = vld [vmem:[%s622_s0 + $0x20] sm:$0xff]   ;;  %v484_v8 = vld [vmem:[%s621_s1 + $0x30] sm:$0xff]   ;;  %v485_v9 = vld [vmem:[%s621_s1 + $0x38] sm:$0xff]  }
   0x4   :  { %432 = vmatprep.subr.bf16.mxu0 %v479_v1  ;;  %463 = vmatprep.subr.bf16.mxu1 %v479_v1  ;;  %v482_v6 = vld [vmem:[%s621_s1 + $0x20] sm:$0xff]   ;;  %v488_v10 = vld [vmem:[%s622_s0 + $0x8] sm:$0xff]   ;;  %v490_v12 = vld [vmem:[%s622_s0 + $0x10] sm:$0xff]  }
   0x5   :  { %446 = vmatprep.mubr.bf16.mxu0 %v486_v4  ;;  %454 = vmatprep.mubr.bf16.mxu1 %v487_v5  ;;  %v489_v11 = vld [vmem:[%s622_s0 + $0x28] sm:$0xff]   ;;  %v491_v13 = vld [vmem:[%s622_s0 + $0x30] sm:$0xff]   ;;  %v492_v14 = vld [vmem:[%s622_s0 + $0x18] sm:$0xff]  }
   0x6   :  { %v493_v15 = vld [vmem:[%s622_s0 + $0x38] sm:$0xff]   ;;  %v412_v16 = vld [vmem:[%s623_s2] ss:$0 sm:$0xff] }
   0x7   :  { %433 = vmatpush3.bf16.msra.mxu0 %v479_v1  ;;  %471 = vmatpush3.bf16.msra.mxu1 %v479_v1  ;;  %v413_v18 = vld [vmem:[%s624_s3] ss:$0 sm:$0xff] }
   0x8   :  { %434 = vmatprep.subr.bf16.mxu0 %v480_v2  ;;  %464 = vmatprep.subr.bf16.mxu1 %v480_v2 }
   0xb   :  { %435 = vmatpush3.bf16.msra.mxu0 %v480_v2  ;;  %472 = vmatpush3.bf16.msra.mxu1 %v480_v2 }
   0xc   :  { %436 = vmatprep.subr.bf16.mxu0 %v481_v3  ;;  %465 = vmatprep.subr.bf16.mxu1 %v481_v3 }
   0xf   :  { %437 = vmatpush3.bf16.msra.mxu0 %v481_v3  ;;  %473 = vmatpush3.bf16.msra.mxu1 %v481_v3 }
  0x10   :  { %438 = vmatprep.subr.bf16.mxu0 %v482_v6  ;;  %466 = vmatprep.subr.bf16.mxu1 %v482_v6 }
  0x13   :  { %439 = vmatpush3.bf16.msra.mxu0 %v482_v6  ;;  %474 = vmatpush3.bf16.msra.mxu1 %v482_v6 }
  0x14   :  { %440 = vmatprep.subr.bf16.mxu0 %v483_v7  ;;  %467 = vmatprep.subr.bf16.mxu1 %v483_v7 }
  0x17   :  { %441 = vmatpush3.bf16.msra.mxu0 %v483_v7  ;;  %475 = vmatpush3.bf16.msra.mxu1 %v483_v7 }
  0x18   :  { %442 = vmatprep.subr.bf16.mxu0 %v484_v8  ;;  %468 = vmatprep.subr.bf16.mxu1 %v484_v8 }
  0x1b   :  { %443 = vmatpush3.bf16.msra.mxu0 %v484_v8  ;;  %476 = vmatpush3.bf16.msra.mxu1 %v484_v8 }
  0x1c   :  { %444 = vmatprep.subr.bf16.mxu0 %v485_v9  ;;  %469 = vmatprep.subr.bf16.mxu1 %v485_v9 }
  0x1f   :  { %445 = vmatpush3.bf16.msra.mxu0 %v485_v9  ;;  %477 = vmatpush3.bf16.msra.mxu1 %v485_v9 }
  0x22   :  { %447 = vmatmul.mubr.bf16.vlgmr.msra.gmra.mrb[0].mxu0 %v488_v10  ;;  %455 = vmatmul.mubr.bf16.vlgmr.msra.gmra.mrb[0].mxu1 %v489_v11 }
  0x23   :  { %450 = vmatprep.mubr.bf16.mxu0 %v490_v12  ;;  %458 = vmatprep.mubr.bf16.mxu1 %v491_v13 }
  0x2a   :  { %451 = vmatmul.mubr.bf16.gmra.mrb[4].mxu0 %v492_v14  ;;  %459 = vmatmul.mubr.bf16.gmra.mrb[4].mxu1 %v493_v15 }
  0xf5   :  { %v448_v17 = vpop.f32.mrb[0].mxu0  ;;  %v456_v19 = vpop.f32.mrb[0].mxu1 }
  0xf6   :  { %v339_v20 = vmul.f32 %v448_v17, %v412_v16  ;;  %v347_v21 = vmul.f32 %v456_v19, %v412_v16  ;;  %v216_v22 = vpop.f32.mrb[1].mxu0  ;;  %v248_v23 = vpop.f32.mrb[1].mxu1 }
  0xf7   :  { %v337_v24 = vmul.f32 %v412_v16, %v216_v22  ;;  %v345_v25 = vmul.f32 %v412_v16, %v248_v23  ;;  %v449_v26 = vpop.f32.mrb[2].mxu0  ;;  %v457_v27 = vpop.f32.mrb[2].mxu1 }
  0xf8   :  { %v362_v28 = vadd.f32 %v413_v18, %v339_v20  ;;  %v370_v29 = vadd.f32 %v413_v18, %v347_v21  ;;  %v340_v30 = vmul.f32 %v449_v26, %v412_v16  ;;  %v348_v31 = vmul.f32 %v457_v27, %v412_v16  ;;  %v219_v32 = vpop.f32.mrb[3].mxu0  ;;  %v251_v33 = vpop.f32.mrb[3].mxu1 }
  0xf9   :  { %v360_v34 = vadd.f32 %v413_v18, %v337_v24  ;;  %v368_v35 = vadd.f32 %v413_v18, %v345_v25  ;;  %v338_v36 = vmul.f32 %v412_v16, %v219_v32  ;;  %v346_v37 = vmul.f32 %v412_v16, %v251_v33 }
  0xfa   :  { %378 = vst [vmem:[%s625_s4 + $0x10] sm:$0xff] %v362_v28  ;;  %386 = vst [vmem:[%s625_s4 + $0x50] sm:$0xff] %v370_v29  ;;  %v363_v38 = vadd.f32 %v413_v18, %v340_v30  ;;  %v371_v39 = vadd.f32 %v413_v18, %v348_v31 }
  0xfb   :  { %376 = vst [vmem:[%s625_s4] sm:$0xff] %v360_v34  ;;  %384 = vst [vmem:[%s625_s4 + $0x40] sm:$0xff] %v368_v35  ;;  %v361_v40 = vadd.f32 %v413_v18, %v338_v36  ;;  %v369_v41 = vadd.f32 %v413_v18, %v346_v37 }
  0xfc   :  { %379 = vst [vmem:[%s625_s4 + $0x18] sm:$0xff] %v363_v38  ;;  %387 = vst [vmem:[%s625_s4 + $0x58] sm:$0xff] %v371_v39 }
  0xfd   :  { %377 = vst [vmem:[%s625_s4 + $0x8] sm:$0xff] %v361_v40  ;;  %385 = vst [vmem:[%s625_s4 + $0x48] sm:$0xff] %v369_v41  ;;  %v452_v42 = vpop.f32.mrb[4].mxu0  ;;  %v460_v43 = vpop.f32.mrb[4].mxu1 }
  0xfe   :  { %v343_v44 = vmul.f32 %v452_v42, %v412_v16  ;;  %v351_v45 = vmul.f32 %v460_v43, %v412_v16  ;;  %v232_v46 = vpop.f32.mrb[5].mxu0  ;;  %v264_v47 = vpop.f32.mrb[5].mxu1 }
  0xff   :  { %v341_v48 = vmul.f32 %v412_v16, %v232_v46  ;;  %v349_v49 = vmul.f32 %v412_v16, %v264_v47  ;;  %v453_v50 = vpop.f32.mrb[6].mxu0  ;;  %v461_v51 = vpop.f32.mrb[6].mxu1 }
 0x100   :  { %v366_v52 = vadd.f32 %v413_v18, %v343_v44  ;;  %v374_v53 = vadd.f32 %v413_v18, %v351_v45  ;;  %v344_v54 = vmul.f32 %v453_v50, %v412_v16  ;;  %v352_v55 = vmul.f32 %v461_v51, %v412_v16  ;;  %v235_v56 = vpop.f32.mrb[7].mxu0  ;;  %v267_v57 = vpop.f32.mrb[7].mxu1 }
 0x101   :  { %v364_v58 = vadd.f32 %v413_v18, %v341_v48  ;;  %v372_v59 = vadd.f32 %v413_v18, %v349_v49  ;;  %v342_v60 = vmul.f32 %v412_v16, %v235_v56  ;;  %v350_v61 = vmul.f32 %v412_v16, %v267_v57 }
 0x102   :  { %382 = vst [vmem:[%s625_s4 + $0x30] sm:$0xff] %v366_v52  ;;  %390 = vst [vmem:[%s625_s4 + $0x70] sm:$0xff] %v374_v53  ;;  %v367_v62 = vadd.f32 %v413_v18, %v344_v54  ;;  %v375_v63 = vadd.f32 %v413_v18, %v352_v55 }
 0x103   :  { %380 = vst [vmem:[%s625_s4 + $0x20] sm:$0xff] %v364_v58  ;;  %388 = vst [vmem:[%s625_s4 + $0x60] sm:$0xff] %v372_v59  ;;  %v365_v0 = vadd.f32 %v413_v18, %v342_v60  ;;  %v373_v1 = vadd.f32 %v413_v18, %v350_v61 }
 0x104   :  { %383 = vst [vmem:[%s625_s4 + $0x38] sm:$0xff] %v367_v62  ;;  %391 = vst [vmem:[%s625_s4 + $0x78] sm:$0xff] %v375_v63 }
 0x105   :  { %381 = vst [vmem:[%s625_s4 + $0x28] sm:$0xff] %v365_v0  ;;  %389 = vst [vmem:[%s625_s4 + $0x68] sm:$0xff] %v373_v1 }

// kernel: main_model_forward.12
= control target key start
LH: loop header
LB: loop body
LE: loop exit
PB: predicated region body
PF: predicated region fallthrough
CT: control target
= control target key end

     0   :  { %s467_s1 = inlined_call_operand.vmem [shape: bf16[1,256,128], index: 1, kind: input, shape index: {}]   ;;  %s468_s0 = inlined_call_operand.vmem [shape: bf16[1,32,256], index: 0, kind: input, shape index: {}]   ;;  %s469_s2 = inlined_call_operand.vmem [shape: f32[1,1,128], index: 2, kind: input, shape index: {}]   ;;  %s470_s3 = inlined_call_operand.vmem [shape: f32[1,1,128], index: 3, kind: input, shape index: {}]   ;;  %s471_s4 = inlined_call_operand.vmem [shape: f32[1,32,128], index: 4, kind: output, shape index: {}]  }
   0x1   :  { %v342_v0 = vld [vmem:[%s467_s1 + $0x40] sm:$0xff]   ;;  %v344_v2 = vld [vmem:[%s467_s1 + $0x48] sm:$0xff]   ;;  %v346_v4 = vld [vmem:[%s467_s1 + $0x50] sm:$0xff]  }
   0x2   :  { %v343_v1 = vld [vmem:[%s467_s1] sm:$0xff]   ;;  %298 = vmatprep.subr.bf16.mxu0 %v342_v0  ;;  %326 = vmatprep.subr.bf16.mxu1 %v342_v0  ;;  %v345_v3 = vld [vmem:[%s467_s1 + $0x8] sm:$0xff]   ;;  %v347_v5 = vld [vmem:[%s467_s1 + $0x10] sm:$0xff]  }
   0x3   :  { %299 = vmatpush3.bf16.msra.mxu0 %v343_v1  ;;  %334 = vmatpush3.bf16.msra.mxu1 %v343_v1  ;;  %v348_v6 = vld [vmem:[%s467_s1 + $0x58] sm:$0xff]   ;;  %v350_v8 = vld [vmem:[%s467_s1 + $0x60] sm:$0xff]   ;;  %v352_v10 = vld [vmem:[%s467_s1 + $0x68] sm:$0xff]  }
   0x4   :  { %300 = vmatprep.subr.bf16.mxu0 %v344_v2  ;;  %327 = vmatprep.subr.bf16.mxu1 %v344_v2  ;;  %v349_v7 = vld [vmem:[%s467_s1 + $0x18] sm:$0xff]   ;;  %v351_v9 = vld [vmem:[%s467_s1 + $0x20] sm:$0xff]   ;;  %v353_v13 = vld [vmem:[%s467_s1 + $0x28] sm:$0xff]  }
   0x5   :  { %v360_v11 = vld [vmem:[%s468_s0 + $0x4] ss:$8 sps:$4 sm:$0xff]   ;;  %v363_v12 = vld [vmem:[%s468_s0 + $0x14] ss:$8 sps:$4 sm:$0xff]   ;;  %v358_v18 = vld [vmem:[%s468_s0] ss:$8 sps:$4 sm:$0xff]  }
   0x6   :  { %v354_v14 = vld [vmem:[%s467_s1 + $0x70] sm:$0xff]   ;;  %214 = vmatprep.mubr.bf16.mxu0 %v360_v11  ;;  %222 = vmatprep.mubr.bf16.mxu1 %v363_v12  ;;  %v356_v16 = vld [vmem:[%s467_s1 + $0x78] sm:$0xff]   ;;  %v296_v23 = vld [vmem:[%s469_s2] ss:$0 sm:$0xff] }
   0x7   :  { %301 = vmatpush3.bf16.msra.mxu0 %v345_v3  ;;  %335 = vmatpush3.bf16.msra.mxu1 %v345_v3  ;;  %v355_v15 = vld [vmem:[%s467_s1 + $0x30] sm:$0xff]   ;;  %v357_v17 = vld [vmem:[%s467_s1 + $0x38] sm:$0xff]   ;;  %v297_v29 = vld [vmem:[%s470_s3] ss:$0 sm:$0xff] }
   0x8   :  { %302 = vmatprep.subr.bf16.mxu0 %v346_v4  ;;  %328 = vmatprep.subr.bf16.mxu1 %v346_v4  ;;  %v361_v19 = vld [vmem:[%s468_s0 + $0x10] ss:$8 sps:$4 sm:$0xff]  }
   0xb   :  { %303 = vmatpush3.bf16.msra.mxu0 %v347_v5  ;;  %336 = vmatpush3.bf16.msra.mxu1 %v347_v5 }
   0xc   :  { %304 = vmatprep.subr.bf16.mxu0 %v348_v6  ;;  %329 = vmatprep.subr.bf16.mxu1 %v348_v6 }
   0xf   :  { %305 = vmatpush3.bf16.msra.mxu0 %v349_v7  ;;  %337 = vmatpush3.bf16.msra.mxu1 %v349_v7 }
  0x10   :  { %306 = vmatprep.subr.bf16.mxu0 %v350_v8  ;;  %330 = vmatprep.subr.bf16.mxu1 %v350_v8 }
  0x13   :  { %307 = vmatpush3.bf16.msra.mxu0 %v351_v9  ;;  %338 = vmatpush3.bf16.msra.mxu1 %v351_v9 }
  0x14   :  { %308 = vmatprep.subr.bf16.mxu0 %v352_v10  ;;  %331 = vmatprep.subr.bf16.mxu1 %v352_v10 }
  0x17   :  { %309 = vmatpush3.bf16.msra.mxu0 %v353_v13  ;;  %339 = vmatpush3.bf16.msra.mxu1 %v353_v13 }
  0x18   :  { %310 = vmatprep.subr.bf16.mxu0 %v354_v14  ;;  %332 = vmatprep.subr.bf16.mxu1 %v354_v14 }
  0x1b   :  { %311 = vmatpush3.bf16.msra.mxu0 %v355_v15  ;;  %340 = vmatpush3.bf16.msra.mxu1 %v355_v15 }
  0x1c   :  { %312 = vmatprep.subr.bf16.mxu0 %v356_v16  ;;  %333 = vmatprep.subr.bf16.mxu1 %v356_v16 }
  0x1f   :  { %313 = vmatpush3.bf16.msra.mxu0 %v357_v17  ;;  %341 = vmatpush3.bf16.msra.mxu1 %v357_v17 }
  0x22   :  { %215 = vmatmul.mubr.bf16.vlgmr.msra.gmra.mrb[0].mxu0 %v358_v18  ;;  %223 = vmatmul.mubr.bf16.vlgmr.msra.gmra.mrb[0].mxu1 %v361_v19 }
  0xf5   :  { %v314_v20 = vpop.f32.mrb[0].mxu0  ;;  %v320_v21 = vpop.f32.mrb[0].mxu1 }
  0xf6   :  { %v315_v22 = vpop.f32.mrb[1].mxu0  ;;  %v321_v24 = vpop.f32.mrb[1].mxu1 }
  0xf7   :  { %v316_v25 = vadd.f32 %v315_v22, %v314_v20  ;;  %v322_v26 = vadd.f32 %v321_v24, %v320_v21  ;;  %v317_v27 = vpop.f32.mrb[2].mxu0  ;;  %v323_v28 = vpop.f32.mrb[2].mxu1 }
  0xf8   :  { %v318_v30 = vpop.f32.mrb[3].mxu0  ;;  %v324_v31 = vpop.f32.mrb[3].mxu1 }
  0xf9   :  { %v253_v32 = vmul.f32 %v316_v25, %v296_v23  ;;  %v255_v33 = vmul.f32 %v322_v26, %v296_v23  ;;  %v319_v34 = vadd.f32 %v318_v30, %v317_v27  ;;  %v325_v35 = vadd.f32 %v324_v31, %v323_v28 }
  0xfb   :  { %v264_v36 = vadd.f32 %v297_v29, %v253_v32  ;;  %v266_v37 = vadd.f32 %v297_v29, %v255_v33  ;;  %v254_v38 = vmul.f32 %v319_v34, %v296_v23  ;;  %v256_v39 = vmul.f32 %v325_v35, %v296_v23 }
  0xfd   :  { %268 = vst [vmem:[%s471_s4] sm:$0xff] %v264_v36  ;;  %270 = vst [vmem:[%s471_s4 + $0x10] sm:$0xff] %v266_v37  ;;  %v265_v40 = vadd.f32 %v297_v29, %v254_v38  ;;  %v267_v41 = vadd.f32 %v297_v29, %v256_v39 }
  0xff   :  { %269 = vst [vmem:[%s471_s4 + $0x8] sm:$0xff] %v265_v40  ;;  %271 = vst [vmem:[%s471_s4 + $0x18] sm:$0xff] %v267_v41 }

// kernel: main_model_forward.13
= control target key start
LH: loop header
LB: loop body
LE: loop exit
PB: predicated region body
PF: predicated region fallthrough
CT: control target
= control target key end

     0   :  { %s686_s1 = inlined_call_operand.vmem [shape: bf16[1,512,128], index: 1, kind: input, shape index: {}]   ;;  %s687_s0 = inlined_call_operand.vmem [shape: bf16[1,16,512], index: 0, kind: input, shape index: {}]   ;;  %s688_s2 = inlined_call_operand.vmem [shape: f32[1,1,128], index: 2, kind: input, shape index: {}]   ;;  %s689_s3 = inlined_call_operand.vmem [shape: f32[1,1,128], index: 3, kind: input, shape index: {}]   ;;  %s690_s4 = inlined_call_operand.vmem [shape: f32[1,16,128], index: 4, kind: output, shape index: {}]  }
   0x1   :  { %v503_v0 = vld [vmem:[%s686_s1 + $0x40] sm:$0xff]   ;;  %v507_v4 = vld [vmem:[%s686_s1 + $0x48] sm:$0xff]   ;;  %v511_v8 = vld [vmem:[%s686_s1 + $0x50] sm:$0xff]  }
   0x2   :  { %v504_v1 = vld [vmem:[%s686_s1 + $0xc0] sm:$0xff]   ;;  %459 = vmatprep.subr.bf16.mxu0 %v503_v0  ;;  %v508_v5 = vld [vmem:[%s686_s1 + $0xc8] sm:$0xff]   ;;  %v512_v9 = vld [vmem:[%s686_s1 + $0xd0] sm:$0xff]  }
   0x3   :  { %v505_v2 = vld [vmem:[%s686_s1] sm:$0xff]   ;;  %481 = vmatprep.subr.bf16.mxu1 %v504_v1  ;;  %v509_v6 = vld [vmem:[%s686_s1 + $0x8] sm:$0xff]   ;;  %v513_v10 = vld [vmem:[%s686_s1 + $0x10] sm:$0xff]  }
   0x4   :  { %v506_v3 = vld [vmem:[%s686_s1 + $0x80] sm:$0xff]   ;;  %460 = vmatpush3.bf16.msra.mxu0 %v505_v2  ;;  %v510_v7 = vld [vmem:[%s686_s1 + $0x88] sm:$0xff]   ;;  %v514_v11 = vld [vmem:[%s686_s1 + $0x90] sm:$0xff]  }
   0x5   :  { %482 = vmatpush3.bf16.msra.mxu1 %v506_v3  ;;  %461 = vmatprep.subr.bf16.mxu0 %v507_v4  ;;  %v515_v12 = vld [vmem:[%s686_s1 + $0x58] sm:$0xff]   ;;  %v519_v16 = vld [vmem:[%s686_s1 + $0x60] sm:$0xff]   ;;  %v523_v20 = vld [vmem:[%s686_s1 + $0x68] sm:$0xff]  }
   0x6   :  { %483 = vmatprep.subr.bf16.mxu1 %v508_v5  ;;  %v516_v13 = vld [vmem:[%s686_s1 + $0xd8] sm:$0xff]   ;;  %v520_v17 = vld [vmem:[%s686_s1 + $0xe0] sm:$0xff]   ;;  %v524_v21 = vld [vmem:[%s686_s1 + $0xe8] sm:$0xff]  }
   0x7   :  { %v517_v14 = vld [vmem:[%s686_s1 + $0x18] sm:$0xff]   ;;  %v521_v18 = vld [vmem:[%s686_s1 + $0x20] sm:$0xff]   ;;  %v525_v22 = vld [vmem:[%s686_s1 + $0x28] sm:$0xff]  }
   0x8   :  { %462 = vmatpush3.bf16.msra.mxu0 %v509_v6  ;;  %v518_v15 = vld [vmem:[%s686_s1 + $0x98] sm:$0xff]   ;;  %v522_v19 = vld [vmem:[%s686_s1 + $0xa0] sm:$0xff]   ;;  %v526_v23 = vld [vmem:[%s686_s1 + $0xa8] sm:$0xff]  }
   0x9   :  { %484 = vmatpush3.bf16.msra.mxu1 %v510_v7  ;;  %463 = vmatprep.subr.bf16.mxu0 %v511_v8  ;;  %v527_v24 = vld [vmem:[%s686_s1 + $0x70] sm:$0xff]   ;;  %v531_v28 = vld [vmem:[%s686_s1 + $0x78] sm:$0xff]   ;;  %v457_v45 = vld [vmem:[%s688_s2] ss:$0 sm:$0xff] }
   0xa   :  { %485 = vmatprep.subr.bf16.mxu1 %v512_v9  ;;  %v528_v25 = vld [vmem:[%s686_s1 + $0xf0] sm:$0xff]   ;;  %v532_v29 = vld [vmem:[%s686_s1 + $0xf8] sm:$0xff]   ;;  %v458_v50 = vld [vmem:[%s689_s3] ss:$0 sm:$0xff] }
   0xb   :  { %v529_v26 = vld [vmem:[%s686_s1 + $0x30] sm:$0xff]   ;;  %v533_v30 = vld [vmem:[%s686_s1 + $0x38] sm:$0xff]  }
   0xc   :  { %464 = vmatpush3.bf16.msra.mxu0 %v513_v10  ;;  %v530_v27 = vld [vmem:[%s686_s1 + $0xb0] sm:$0xff]   ;;  %v534_v31 = vld [vmem:[%s686_s1 + $0xb8] sm:$0xff]  }
   0xd   :  { %486 = vmatpush3.bf16.msra.mxu1 %v514_v11  ;;  %465 = vmatprep.subr.bf16.mxu0 %v515_v12  ;;  %v535_v32 = vld [vmem:[%s687_s0] ss:$16 sps:$4 sm:$0xff]   ;;  %v537_v33 = vld [vmem:[%s687_s0 + $0x4] ss:$16 sps:$4 sm:$0xff]   ;;  %v538_v34 = vld [vmem:[%s687_s0 + $0x8] ss:$16 sps:$4 sm:$0xff]  }
   0xe   :  { %487 = vmatprep.subr.bf16.mxu1 %v516_v13  ;;  %v540_v35 = vld [vmem:[%s687_s0 + $0xc] ss:$16 sps:$4 sm:$0xff]   ;;  %338 = vmatprep.mubr.bf16.mxu0 %v537_v33 }
   0xf   :  { %379 = vmatprep.mubr.bf16.mxu1 %v540_v35 }
  0x10   :  { %466 = vmatpush3.bf16.msra.mxu0 %v517_v14 }
  0x11   :  { %488 = vmatpush3.bf16.msra.mxu1 %v518_v15  ;;  %467 = vmatprep.subr.bf16.mxu0 %v519_v16 }
  0x12   :  { %489 = vmatprep.subr.bf16.mxu1 %v520_v17 }
  0x14   :  { %468 = vmatpush3.bf16.msra.mxu0 %v521_v18 }
  0x15   :  { %490 = vmatpush3.bf16.msra.mxu1 %v522_v19  ;;  %469 = vmatprep.subr.bf16.mxu0 %v523_v20 }
  0x16   :  { %491 = vmatprep.subr.bf16.mxu1 %v524_v21 }
  0x18   :  { %470 = vmatpush3.bf16.msra.mxu0 %v525_v22 }
  0x19   :  { %492 = vmatpush3.bf16.msra.mxu1 %v526_v23  ;;  %471 = vmatprep.subr.bf16.mxu0 %v527_v24 }
  0x1a   :  { %493 = vmatprep.subr.bf16.mxu1 %v528_v25 }
  0x1c   :  { %472 = vmatpush3.bf16.msra.mxu0 %v529_v26 }
  0x1d   :  { %494 = vmatpush3.bf16.msra.mxu1 %v530_v27  ;;  %473 = vmatprep.subr.bf16.mxu0 %v531_v28 }
  0x1e   :  { %495 = vmatprep.subr.bf16.mxu1 %v532_v29 }
  0x20   :  { %474 = vmatpush3.bf16.msra.mxu0 %v533_v30 }
  0x21   :  { %496 = vmatpush3.bf16.msra.mxu1 %v534_v31 }
  0x23   :  { %339 = vmatmul.mubr.bf16.vlgmr.msra.gmra.mrb[0].mxu0 %v535_v32 }
  0x24   :  { %380 = vmatmul.mubr.bf16.vlgmr.msra.gmra.mrb[0].mxu1 %v538_v34 }
  0xf6   :  { %v475_v36 = vpop.f32.mrb[0].mxu0 }
  0xf7   :  { %v497_v37 = vpop.f32.mrb[0].mxu1  ;;  %v476_v38 = vpop.f32.mrb[1].mxu0 }
  0xf8   :  { %v477_v39 = vadd.f32 %v476_v38, %v475_v36  ;;  %v498_v40 = vpop.f32.mrb[1].mxu1  ;;  %v478_v41 = vpop.f32.mrb[2].mxu0 }
  0xf9   :  { %v499_v42 = vadd.f32 %v498_v40, %v497_v37  ;;  %v500_v43 = vpop.f32.mrb[2].mxu1  ;;  %v479_v44 = vpop.f32.mrb[3].mxu0 }
  0xfa   :  { %v480_v46 = vadd.f32 %v479_v44, %v478_v41  ;;  %v501_v47 = vpop.f32.mrb[3].mxu1 }
  0xfb   :  { %v382_v48 = vadd.f32 %v499_v42, %v477_v39  ;;  %v502_v49 = vadd.f32 %v501_v47, %v500_v43 }
  0xfd   :  { %v404_v51 = vmul.f32 %v457_v45, %v382_v48  ;;  %v385_v52 = vadd.f32 %v502_v49, %v480_v46 }
  0xff   :  { %v413_v53 = vadd.f32 %v458_v50, %v404_v51  ;;  %v405_v54 = vmul.f32 %v457_v45, %v385_v52 }
 0x101   :  { %415 = vst [vmem:[%s690_s4] sm:$0xff] %v413_v53  ;;  %v414_v55 = vadd.f32 %v458_v50, %v405_v54 }
 0x103   :  { %416 = vst [vmem:[%s690_s4 + $0x8] sm:$0xff] %v414_v55 }

// kernel: main_model_forward.14
= control target key start
LH: loop header
LB: loop body
LE: loop exit
PB: predicated region body
PF: predicated region fallthrough
CT: control target
= control target key end

     0   :  { %s1264_s1 = inlined_call_operand.vmem [shape: bf16[1,1024,128], index: 1, kind: input, shape index: {}]   ;;  %s1265_s0 = inlined_call_operand.vmem [shape: bf16[1,16,1024], index: 0, kind: input, shape index: {}]   ;;  %s1266_s2 = inlined_call_operand.vmem [shape: f32[1,1,128], index: 2, kind: input, shape index: {}]   ;;  %s1267_s3 = inlined_call_operand.vmem [shape: f32[1,1,128], index: 3, kind: input, shape index: {}]   ;;  %s1268_s4 = inlined_call_operand.vmem [shape: f32[1,16,128], index: 4, kind: output, shape index: {}]  }
   0x1   :  { %v947_v0 = vld [vmem:[%s1264_s1 + $0x40] sm:$0xff]   ;;  %v951_v4 = vld [vmem:[%s1264_s1 + $0x48] sm:$0xff]   ;;  %v955_v8 = vld [vmem:[%s1264_s1 + $0x50] sm:$0xff]  }
   0x2   :  { %v948_v1 = vld [vmem:[%s1264_s1 + $0xc0] sm:$0xff]   ;;  %859 = vmatprep.subr.bf16.mxu0 %v947_v0  ;;  %v952_v5 = vld [vmem:[%s1264_s1 + $0xc8] sm:$0xff]   ;;  %v956_v9 = vld [vmem:[%s1264_s1 + $0xd0] sm:$0xff]  }
   0x3   :  { %v949_v2 = vld [vmem:[%s1264_s1] sm:$0xff]   ;;  %881 = vmatprep.subr.bf16.mxu1 %v948_v1  ;;  %v953_v6 = vld [vmem:[%s1264_s1 + $0x8] sm:$0xff]   ;;  %v957_v10 = vld [vmem:[%s1264_s1 + $0x10] sm:$0xff]  }
   0x4   :  { %v950_v3 = vld [vmem:[%s1264_s1 + $0x80] sm:$0xff]   ;;  %860 = vmatpush3.bf16.msra.mxu0 %v949_v2  ;;  %v954_v7 = vld [vmem:[%s1264_s1 + $0x88] sm:$0xff]   ;;  %v958_v11 = vld [vmem:[%s1264_s1 + $0x90] sm:$0xff]  }
   0x5   :  { %882 = vmatpush3.bf16.msra.mxu1 %v950_v3  ;;  %861 = vmatprep.subr.bf16.mxu0 %v951_v4  ;;  %v959_v12 = vld [vmem:[%s1264_s1 + $0x58] sm:$0xff]   ;;  %v963_v16 = vld [vmem:[%s1264_s1 + $0x60] sm:$0xff]   ;;  %v967_v20 = vld [vmem:[%s1264_s1 + $0x68] sm:$0xff]  }
   0x6   :  { %883 = vmatprep.subr.bf16.mxu1 %v952_v5  ;;  %v960_v13 = vld [vmem:[%s1264_s1 + $0xd8] sm:$0xff]   ;;  %v964_v17 = vld [vmem:[%s1264_s1 + $0xe0] sm:$0xff]   ;;  %v968_v21 = vld [vmem:[%s1264_s1 + $0xe8] sm:$0xff]  }
   0x7   :  { %v961_v14 = vld [vmem:[%s1264_s1 + $0x18] sm:$0xff]   ;;  %v965_v18 = vld [vmem:[%s1264_s1 + $0x20] sm:$0xff]   ;;  %v969_v22 = vld [vmem:[%s1264_s1 + $0x28] sm:$0xff]  }
   0x8   :  { %862 = vmatpush3.bf16.msra.mxu0 %v953_v6  ;;  %v962_v15 = vld [vmem:[%s1264_s1 + $0x98] sm:$0xff]   ;;  %v966_v19 = vld [vmem:[%s1264_s1 + $0xa0] sm:$0xff]   ;;  %v970_v23 = vld [vmem:[%s1264_s1 + $0xa8] sm:$0xff]  }
   0x9   :  { %884 = vmatpush3.bf16.msra.mxu1 %v954_v7  ;;  %863 = vmatprep.subr.bf16.mxu0 %v955_v8  ;;  %v971_v24 = vld [vmem:[%s1264_s1 + $0x70] sm:$0xff]   ;;  %v975_v28 = vld [vmem:[%s1264_s1 + $0x78] sm:$0xff]   ;;  %v26_v32 = vld [vmem:[%s1265_s0] sm:$0xff] }
   0xa   :  { %885 = vmatprep.subr.bf16.mxu1 %v956_v9  ;;  %v972_v25 = vld [vmem:[%s1264_s1 + $0xf0] sm:$0xff]   ;;  %v976_v29 = vld [vmem:[%s1264_s1 + $0xf8] sm:$0xff]   ;;  %v30_v33 = vld [vmem:[%s1265_s0 + $0x20] sm:$0xff] }
   0xb   :  { %v973_v26 = vld [vmem:[%s1264_s1 + $0x30] sm:$0xff]   ;;  %v977_v30 = vld [vmem:[%s1264_s1 + $0x38] sm:$0xff]   ;;  %v27_v34 = vld [vmem:[%s1265_s0 + $0x8] sm:$0xff]  ;;  %v785_v35 = vcombine.low %v26_v32, %v30_v33  ;;  %v786_v36 = vcombine.high %v26_v32, %v30_v33 }
   0xc   :  { %864 = vmatpush3.bf16.msra.mxu0 %v957_v10  ;;  %v974_v27 = vld [vmem:[%s1264_s1 + $0xb0] sm:$0xff]   ;;  %v978_v31 = vld [vmem:[%s1264_s1 + $0xb8] sm:$0xff]   ;;  %v31_v37 = vld [vmem:[%s1265_s0 + $0x28] sm:$0xff] }
   0xd   :  { %886 = vmatpush3.bf16.msra.mxu1 %v958_v11  ;;  %865 = vmatprep.subr.bf16.mxu0 %v959_v12  ;;  %v787_v38 = vcombine.low %v27_v34, %v31_v37  ;;  %v788_v39 = vcombine.high %v27_v34, %v31_v37  ;;  %v979_v40 = vld [vmem:[%s1264_s1 + $0x140] sm:$0xff]   ;;  %v983_v44 = vld [vmem:[%s1264_s1 + $0x148] sm:$0xff]   ;;  %v987_v48 = vld [vmem:[%s1264_s1 + $0x150] sm:$0xff]  }
   0xe   :  { %887 = vmatprep.subr.bf16.mxu1 %v960_v13  ;;  %618 = vmatprep.mubr.bf16.mxu0 %v786_v36  ;;  %v980_v41 = vld [vmem:[%s1264_s1 + $0x1c0] sm:$0xff]   ;;  %v984_v45 = vld [vmem:[%s1264_s1 + $0x1c8] sm:$0xff]   ;;  %v988_v49 = vld [vmem:[%s1264_s1 + $0x1d0] sm:$0xff]  }
   0xf   :  { %659 = vmatprep.mubr.bf16.mxu1 %v788_v39  ;;  %v981_v42 = vld [vmem:[%s1264_s1 + $0x100] sm:$0xff]   ;;  %v985_v46 = vld [vmem:[%s1264_s1 + $0x108] sm:$0xff]   ;;  %v989_v50 = vld [vmem:[%s1264_s1 + $0x110] sm:$0xff]  }
  0x10   :  { %866 = vmatpush3.bf16.msra.mxu0 %v961_v14  ;;  %v982_v43 = vld [vmem:[%s1264_s1 + $0x180] sm:$0xff]   ;;  %v986_v47 = vld [vmem:[%s1264_s1 + $0x188] sm:$0xff]   ;;  %v990_v51 = vld [vmem:[%s1264_s1 + $0x190] sm:$0xff]  }
  0x11   :  { %888 = vmatpush3.bf16.msra.mxu1 %v962_v15  ;;  %867 = vmatprep.subr.bf16.mxu0 %v963_v16  ;;  %v991_v52 = vld [vmem:[%s1264_s1 + $0x158] sm:$0xff]   ;;  %v995_v56 = vld [vmem:[%s1264_s1 + $0x160] sm:$0xff]   ;;  %v999_v60 = vld [vmem:[%s1264_s1 + $0x168] sm:$0xff]  }
  0x12   :  { %889 = vmatprep.subr.bf16.mxu1 %v964_v17  ;;  %v992_v53 = vld [vmem:[%s1264_s1 + $0x1d8] sm:$0xff]   ;;  %v996_v57 = vld [vmem:[%s1264_s1 + $0x1e0] sm:$0xff]   ;;  %v1000_v61 = vld [vmem:[%s1264_s1 + $0x1e8] sm:$0xff]  }
  0x13   :  { %v993_v54 = vld [vmem:[%s1264_s1 + $0x118] sm:$0xff]   ;;  %v997_v58 = vld [vmem:[%s1264_s1 + $0x120] sm:$0xff]   ;;  %v1001_v62 = vld [vmem:[%s1264_s1 + $0x128] sm:$0xff]  }
  0x14   :  { %868 = vmatpush3.bf16.msra.mxu0 %v965_v18  ;;  %v994_v55 = vld [vmem:[%s1264_s1 + $0x198] sm:$0xff]   ;;  %v998_v59 = vld [vmem:[%s1264_s1 + $0x1a0] sm:$0xff]   ;;  %v1002_v63 = vld [vmem:[%s1264_s1 + $0x1a8] sm:$0xff]  }
  0x15   :  { %890 = vmatpush3.bf16.msra.mxu1 %v966_v19  ;;  %869 = vmatprep.subr.bf16.mxu0 %v967_v20  ;;  %v1003_v0 = vld [vmem:[%s1264_s1 + $0x170] sm:$0xff]   ;;  %v1007_v4 = vld [vmem:[%s1264_s1 + $0x178] sm:$0xff]  }
  0x16   :  { %891 = vmatprep.subr.bf16.mxu1 %v968_v21  ;;  %v1004_v1 = vld [vmem:[%s1264_s1 + $0x1f0] sm:$0xff]   ;;  %v1008_v5 = vld [vmem:[%s1264_s1 + $0x1f8] sm:$0xff]  }
  0x17   :  { %v1005_v2 = vld [vmem:[%s1264_s1 + $0x130] sm:$0xff]   ;;  %v1009_v6 = vld [vmem:[%s1264_s1 + $0x138] sm:$0xff]  }
  0x18   :  { %870 = vmatpush3.bf16.msra.mxu0 %v969_v22  ;;  %v1006_v3 = vld [vmem:[%s1264_s1 + $0x1b0] sm:$0xff]   ;;  %v1010_v7 = vld [vmem:[%s1264_s1 + $0x1b8] sm:$0xff]  }
  0x19   :  { %892 = vmatpush3.bf16.msra.mxu1 %v970_v23  ;;  %871 = vmatprep.subr.bf16.mxu0 %v971_v24  ;;  %v28_v8 = vld [vmem:[%s1265_s0 + $0x10] sm:$0xff]  ;;  %v29_v12 = vld [vmem:[%s1265_s0 + $0x18] sm:$0xff] }
  0x1a   :  { %893 = vmatprep.subr.bf16.mxu1 %v972_v25  ;;  %v32_v9 = vld [vmem:[%s1265_s0 + $0x30] sm:$0xff]  ;;  %v33_v13 = vld [vmem:[%s1265_s0 + $0x38] sm:$0xff] }
  0x1b   :  { %v789_v10 = vcombine.low %v28_v8, %v32_v9  ;;  %v790_v11 = vcombine.high %v28_v8, %v32_v9  ;;  %v791_v14 = vcombine.low %v29_v12, %v33_v13  ;;  %v792_v15 = vcombine.high %v29_v12, %v33_v13 }
  0x1c   :  { %872 = vmatpush3.bf16.msra.mxu0 %v973_v26 }
  0x1d   :  { %894 = vmatpush3.bf16.msra.mxu1 %v974_v27  ;;  %873 = vmatprep.subr.bf16.mxu0 %v975_v28 }
  0x1e   :  { %895 = vmatprep.subr.bf16.mxu1 %v976_v29 }
  0x20   :  { %874 = vmatpush3.bf16.msra.mxu0 %v977_v30 }
  0x21   :  { %896 = vmatpush3.bf16.msra.mxu1 %v978_v31  ;;  %903 = vmatprep.subr.bf16.mxu0 %v979_v40 }
  0x22   :  { %925 = vmatprep.subr.bf16.mxu1 %v980_v41 }
  0x23   :  { %619 = vmatmul.mubr.bf16.vlgmr.msra.gmra.mrb[0].mxu0 %v785_v35 }
  0x24   :  { %660 = vmatmul.mubr.bf16.vlgmr.msra.gmra.mrb[0].mxu1 %v787_v38  ;;  %904 = vmatpush3.bf16.msra.mxu0 %v981_v42  ;;  %v857_v42 = vld [vmem:[%s1266_s2] ss:$0 sm:$0xff] }
  0x25   :  { %926 = vmatpush3.bf16.msra.mxu1 %v982_v43  ;;  %905 = vmatprep.subr.bf16.mxu0 %v983_v44 }
  0x26   :  { %927 = vmatprep.subr.bf16.mxu1 %v984_v45  ;;  %700 = vmatprep.mubr.bf16.mxu0 %v790_v11 }
  0x27   :  { %741 = vmatprep.mubr.bf16.mxu1 %v792_v15 }
  0x28   :  { %906 = vmatpush3.bf16.msra.mxu0 %v985_v46  ;;  %v858_v46 = vld [vmem:[%s1267_s3] ss:$0 sm:$0xff] }
  0x29   :  { %928 = vmatpush3.bf16.msra.mxu1 %v986_v47  ;;  %907 = vmatprep.subr.bf16.mxu0 %v987_v48 }
  0x2a   :  { %929 = vmatprep.subr.bf16.mxu1 %v988_v49 }
  0x2c   :  { %908 = vmatpush3.bf16.msra.mxu0 %v989_v50 }
  0x2d   :  { %930 = vmatpush3.bf16.msra.mxu1 %v990_v51  ;;  %909 = vmatprep.subr.bf16.mxu0 %v991_v52 }
  0x2e   :  { %931 = vmatprep.subr.bf16.mxu1 %v992_v53 }
  0x30   :  { %910 = vmatpush3.bf16.msra.mxu0 %v993_v54 }
  0x31   :  { %932 = vmatpush3.bf16.msra.mxu1 %v994_v55  ;;  %911 = vmatprep.subr.bf16.mxu0 %v995_v56 }
  0x32   :  { %933 = vmatprep.subr.bf16.mxu1 %v996_v57 }
  0x34   :  { %912 = vmatpush3.bf16.msra.mxu0 %v997_v58 }
  0x35   :  { %934 = vmatpush3.bf16.msra.mxu1 %v998_v59  ;;  %913 = vmatprep.subr.bf16.mxu0 %v999_v60 }
  0x36   :  { %935 = vmatprep.subr.bf16.mxu1 %v1000_v61 }
  0x38   :  { %914 = vmatpush3.bf16.msra.mxu0 %v1001_v62 }
  0x39   :  { %936 = vmatpush3.bf16.msra.mxu1 %v1002_v63  ;;  %915 = vmatprep.subr.bf16.mxu0 %v1003_v0 }
  0x3a   :  { %937 = vmatprep.subr.bf16.mxu1 %v1004_v1 }
  0x3c   :  { %916 = vmatpush3.bf16.msra.mxu0 %v1005_v2 }
  0x3d   :  { %938 = vmatpush3.bf16.msra.mxu1 %v1006_v3  ;;  %917 = vmatprep.subr.bf16.mxu0 %v1007_v4 }
  0x3e   :  { %939 = vmatprep.subr.bf16.mxu1 %v1008_v5 }
  0x40   :  { %918 = vmatpush3.bf16.msra.mxu0 %v1009_v6 }
  0x41   :  { %940 = vmatpush3.bf16.msra.mxu1 %v1010_v7 }
  0x43   :  { %701 = vmatmul.mubr.bf16.vlgmr.msra.gmra.mrb[4].mxu0 %v789_v10 }
  0x44   :  { %742 = vmatmul.mubr.bf16.vlgmr.msra.gmra.mrb[4].mxu1 %v791_v14 }
  0xf6   :  { %v875_v16 = vpop.f32.mrb[0].mxu0 }
  0xf7   :  { %v897_v17 = vpop.f32.mrb[0].mxu1  ;;  %v876_v18 = vpop.f32.mrb[1].mxu0 }
  0xf8   :  { %v877_v19 = vadd.f32 %v876_v18, %v875_v16  ;;  %v898_v20 = vpop.f32.mrb[1].mxu1  ;;  %v878_v21 = vpop.f32.mrb[2].mxu0 }
  0xf9   :  { %v899_v22 = vadd.f32 %v898_v20, %v897_v17  ;;  %v900_v23 = vpop.f32.mrb[2].mxu1  ;;  %v879_v24 = vpop.f32.mrb[3].mxu0 }
  0xfa   :  { %v880_v25 = vadd.f32 %v879_v24, %v878_v21  ;;  %v901_v26 = vpop.f32.mrb[3].mxu1 }
  0xfb   :  { %v662_v27 = vadd.f32 %v899_v22, %v877_v19  ;;  %v902_v28 = vadd.f32 %v901_v26, %v900_v23 }
  0xfd   :  { %v665_v29 = vadd.f32 %v902_v28, %v880_v25 }
 0x116   :  { %v919_v30 = vpop.f32.mrb[4].mxu0 }
 0x117   :  { %v941_v31 = vpop.f32.mrb[4].mxu1  ;;  %v920_v32 = vpop.f32.mrb[5].mxu0 }
 0x118   :  { %v921_v33 = vadd.f32 %v920_v32, %v919_v30  ;;  %v942_v34 = vpop.f32.mrb[5].mxu1  ;;  %v922_v35 = vpop.f32.mrb[6].mxu0 }
 0x119   :  { %v943_v36 = vadd.f32 %v942_v34, %v941_v31  ;;  %v944_v37 = vpop.f32.mrb[6].mxu1  ;;  %v923_v38 = vpop.f32.mrb[7].mxu0 }
 0x11a   :  { %v703_v39 = vadd.f32 %v921_v33, %v662_v27  ;;  %v924_v40 = vadd.f32 %v923_v38, %v922_v35  ;;  %v945_v41 = vpop.f32.mrb[7].mxu1 }
 0x11b   :  { %v946_v43 = vadd.f32 %v945_v41, %v944_v37 }
 0x11c   :  { %v744_v44 = vadd.f32 %v943_v36, %v703_v39  ;;  %v706_v45 = vadd.f32 %v924_v40, %v665_v29 }
 0x11e   :  { %v766_v47 = vmul.f32 %v857_v42, %v744_v44  ;;  %v747_v48 = vadd.f32 %v946_v43, %v706_v45 }
 0x120   :  { %v775_v49 = vadd.f32 %v858_v46, %v766_v47  ;;  %v767_v50 = vmul.f32 %v857_v42, %v747_v48 }
 0x122   :  { %v777_v51 = vmax.f32 %v775_v49, 0.0  ;;  %v776_v52 = vadd.f32 %v858_v46, %v767_v50 }
 0x124   :  { %779 = vst [vmem:[%s1268_s4] sm:$0xff] %v777_v51  ;;  %v778_v53 = vmax.f32 %v776_v52, 0.0 }
 0x126   :  { %780 = vst [vmem:[%s1268_s4 + $0x8] sm:$0xff] %v778_v53 }

// kernel: main_model_forward.15
= control target key start
LH: loop header
LB: loop body
LE: loop exit
PB: predicated region body
PF: predicated region fallthrough
CT: control target
= control target key end

     0   :  { %s898_s15 = smov 0   ;;  %s900_s16 = smov 0   ;;  %s968_s0 = inlined_call_operand.vmem [shape: bf16[4,16,256], index: 0, kind: input, shape index: {}]   ;;  %s969_s1 = inlined_call_operand.vmem [shape: bf16[4,256,128], index: 1, kind: input, shape index: {}]   ;;  %s970_s2 = inlined_call_operand.vmem [shape: f32[4,1,128], index: 2, kind: input, shape index: {}]   ;;  %s971_s3 = inlined_call_operand.vmem [shape: f32[4,1,128], index: 3, kind: input, shape index: {}]   ;;  %s972_s4 = inlined_call_operand.vmem [shape: f32[4,16,128], index: 4, kind: output, shape index: {}]  }
   0x1   :  { %s902_s17 = smov 0  }
   0x2 LB: > { %s40_s18 = sadd.s32 1, %s867_s16  ;;  %p752_p0 = scmp.ge.s32.totalorder %s871_s17, 1  ;;  %s871_s17 = sphi %s902_s17, %s14_s17   ;;  %s867_s16 = sphi %s900_s16, %s974_s16   ;;  %s863_s15 = sphi %s898_s15, %s973_s15  }
   0x3   : > { %p42_p1 = scmp.ge.s32.totalorder %s40_s18, 4  ;;  %p255_p2 = scmp.lt.s32.totalorder %s871_s17, 5 }
   0x5   : > { %s976_s18 = smov (%p42_p1, %s40_s18), 0  ;;  %p256_p3 = pnand %p752_p0, %p255_p2 }
   0x6   : > { %p323_p4 = scmp.lt.s32.totalorder (!%p256_p3), %s863_s15, 3 }
   0x7   : > { %259 = sbr.rel (%p256_p3) target bundleno = 272 (0x110), region = 36 }
   0xe   : > { %s978_s15 = smov (!%p323_p4, %s863_s15), 3 }
   0xf   : > { %s782_s19 = sshll.u32 %s978_s15, 7  ;;  %s781_s23 = sshll.u32 %s978_s15, 4 }
  0x10   : > { %s922_s22 = scalar_lea.vmem %s969_s1, %s782_s19  ;;  %s334_s26 = scalar_lea.vmem %s968_s0, %s781_s23 }
  0x11   : > { %v830_v0 = vld [vmem:[%s922_s22 + $0x40] sm:$0xff]   ;;  %v832_v2 = vld [vmem:[%s922_s22 + $0x48] sm:$0xff]   ;;  %v834_v4 = vld [vmem:[%s922_s22 + $0x50] sm:$0xff]   ;;  %s355_s29 = scalar_lea.vmem %s970_s2, %s978_s15  ;;  %s361_s6 = scalar_lea.vmem %s971_s3, %s978_s15 }
  0x12   : > { %v831_v1 = vld [vmem:[%s922_s22] sm:$0xff]   ;;  %784 = vmatprep.subr.bf16.mxu0 %v830_v0  ;;  %v833_v3 = vld [vmem:[%s922_s22 + $0x8] sm:$0xff]   ;;  %v835_v5 = vld [vmem:[%s922_s22 + $0x10] sm:$0xff]   ;;  %s373_s9 = scalar_lea.vmem %s972_s4, %s781_s23 }
  0x13   : > { %785 = vmatpush3.bf16.msra.mxu0 %v831_v1  ;;  %v836_v6 = vld [vmem:[%s922_s22 + $0x58] sm:$0xff]   ;;  %v838_v8 = vld [vmem:[%s922_s22 + $0x60] sm:$0xff]   ;;  %v840_v10 = vld [vmem:[%s922_s22 + $0x68] sm:$0xff]  }
  0x14   : > { %786 = vmatprep.subr.bf16.mxu0 %v832_v2  ;;  %v837_v7 = vld [vmem:[%s922_s22 + $0x18] sm:$0xff]   ;;  %v839_v9 = vld [vmem:[%s922_s22 + $0x20] sm:$0xff]   ;;  %v841_v12 = vld [vmem:[%s922_s22 + $0x28] sm:$0xff]  }
  0x15   : > { %v848_v11 = vld [vmem:[%s334_s26 + $0x4] ss:$8 sps:$4 sm:$0xff]   ;;  %v842_v13 = vld [vmem:[%s922_s22 + $0x70] sm:$0xff]   ;;  %v844_v15 = vld [vmem:[%s922_s22 + $0x78] sm:$0xff]  }
  0x16   : > { %556 = vmatprep.mubr.bf16.mxu0 %v848_v11  ;;  %v843_v14 = vld [vmem:[%s922_s22 + $0x30] sm:$0xff]   ;;  %v845_v16 = vld [vmem:[%s922_s22 + $0x38] sm:$0xff]   ;;  %v846_v17 = vld [vmem:[%s334_s26] ss:$8 sps:$4 sm:$0xff]  }
  0x17   : > { %787 = vmatpush3.bf16.msra.mxu0 %v833_v3  ;;  %v777_v20 = vld [vmem:[%s355_s29] ss:$0 sm:$0xff] }
  0x18   : > { %788 = vmatprep.subr.bf16.mxu0 %v834_v4  ;;  %v778_v23 = vld [vmem:[%s361_s6] ss:$0 sm:$0xff] }
  0x1b   : > { %789 = vmatpush3.bf16.msra.mxu0 %v835_v5 }
  0x1c   : > { %790 = vmatprep.subr.bf16.mxu0 %v836_v6 }
  0x1f   : > { %791 = vmatpush3.bf16.msra.mxu0 %v837_v7 }
  0x20   : > { %792 = vmatprep.subr.bf16.mxu0 %v838_v8 }
  0x23   : > { %793 = vmatpush3.bf16.msra.mxu0 %v839_v9 }
  0x24   : > { %794 = vmatprep.subr.bf16.mxu0 %v840_v10 }
  0x27   : > { %795 = vmatpush3.bf16.msra.mxu0 %v841_v12 }
  0x28   : > { %796 = vmatprep.subr.bf16.mxu0 %v842_v13 }
  0x2b   : > { %797 = vmatpush3.bf16.msra.mxu0 %v843_v14 }
  0x2c   : > { %798 = vmatprep.subr.bf16.mxu0 %v844_v15 }
  0x2f   : > { %799 = vmatpush3.bf16.msra.mxu0 %v845_v16 }
  0x32   : > { %557 = vmatmul.mubr.bf16.vlgmr.msra.gmra.mrb[0].mxu0 %v846_v17 }
 0x105   : > { %v800_v18 = vpop.f32.mrb[0].mxu0 }
 0x106   : > { %v801_v19 = vpop.f32.mrb[1].mxu0 }
 0x107   : > { %v802_v21 = vadd.f32 %v801_v19, %v800_v18  ;;  %v803_v22 = vpop.f32.mrb[2].mxu0 }
 0x108   : > { %v804_v24 = vpop.f32.mrb[3].mxu0 }
 0x109   : > { %v581_v25 = vmul.f32 %v802_v21, %v777_v20  ;;  %v805_v26 = vadd.f32 %v804_v24, %v803_v22 }
 0x10b   : > { %v590_v27 = vadd.f32 %v778_v23, %v581_v25  ;;  %v582_v28 = vmul.f32 %v805_v26, %v777_v20 }
 0x10d   : > { %592 = vst [vmem:[%s373_s9] sm:$0xff] %v590_v27  ;;  %v591_v29 = vadd.f32 %v778_v23, %v582_v28 }
 0x10f   : > { %593 = vst [vmem:[%s373_s9 + $0x8] sm:$0xff] %v591_v29 }
 0x110 PF: > { %s14_s17 = sadd.s32 1, %s871_s17   ;;  %s973_s15 = smov %s867_s16 }
 0x111   : > { %p11_p5 = scmp.ge.s32.totalorder %s14_s17, 6   ;;  %s974_s16 = smov %s976_s18 }
 0x113   :  { %13 = sbr.rel (!%p11_p5) target bundleno = 2 (0x2), region = 83 }

// kernel: main_model_forward.16
= control target key start
LH: loop header
LB: loop body
LE: loop exit
PB: predicated region body
PF: predicated region fallthrough
CT: control target
= control target key end

     0   :  { %s1138_s15 = smov 0   ;;  %s1140_s16 = smov 0   ;;  %s1221_s0 = inlined_call_operand.vmem [shape: bf16[4,16,512], index: 0, kind: input, shape index: {}]   ;;  %s1222_s1 = inlined_call_operand.vmem [shape: bf16[4,512,128], index: 1, kind: input, shape index: {}]   ;;  %s1223_s2 = inlined_call_operand.vmem [shape: f32[4,1,128], index: 2, kind: input, shape index: {}]   ;;  %s1224_s3 = inlined_call_operand.vmem [shape: f32[4,1,128], index: 3, kind: input, shape index: {}]   ;;  %s1225_s4 = inlined_call_operand.vmem [shape: f32[4,16,128], index: 4, kind: output, shape index: {}]  }
   0x1   :  { %s1142_s17 = smov 0  }
   0x2 LB: > { %s40_s18 = sadd.s32 1, %s1107_s16  ;;  %p933_p0 = scmp.ge.s32.totalorder %s1111_s17, 1  ;;  %s1111_s17 = sphi %s1142_s17, %s14_s17   ;;  %s1107_s16 = sphi %s1140_s16, %s1227_s16   ;;  %s1103_s15 = sphi %s1138_s15, %s1226_s15  }
   0x3   : > { %p42_p1 = scmp.ge.s32.totalorder %s40_s18, 4  ;;  %p255_p2 = scmp.lt.s32.totalorder %s1111_s17, 5 }
   0x5   : > { %s1229_s18 = smov (%p42_p1, %s40_s18), 0  ;;  %p256_p3 = pnand %p933_p0, %p255_p2 }
   0x6   : > { %p323_p4 = scmp.lt.s32.totalorder (!%p256_p3), %s1103_s15, 3 }
   0x7   : > { %259 = sbr.rel (%p256_p3) target bundleno = 276 (0x114), region = 36 }
   0xe   : > { %s1231_s15 = smov (!%p323_p4, %s1103_s15), 3 }
   0xf   : > { %s981_s19 = sshll.u32 %s1231_s15, 8  ;;  %s980_s23 = sshll.u32 %s1231_s15, 5 }
  0x10   : > { %s1162_s22 = scalar_lea.vmem %s1222_s1, %s981_s19  ;;  %s334_s26 = scalar_lea.vmem %s1221_s0, %s980_s23 }
  0x11   : > { %v1051_v0 = vld [vmem:[%s1162_s22 + $0x40] sm:$0xff]   ;;  %v1055_v4 = vld [vmem:[%s1162_s22 + $0x48] sm:$0xff]   ;;  %v1059_v8 = vld [vmem:[%s1162_s22 + $0x50] sm:$0xff]   ;;  %s355_s29 = scalar_lea.vmem %s1223_s2, %s1231_s15  ;;  %s361_s6 = scalar_lea.vmem %s1224_s3, %s1231_s15 }
  0x12   : > { %v1052_v1 = vld [vmem:[%s1162_s22 + $0xc0] sm:$0xff]   ;;  %983 = vmatprep.subr.bf16.mxu0 %v1051_v0  ;;  %v1056_v5 = vld [vmem:[%s1162_s22 + $0xc8] sm:$0xff]   ;;  %v1060_v9 = vld [vmem:[%s1162_s22 + $0xd0] sm:$0xff]   ;;  %s982_s7 = sshll.u32 %s1231_s15, 4 }
  0x13   : > { %v1053_v2 = vld [vmem:[%s1162_s22] sm:$0xff]   ;;  %1005 = vmatprep.subr.bf16.mxu1 %v1052_v1  ;;  %v1057_v6 = vld [vmem:[%s1162_s22 + $0x8] sm:$0xff]   ;;  %v1061_v10 = vld [vmem:[%s1162_s22 + $0x10] sm:$0xff]   ;;  %s373_s10 = scalar_lea.vmem %s1225_s4, %s982_s7 }
  0x14   : > { %v1054_v3 = vld [vmem:[%s1162_s22 + $0x80] sm:$0xff]   ;;  %984 = vmatpush3.bf16.msra.mxu0 %v1053_v2  ;;  %v1058_v7 = vld [vmem:[%s1162_s22 + $0x88] sm:$0xff]   ;;  %v1062_v11 = vld [vmem:[%s1162_s22 + $0x90] sm:$0xff]  }
  0x15   : > { %1006 = vmatpush3.bf16.msra.mxu1 %v1054_v3  ;;  %985 = vmatprep.subr.bf16.mxu0 %v1055_v4  ;;  %v1063_v12 = vld [vmem:[%s1162_s22 + $0x58] sm:$0xff]   ;;  %v1067_v16 = vld [vmem:[%s1162_s22 + $0x60] sm:$0xff]   ;;  %v1071_v20 = vld [vmem:[%s1162_s22 + $0x68] sm:$0xff]  }
  0x16   : > { %1007 = vmatprep.subr.bf16.mxu1 %v1056_v5  ;;  %v1064_v13 = vld [vmem:[%s1162_s22 + $0xd8] sm:$0xff]   ;;  %v1068_v17 = vld [vmem:[%s1162_s22 + $0xe0] sm:$0xff]   ;;  %v1072_v21 = vld [vmem:[%s1162_s22 + $0xe8] sm:$0xff]  }
  0x17   : > { %v1065_v14 = vld [vmem:[%s1162_s22 + $0x18] sm:$0xff]   ;;  %v1069_v18 = vld [vmem:[%s1162_s22 + $0x20] sm:$0xff]   ;;  %v1073_v22 = vld [vmem:[%s1162_s22 + $0x28] sm:$0xff]  }
  0x18   : > { %986 = vmatpush3.bf16.msra.mxu0 %v1057_v6  ;;  %v1066_v15 = vld [vmem:[%s1162_s22 + $0x98] sm:$0xff]   ;;  %v1070_v19 = vld [vmem:[%s1162_s22 + $0xa0] sm:$0xff]   ;;  %v1074_v23 = vld [vmem:[%s1162_s22 + $0xa8] sm:$0xff]  }
  0x19   : > { %1008 = vmatpush3.bf16.msra.mxu1 %v1058_v7  ;;  %987 = vmatprep.subr.bf16.mxu0 %v1059_v8  ;;  %v1075_v24 = vld [vmem:[%s1162_s22 + $0x70] sm:$0xff]   ;;  %v1079_v28 = vld [vmem:[%s1162_s22 + $0x78] sm:$0xff]   ;;  %v976_v45 = vld [vmem:[%s355_s29] ss:$0 sm:$0xff] }
  0x1a   : > { %1009 = vmatprep.subr.bf16.mxu1 %v1060_v9  ;;  %v1076_v25 = vld [vmem:[%s1162_s22 + $0xf0] sm:$0xff]   ;;  %v1080_v29 = vld [vmem:[%s1162_s22 + $0xf8] sm:$0xff]   ;;  %v977_v50 = vld [vmem:[%s361_s6] ss:$0 sm:$0xff] }
  0x1b   : > { %v1077_v26 = vld [vmem:[%s1162_s22 + $0x30] sm:$0xff]   ;;  %v1081_v30 = vld [vmem:[%s1162_s22 + $0x38] sm:$0xff]  }
  0x1c   : > { %988 = vmatpush3.bf16.msra.mxu0 %v1061_v10  ;;  %v1078_v27 = vld [vmem:[%s1162_s22 + $0xb0] sm:$0xff]   ;;  %v1082_v31 = vld [vmem:[%s1162_s22 + $0xb8] sm:$0xff]  }
  0x1d   : > { %1010 = vmatpush3.bf16.msra.mxu1 %v1062_v11  ;;  %989 = vmatprep.subr.bf16.mxu0 %v1063_v12  ;;  %v1083_v32 = vld [vmem:[%s334_s26] ss:$16 sps:$4 sm:$0xff]   ;;  %v1085_v33 = vld [vmem:[%s334_s26 + $0x4] ss:$16 sps:$4 sm:$0xff]   ;;  %v1086_v34 = vld [vmem:[%s334_s26 + $0x8] ss:$16 sps:$4 sm:$0xff]  }
  0x1e   : > { %1011 = vmatprep.subr.bf16.mxu1 %v1064_v13  ;;  %v1088_v35 = vld [vmem:[%s334_s26 + $0xc] ss:$16 sps:$4 sm:$0xff]   ;;  %696 = vmatprep.mubr.bf16.mxu0 %v1085_v33 }
  0x1f   : > { %737 = vmatprep.mubr.bf16.mxu1 %v1088_v35 }
  0x20   : > { %990 = vmatpush3.bf16.msra.mxu0 %v1065_v14 }
  0x21   : > { %1012 = vmatpush3.bf16.msra.mxu1 %v1066_v15  ;;  %991 = vmatprep.subr.bf16.mxu0 %v1067_v16 }
  0x22   : > { %1013 = vmatprep.subr.bf16.mxu1 %v1068_v17 }
  0x24   : > { %992 = vmatpush3.bf16.msra.mxu0 %v1069_v18 }
  0x25   : > { %1014 = vmatpush3.bf16.msra.mxu1 %v1070_v19  ;;  %993 = vmatprep.subr.bf16.mxu0 %v1071_v20 }
  0x26   : > { %1015 = vmatprep.subr.bf16.mxu1 %v1072_v21 }
  0x28   : > { %994 = vmatpush3.bf16.msra.mxu0 %v1073_v22 }
  0x29   : > { %1016 = vmatpush3.bf16.msra.mxu1 %v1074_v23  ;;  %995 = vmatprep.subr.bf16.mxu0 %v1075_v24 }
  0x2a   : > { %1017 = vmatprep.subr.bf16.mxu1 %v1076_v25 }
  0x2c   : > { %996 = vmatpush3.bf16.msra.mxu0 %v1077_v26 }
  0x2d   : > { %1018 = vmatpush3.bf16.msra.mxu1 %v1078_v27  ;;  %997 = vmatprep.subr.bf16.mxu0 %v1079_v28 }
  0x2e   : > { %1019 = vmatprep.subr.bf16.mxu1 %v1080_v29 }
  0x30   : > { %998 = vmatpush3.bf16.msra.mxu0 %v1081_v30 }
  0x31   : > { %1020 = vmatpush3.bf16.msra.mxu1 %v1082_v31 }
  0x33   : > { %697 = vmatmul.mubr.bf16.vlgmr.msra.gmra.mrb[0].mxu0 %v1083_v32 }
  0x34   : > { %738 = vmatmul.mubr.bf16.vlgmr.msra.gmra.mrb[0].mxu1 %v1086_v34 }
 0x106   : > { %v999_v36 = vpop.f32.mrb[0].mxu0 }
 0x107   : > { %v1021_v37 = vpop.f32.mrb[0].mxu1  ;;  %v1000_v38 = vpop.f32.mrb[1].mxu0 }
 0x108   : > { %v1001_v39 = vadd.f32 %v1000_v38, %v999_v36  ;;  %v1022_v40 = vpop.f32.mrb[1].mxu1  ;;  %v1002_v41 = vpop.f32.mrb[2].mxu0 }
 0x109   : > { %v1023_v42 = vadd.f32 %v1022_v40, %v1021_v37  ;;  %v1024_v43 = vpop.f32.mrb[2].mxu1  ;;  %v1003_v44 = vpop.f32.mrb[3].mxu0 }
 0x10a   : > { %v1004_v46 = vadd.f32 %v1003_v44, %v1002_v41  ;;  %v1025_v47 = vpop.f32.mrb[3].mxu1 }
 0x10b   : > { %v740_v48 = vadd.f32 %v1023_v42, %v1001_v39  ;;  %v1026_v49 = vadd.f32 %v1025_v47, %v1024_v43 }
 0x10d   : > { %v762_v51 = vmul.f32 %v976_v45, %v740_v48  ;;  %v743_v52 = vadd.f32 %v1026_v49, %v1004_v46 }
 0x10f   : > { %v771_v53 = vadd.f32 %v977_v50, %v762_v51  ;;  %v763_v54 = vmul.f32 %v976_v45, %v743_v52 }
 0x111   : > { %773 = vst [vmem:[%s373_s10] sm:$0xff] %v771_v53  ;;  %v772_v55 = vadd.f32 %v977_v50, %v763_v54 }
 0x113   : > { %774 = vst [vmem:[%s373_s10 + $0x8] sm:$0xff] %v772_v55 }
 0x114 PF: > { %s14_s17 = sadd.s32 1, %s1111_s17   ;;  %s1226_s15 = smov %s1107_s16 }
 0x115   : > { %p11_p5 = scmp.ge.s32.totalorder %s14_s17, 6   ;;  %s1227_s16 = smov %s1229_s18 }
 0x117   :  { %13 = sbr.rel (!%p11_p5) target bundleno = 2 (0x2), region = 83 }

// kernel: main_model_forward.17
= control target key start
LH: loop header
LB: loop body
LE: loop exit
PB: predicated region body
PF: predicated region fallthrough
CT: control target
= control target key end

     0   :  { %s961_s15 = smov 0   ;;  %s963_s16 = smov 0   ;;  %s1031_s0 = inlined_call_operand.vmem [shape: bf16[4,32,256], index: 0, kind: input, shape index: {}]   ;;  %s1032_s1 = inlined_call_operand.vmem [shape: bf16[4,256,128], index: 1, kind: input, shape index: {}]   ;;  %s1033_s2 = inlined_call_operand.vmem [shape: f32[4,1,128], index: 2, kind: input, shape index: {}]   ;;  %s1034_s3 = inlined_call_operand.vmem [shape: f32[4,1,128], index: 3, kind: input, shape index: {}]   ;;  %s1035_s4 = inlined_call_operand.vmem [shape: f32[4,32,128], index: 4, kind: output, shape index: {}]  }
   0x1   :  { %s965_s17 = smov 0  }
   0x2 LB: > { %s40_s18 = sadd.s32 1, %s930_s16  ;;  %p788_p0 = scmp.ge.s32.totalorder %s934_s17, 1  ;;  %s934_s17 = sphi %s965_s17, %s14_s17   ;;  %s930_s16 = sphi %s963_s16, %s1037_s16   ;;  %s926_s15 = sphi %s961_s15, %s1036_s15  }
   0x3   : > { %p42_p1 = scmp.ge.s32.totalorder %s40_s18, 4  ;;  %p255_p2 = scmp.lt.s32.totalorder %s934_s17, 5 }
   0x5   : > { %s1039_s18 = smov (%p42_p1, %s40_s18), 0  ;;  %p256_p3 = pnand %p788_p0, %p255_p2 }
   0x6   : > { %p323_p4 = scmp.lt.s32.totalorder (!%p256_p3), %s926_s15, 3 }
   0x7   : > { %259 = sbr.rel (%p256_p3) target bundleno = 272 (0x110), region = 36 }
   0xe   : > { %s1041_s15 = smov (!%p323_p4, %s926_s15), 3 }
   0xf   : > { %s820_s19 = sshll.u32 %s1041_s15, 7  ;;  %s819_s23 = sshll.u32 %s1041_s15, 5 }
  0x10   : > { %s985_s22 = scalar_lea.vmem %s1032_s1, %s820_s19  ;;  %s334_s26 = scalar_lea.vmem %s1031_s0, %s819_s23 }
  0x11   : > { %v890_v0 = vld [vmem:[%s985_s22 + $0x40] sm:$0xff]   ;;  %v892_v2 = vld [vmem:[%s985_s22 + $0x48] sm:$0xff]   ;;  %v894_v4 = vld [vmem:[%s985_s22 + $0x50] sm:$0xff]   ;;  %s355_s29 = scalar_lea.vmem %s1033_s2, %s1041_s15  ;;  %s361_s6 = scalar_lea.vmem %s1034_s3, %s1041_s15 }
  0x12   : > { %v891_v1 = vld [vmem:[%s985_s22] sm:$0xff]   ;;  %822 = vmatprep.subr.bf16.mxu0 %v890_v0  ;;  %850 = vmatprep.subr.bf16.mxu1 %v890_v0  ;;  %v893_v3 = vld [vmem:[%s985_s22 + $0x8] sm:$0xff]   ;;  %v895_v5 = vld [vmem:[%s985_s22 + $0x10] sm:$0xff]   ;;  %s373_s9 = scalar_lea.vmem %s1035_s4, %s819_s23 }
  0x13   : > { %823 = vmatpush3.bf16.msra.mxu0 %v891_v1  ;;  %858 = vmatpush3.bf16.msra.mxu1 %v891_v1  ;;  %v896_v6 = vld [vmem:[%s985_s22 + $0x58] sm:$0xff]   ;;  %v898_v8 = vld [vmem:[%s985_s22 + $0x60] sm:$0xff]   ;;  %v900_v10 = vld [vmem:[%s985_s22 + $0x68] sm:$0xff]  }
  0x14   : > { %824 = vmatprep.subr.bf16.mxu0 %v892_v2  ;;  %851 = vmatprep.subr.bf16.mxu1 %v892_v2  ;;  %v897_v7 = vld [vmem:[%s985_s22 + $0x18] sm:$0xff]   ;;  %v899_v9 = vld [vmem:[%s985_s22 + $0x20] sm:$0xff]   ;;  %v901_v13 = vld [vmem:[%s985_s22 + $0x28] sm:$0xff]  }
  0x15   : > { %v908_v11 = vld [vmem:[%s334_s26 + $0x4] ss:$8 sps:$4 sm:$0xff]   ;;  %v911_v12 = vld [vmem:[%s334_s26 + $0x14] ss:$8 sps:$4 sm:$0xff]   ;;  %v906_v18 = vld [vmem:[%s334_s26] ss:$8 sps:$4 sm:$0xff]  }
  0x16   : > { %v902_v14 = vld [vmem:[%s985_s22 + $0x70] sm:$0xff]   ;;  %572 = vmatprep.mubr.bf16.mxu0 %v908_v11  ;;  %580 = vmatprep.mubr.bf16.mxu1 %v911_v12  ;;  %v904_v16 = vld [vmem:[%s985_s22 + $0x78] sm:$0xff]   ;;  %v815_v23 = vld [vmem:[%s355_s29] ss:$0 sm:$0xff] }
  0x17   : > { %825 = vmatpush3.bf16.msra.mxu0 %v893_v3  ;;  %859 = vmatpush3.bf16.msra.mxu1 %v893_v3  ;;  %v903_v15 = vld [vmem:[%s985_s22 + $0x30] sm:$0xff]   ;;  %v905_v17 = vld [vmem:[%s985_s22 + $0x38] sm:$0xff]   ;;  %v816_v29 = vld [vmem:[%s361_s6] ss:$0 sm:$0xff] }
  0x18   : > { %826 = vmatprep.subr.bf16.mxu0 %v894_v4  ;;  %852 = vmatprep.subr.bf16.mxu1 %v894_v4  ;;  %v909_v19 = vld [vmem:[%s334_s26 + $0x10] ss:$8 sps:$4 sm:$0xff]  }
  0x1b   : > { %827 = vmatpush3.bf16.msra.mxu0 %v895_v5  ;;  %860 = vmatpush3.bf16.msra.mxu1 %v895_v5 }
  0x1c   : > { %828 = vmatprep.subr.bf16.mxu0 %v896_v6  ;;  %853 = vmatprep.subr.bf16.mxu1 %v896_v6 }
  0x1f   : > { %829 = vmatpush3.bf16.msra.mxu0 %v897_v7  ;;  %861 = vmatpush3.bf16.msra.mxu1 %v897_v7 }
  0x20   : > { %830 = vmatprep.subr.bf16.mxu0 %v898_v8  ;;  %854 = vmatprep.subr.bf16.mxu1 %v898_v8 }
  0x23   : > { %831 = vmatpush3.bf16.msra.mxu0 %v899_v9  ;;  %862 = vmatpush3.bf16.msra.mxu1 %v899_v9 }
  0x24   : > { %832 = vmatprep.subr.bf16.mxu0 %v900_v10  ;;  %855 = vmatprep.subr.bf16.mxu1 %v900_v10 }
  0x27   : > { %833 = vmatpush3.bf16.msra.mxu0 %v901_v13  ;;  %863 = vmatpush3.bf16.msra.mxu1 %v901_v13 }
  0x28   : > { %834 = vmatprep.subr.bf16.mxu0 %v902_v14  ;;  %856 = vmatprep.subr.bf16.mxu1 %v902_v14 }
  0x2b   : > { %835 = vmatpush3.bf16.msra.mxu0 %v903_v15  ;;  %864 = vmatpush3.bf16.msra.mxu1 %v903_v15 }
  0x2c   : > { %836 = vmatprep.subr.bf16.mxu0 %v904_v16  ;;  %857 = vmatprep.subr.bf16.mxu1 %v904_v16 }
  0x2f   : > { %837 = vmatpush3.bf16.msra.mxu0 %v905_v17  ;;  %865 = vmatpush3.bf16.msra.mxu1 %v905_v17 }
  0x32   : > { %573 = vmatmul.mubr.bf16.vlgmr.msra.gmra.mrb[0].mxu0 %v906_v18  ;;  %581 = vmatmul.mubr.bf16.vlgmr.msra.gmra.mrb[0].mxu1 %v909_v19 }
 0x105   : > { %v838_v20 = vpop.f32.mrb[0].mxu0  ;;  %v844_v21 = vpop.f32.mrb[0].mxu1 }
 0x106   : > { %v839_v22 = vpop.f32.mrb[1].mxu0  ;;  %v845_v24 = vpop.f32.mrb[1].mxu1 }
 0x107   : > { %v840_v25 = vadd.f32 %v839_v22, %v838_v20  ;;  %v846_v26 = vadd.f32 %v845_v24, %v844_v21  ;;  %v841_v27 = vpop.f32.mrb[2].mxu0  ;;  %v847_v28 = vpop.f32.mrb[2].mxu1 }
 0x108   : > { %v842_v30 = vpop.f32.mrb[3].mxu0  ;;  %v848_v31 = vpop.f32.mrb[3].mxu1 }
 0x109   : > { %v611_v32 = vmul.f32 %v840_v25, %v815_v23  ;;  %v613_v33 = vmul.f32 %v846_v26, %v815_v23  ;;  %v843_v34 = vadd.f32 %v842_v30, %v841_v27  ;;  %v849_v35 = vadd.f32 %v848_v31, %v847_v28 }
 0x10b   : > { %v622_v36 = vadd.f32 %v816_v29, %v611_v32  ;;  %v624_v37 = vadd.f32 %v816_v29, %v613_v33  ;;  %v612_v38 = vmul.f32 %v843_v34, %v815_v23  ;;  %v614_v39 = vmul.f32 %v849_v35, %v815_v23 }
 0x10d   : > { %626 = vst [vmem:[%s373_s9] sm:$0xff] %v622_v36  ;;  %628 = vst [vmem:[%s373_s9 + $0x10] sm:$0xff] %v624_v37  ;;  %v623_v40 = vadd.f32 %v816_v29, %v612_v38  ;;  %v625_v41 = vadd.f32 %v816_v29, %v614_v39 }
 0x10f   : > { %627 = vst [vmem:[%s373_s9 + $0x8] sm:$0xff] %v623_v40  ;;  %629 = vst [vmem:[%s373_s9 + $0x18] sm:$0xff] %v625_v41 }
 0x110 PF: > { %s14_s17 = sadd.s32 1, %s934_s17   ;;  %s1036_s15 = smov %s930_s16 }
 0x111   : > { %p11_p5 = scmp.ge.s32.totalorder %s14_s17, 6   ;;  %s1037_s16 = smov %s1039_s18 }
 0x113   :  { %13 = sbr.rel (!%p11_p5) target bundleno = 2 (0x2), region = 83 }

// kernel: main_model_forward.18
= control target key start
LH: loop header
LB: loop body
LE: loop exit
PB: predicated region body
PF: predicated region fallthrough
CT: control target
= control target key end

     0   :  { %s1080_s15 = smov 0   ;;  %s1082_s16 = smov 0   ;;  %s1166_s0 = inlined_call_operand.vmem [shape: bf16[4,128,128], index: 0, kind: input, shape index: {}]   ;;  %s1167_s1 = inlined_call_operand.vmem [shape: bf16[4,128,128], index: 1, kind: input, shape index: {}]   ;;  %s1168_s2 = inlined_call_operand.vmem [shape: f32[4,1,128], index: 2, kind: input, shape index: {}]   ;;  %s1169_s3 = inlined_call_operand.vmem [shape: f32[4,1,128], index: 3, kind: input, shape index: {}]   ;;  %s1170_s4 = inlined_call_operand.vmem [shape: f32[4,128,128], index: 4, kind: output, shape index: {}]  }
   0x1   :  { %s1084_s17 = smov 0  }
   0x2 LB: > { %s40_s18 = sadd.s32 1, %s1049_s16  ;;  %p897_p0 = scmp.ge.s32.totalorder %s1053_s17, 1  ;;  %s1053_s17 = sphi %s1084_s17, %s14_s17   ;;  %s1049_s16 = sphi %s1082_s16, %s1172_s16   ;;  %s1045_s15 = sphi %s1080_s15, %s1171_s15  }
   0x3   : > { %p42_p1 = scmp.ge.s32.totalorder %s40_s18, 4  ;;  %p252_p2 = scmp.lt.s32.totalorder %s1053_s17, 5 }
   0x5   : > { %s1174_s18 = smov (%p42_p1, %s40_s18), 0  ;;  %p253_p3 = pnand %p897_p0, %p252_p2 }
   0x6   : > { %p317_p4 = scmp.lt.s32.totalorder (!%p253_p3), %s1045_s15, 3 }
   0x7   : > { %256 = sbr.rel (%p253_p3) target bundleno = 278 (0x116), region = 36 }
   0xe   : > { %s1176_s15 = smov (!%p317_p4, %s1045_s15), 3 }
   0xf   : > { %s924_s19 = sshll.u32 %s1176_s15, 6  ;;  %s347_s28 = scalar_lea.vmem %s1168_s2, %s1176_s15 }
  0x10   : > { %s1104_s22 = scalar_lea.vmem %s1167_s1, %s924_s19  ;;  %s1112_s25 = scalar_lea.vmem %s1166_s0, %s924_s19  ;;  %v920_v16 = vld [vmem:[%s347_s28] ss:$0 sm:$0xff] }
  0x11   : > { %v1015_v0 = vld [vmem:[%s1104_s22] sm:$0xff]   ;;  %v1016_v1 = vld [vmem:[%s1104_s22 + $0x8] sm:$0xff]   ;;  %v1017_v2 = vld [vmem:[%s1104_s22 + $0x10] sm:$0xff]   ;;  %s353_s5 = scalar_lea.vmem %s1169_s3, %s1176_s15  ;;  %s926_s6 = sshll.u32 %s1176_s15, 7 }
  0x12   : > { %943 = vmatprep.subr.bf16.mxu0 %v1015_v0  ;;  %975 = vmatprep.subr.bf16.mxu1 %v1015_v0  ;;  %v1018_v3 = vld [vmem:[%s1104_s22 + $0x18] sm:$0xff]   ;;  %v1023_v4 = vld [vmem:[%s1112_s25] sm:$0xff]   ;;  %v1020_v7 = vld [vmem:[%s1104_s22 + $0x28] sm:$0xff]   ;;  %s1139_s9 = scalar_lea.vmem %s1170_s4, %s926_s6 }
  0x13   : > { %944 = vmatpush3.bf16.msra.mxu0 %v1015_v0  ;;  %983 = vmatpush3.bf16.msra.mxu1 %v1015_v0  ;;  %v1024_v5 = vld [vmem:[%s1112_s25 + $0x20] sm:$0xff]   ;;  %v1021_v8 = vld [vmem:[%s1104_s22 + $0x30] sm:$0xff]   ;;  %v1022_v9 = vld [vmem:[%s1104_s22 + $0x38] sm:$0xff]  }
  0x14   : > { %945 = vmatprep.subr.bf16.mxu0 %v1016_v1  ;;  %976 = vmatprep.subr.bf16.mxu1 %v1016_v1  ;;  %v1019_v6 = vld [vmem:[%s1104_s22 + $0x20] sm:$0xff]   ;;  %v1025_v10 = vld [vmem:[%s1112_s25 + $0x8] sm:$0xff]   ;;  %v1027_v12 = vld [vmem:[%s1112_s25 + $0x10] sm:$0xff]  }
  0x15   : > { %959 = vmatprep.mubr.bf16.mxu0 %v1023_v4  ;;  %967 = vmatprep.mubr.bf16.mxu1 %v1024_v5  ;;  %v1026_v11 = vld [vmem:[%s1112_s25 + $0x28] sm:$0xff]   ;;  %v1028_v13 = vld [vmem:[%s1112_s25 + $0x30] sm:$0xff]   ;;  %v1029_v14 = vld [vmem:[%s1112_s25 + $0x18] sm:$0xff]  }
  0x16   : > { %v1030_v15 = vld [vmem:[%s1112_s25 + $0x38] sm:$0xff]   ;;  %v921_v18 = vld [vmem:[%s353_s5] ss:$0 sm:$0xff] }
  0x17   : > { %946 = vmatpush3.bf16.msra.mxu0 %v1016_v1  ;;  %984 = vmatpush3.bf16.msra.mxu1 %v1016_v1 }
  0x18   : > { %947 = vmatprep.subr.bf16.mxu0 %v1017_v2  ;;  %977 = vmatprep.subr.bf16.mxu1 %v1017_v2 }
  0x1b   : > { %948 = vmatpush3.bf16.msra.mxu0 %v1017_v2  ;;  %985 = vmatpush3.bf16.msra.mxu1 %v1017_v2 }
  0x1c   : > { %949 = vmatprep.subr.bf16.mxu0 %v1018_v3  ;;  %978 = vmatprep.subr.bf16.mxu1 %v1018_v3 }
  0x1f   : > { %950 = vmatpush3.bf16.msra.mxu0 %v1018_v3  ;;  %986 = vmatpush3.bf16.msra.mxu1 %v1018_v3 }
  0x20   : > { %951 = vmatprep.subr.bf16.mxu0 %v1019_v6  ;;  %979 = vmatprep.subr.bf16.mxu1 %v1019_v6 }
  0x23   : > { %952 = vmatpush3.bf16.msra.mxu0 %v1019_v6  ;;  %987 = vmatpush3.bf16.msra.mxu1 %v1019_v6 }
  0x24   : > { %953 = vmatprep.subr.bf16.mxu0 %v1020_v7  ;;  %980 = vmatprep.subr.bf16.mxu1 %v1020_v7 }
  0x27   : > { %954 = vmatpush3.bf16.msra.mxu0 %v1020_v7  ;;  %988 = vmatpush3.bf16.msra.mxu1 %v1020_v7 }
  0x28   : > { %955 = vmatprep.subr.bf16.mxu0 %v1021_v8  ;;  %981 = vmatprep.subr.bf16.mxu1 %v1021_v8 }
  0x2b   : > { %956 = vmatpush3.bf16.msra.mxu0 %v1021_v8  ;;  %989 = vmatpush3.bf16.msra.mxu1 %v1021_v8 }
  0x2c   : > { %957 = vmatprep.subr.bf16.mxu0 %v1022_v9  ;;  %982 = vmatprep.subr.bf16.mxu1 %v1022_v9 }
  0x2f   : > { %958 = vmatpush3.bf16.msra.mxu0 %v1022_v9  ;;  %990 = vmatpush3.bf16.msra.mxu1 %v1022_v9 }
  0x32   : > { %960 = vmatmul.mubr.bf16.vlgmr.msra.gmra.mrb[0].mxu0 %v1025_v10  ;;  %968 = vmatmul.mubr.bf16.vlgmr.msra.gmra.mrb[0].mxu1 %v1026_v11 }
  0x33   : > { %963 = vmatprep.mubr.bf16.mxu0 %v1027_v12  ;;  %971 = vmatprep.mubr.bf16.mxu1 %v1028_v13 }
  0x3a   : > { %964 = vmatmul.mubr.bf16.gmra.mrb[4].mxu0 %v1029_v14  ;;  %972 = vmatmul.mubr.bf16.gmra.mrb[4].mxu1 %v1030_v15 }
 0x105   : > { %v961_v17 = vpop.f32.mrb[0].mxu0  ;;  %v969_v19 = vpop.f32.mrb[0].mxu1 }
 0x106   : > { %v689_v20 = vmul.f32 %v961_v17, %v920_v16  ;;  %v697_v21 = vmul.f32 %v969_v19, %v920_v16  ;;  %v566_v22 = vpop.f32.mrb[1].mxu0  ;;  %v598_v23 = vpop.f32.mrb[1].mxu1 }
 0x107   : > { %v687_v24 = vmul.f32 %v920_v16, %v566_v22  ;;  %v695_v25 = vmul.f32 %v920_v16, %v598_v23  ;;  %v962_v26 = vpop.f32.mrb[2].mxu0  ;;  %v970_v27 = vpop.f32.mrb[2].mxu1 }
 0x108   : > { %v712_v28 = vadd.f32 %v921_v18, %v689_v20  ;;  %v720_v29 = vadd.f32 %v921_v18, %v697_v21  ;;  %v690_v30 = vmul.f32 %v962_v26, %v920_v16  ;;  %v698_v31 = vmul.f32 %v970_v27, %v920_v16  ;;  %v569_v32 = vpop.f32.mrb[3].mxu0  ;;  %v601_v33 = vpop.f32.mrb[3].mxu1 }
 0x109   : > { %v710_v34 = vadd.f32 %v921_v18, %v687_v24  ;;  %v718_v35 = vadd.f32 %v921_v18, %v695_v25  ;;  %v688_v36 = vmul.f32 %v920_v16, %v569_v32  ;;  %v696_v37 = vmul.f32 %v920_v16, %v601_v33 }
 0x10a   : > { %728 = vst [vmem:[%s1139_s9 + $0x10] sm:$0xff] %v712_v28  ;;  %736 = vst [vmem:[%s1139_s9 + $0x50] sm:$0xff] %v720_v29  ;;  %v713_v38 = vadd.f32 %v921_v18, %v690_v30  ;;  %v721_v39 = vadd.f32 %v921_v18, %v698_v31 }
 0x10b   : > { %726 = vst [vmem:[%s1139_s9] sm:$0xff] %v710_v34  ;;  %734 = vst [vmem:[%s1139_s9 + $0x40] sm:$0xff] %v718_v35  ;;  %v711_v40 = vadd.f32 %v921_v18, %v688_v36  ;;  %v719_v41 = vadd.f32 %v921_v18, %v696_v37 }
 0x10c   : > { %729 = vst [vmem:[%s1139_s9 + $0x18] sm:$0xff] %v713_v38  ;;  %737 = vst [vmem:[%s1139_s9 + $0x58] sm:$0xff] %v721_v39 }
 0x10d   : > { %727 = vst [vmem:[%s1139_s9 + $0x8] sm:$0xff] %v711_v40  ;;  %735 = vst [vmem:[%s1139_s9 + $0x48] sm:$0xff] %v719_v41  ;;  %v965_v42 = vpop.f32.mrb[4].mxu0  ;;  %v973_v43 = vpop.f32.mrb[4].mxu1 }
 0x10e   : > { %v693_v44 = vmul.f32 %v965_v42, %v920_v16  ;;  %v701_v45 = vmul.f32 %v973_v43, %v920_v16  ;;  %v582_v46 = vpop.f32.mrb[5].mxu0  ;;  %v614_v47 = vpop.f32.mrb[5].mxu1 }
 0x10f   : > { %v691_v48 = vmul.f32 %v920_v16, %v582_v46  ;;  %v699_v49 = vmul.f32 %v920_v16, %v614_v47  ;;  %v966_v50 = vpop.f32.mrb[6].mxu0  ;;  %v974_v51 = vpop.f32.mrb[6].mxu1 }
 0x110   : > { %v716_v52 = vadd.f32 %v921_v18, %v693_v44  ;;  %v724_v53 = vadd.f32 %v921_v18, %v701_v45  ;;  %v694_v54 = vmul.f32 %v966_v50, %v920_v16  ;;  %v702_v55 = vmul.f32 %v974_v51, %v920_v16  ;;  %v585_v56 = vpop.f32.mrb[7].mxu0  ;;  %v617_v57 = vpop.f32.mrb[7].mxu1 }
 0x111   : > { %v714_v58 = vadd.f32 %v921_v18, %v691_v48  ;;  %v722_v59 = vadd.f32 %v921_v18, %v699_v49  ;;  %v692_v60 = vmul.f32 %v920_v16, %v585_v56  ;;  %v700_v61 = vmul.f32 %v920_v16, %v617_v57 }
 0x112   : > { %732 = vst [vmem:[%s1139_s9 + $0x30] sm:$0xff] %v716_v52  ;;  %740 = vst [vmem:[%s1139_s9 + $0x70] sm:$0xff] %v724_v53  ;;  %v717_v62 = vadd.f32 %v921_v18, %v694_v54  ;;  %v725_v63 = vadd.f32 %v921_v18, %v702_v55 }
 0x113   : > { %730 = vst [vmem:[%s1139_s9 + $0x20] sm:$0xff] %v714_v58  ;;  %738 = vst [vmem:[%s1139_s9 + $0x60] sm:$0xff] %v722_v59  ;;  %v715_v0 = vadd.f32 %v921_v18, %v692_v60  ;;  %v723_v1 = vadd.f32 %v921_v18, %v700_v61 }
 0x114   : > { %733 = vst [vmem:[%s1139_s9 + $0x38] sm:$0xff] %v717_v62  ;;  %741 = vst [vmem:[%s1139_s9 + $0x78] sm:$0xff] %v725_v63 }
 0x115   : > { %731 = vst [vmem:[%s1139_s9 + $0x28] sm:$0xff] %v715_v0  ;;  %739 = vst [vmem:[%s1139_s9 + $0x68] sm:$0xff] %v723_v1 }
 0x116 PF: > { %s14_s17 = sadd.s32 1, %s1053_s17   ;;  %s1171_s15 = smov %s1049_s16 }
 0x117   : > { %p11_p5 = scmp.ge.s32.totalorder %s14_s17, 6   ;;  %s1172_s16 = smov %s1174_s18 }
 0x119   :  { %13 = sbr.rel (!%p11_p5) target bundleno = 2 (0x2), region = 83 }

// kernel: main_model_forward.19
= control target key start
LH: loop header
LB: loop body
LE: loop exit
PB: predicated region body
PF: predicated region fallthrough
CT: control target
= control target key end

     0   :  { %s1507_s15 = smov 0   ;;  %s1509_s16 = smov 0   ;;  %s1706_s0 = inlined_call_operand.vmem [shape: bf16[4,512,128], index: 0, kind: input, shape index: {}]   ;;  %s1707_s1 = inlined_call_operand.vmem [shape: bf16[4,128,128], index: 1, kind: input, shape index: {}]   ;;  %s1708_s2 = inlined_call_operand.vmem [shape: f32[4,1,128], index: 2, kind: input, shape index: {}]   ;;  %s1709_s3 = inlined_call_operand.vmem [shape: f32[4,1,128], index: 3, kind: input, shape index: {}]   ;;  %s1710_s4 = inlined_call_operand.vmem [shape: f32[4,512,128], index: 4, kind: output, shape index: {}]  }
   0x1   :  { %s1511_s17 = smov 0   ;;  %s1513_s18 = smov 0  }
   0x2   :  { %s1515_s19 = smov 0  }
   0x3 LB: > { %s36_s20 = sadd.s32 1, %s1472_s17  ;;  %s40_s21 = sadd.s32 1, %s1476_s18  ;;  %s1480_s19 = sphi %s1515_s19, %s14_s19   ;;  %s1476_s18 = sphi %s1513_s18, %s1714_s18   ;;  %s1472_s17 = sphi %s1511_s17, %s1713_s17   ;;  %s1468_s16 = sphi %s1509_s16, %s1712_s16   ;;  %s1464_s15 = sphi %s1507_s15, %s1711_s15  }
   0x4   : > { %p38_p0 = scmp.ge.s32.totalorder %s36_s20, 2  ;;  %p1188_p1 = scmp.ge.s32.totalorder %s1480_s19, 1 }
   0x5   : > { %p252_p2 = scmp.lt.s32.totalorder %s1480_s19, 9 }
   0x6   : > { %s1716_s20 = smov (%p38_p0, %s36_s20), 0  ;;  %s1718_s21 = smov (!%p38_p0, %s40_s21), %s1476_s18 }
   0x7   : > { %p253_p3 = pnand %p1188_p1, %p252_p2  ;;  %p42_p4 = scmp.ge.s32.totalorder %s1718_s21, 4 }
   0x8   : > { %s1189_s22 = sshll.u32 (!%p253_p3), %s1464_s15, 5  ;;  %p317_p5 = scmp.lt.s32.totalorder (!%p253_p3), %s1468_s16, 3 }
   0x9   : > { %s1720_s21 = smov (%p42_p4, %s1718_s21), 0  ;;  %256 = sbr.rel (%p253_p3) target bundleno = 314 (0x13a), region = 36 }
   0xa   : > { %p319_p6 = scmp.lt.s32.totalorder (!%p253_p3), %s1189_s22, 63 }
  0x10   : > { %s1722_s16 = smov (!%p317_p5, %s1468_s16), 3  ;;  %s1724_s22 = smov (!%p319_p6, %s1189_s22), 63 }
  0x11   : > { %s1190_s23 = sshll.u32 %s1722_s16, 6  ;;  %s347_s8 = scalar_lea.vmem %s1708_s2, %s1722_s16 }
  0x12   : > { %s1543_s26 = scalar_lea.vmem %s1707_s1, %s1190_s23  ;;  %s1545_s27 = sadd.s32 %s1190_s23, %s1724_s22  ;;  %v1585_v24 = vld [vmem:[%s347_s8] ss:$0 sm:$0xff] }
  0x13   : > { %v1354_v0 = vld [vmem:[%s1543_s26] sm:$0xff]   ;;  %v1355_v1 = vld [vmem:[%s1543_s26 + $0x8] sm:$0xff]   ;;  %s1191_s28 = sshll.u32 %s1545_s27, 2  ;;  %v1356_v2 = vld [vmem:[%s1543_s26 + $0x10] sm:$0xff]   ;;  %s353_s11 = scalar_lea.vmem %s1709_s3, %s1722_s16 }
  0x14   : > { %1250 = vmatprep.subr.bf16.mxu0 %v1354_v0  ;;  %1298 = vmatprep.subr.bf16.mxu1 %v1354_v0  ;;  %s1554_s5 = scalar_lea.vmem %s1706_s0, %s1191_s28  ;;  %v1357_v3 = vld [vmem:[%s1543_s26 + $0x18] sm:$0xff]   ;;  %v1358_v6 = vld [vmem:[%s1543_s26 + $0x20] sm:$0xff]   ;;  %v1359_v7 = vld [vmem:[%s1543_s26 + $0x28] sm:$0xff]   ;;  %s1196_s12 = sshll.u32 %s1545_s27, 3 }
  0x15   : > { %1251 = vmatpush3.bf16.msra.mxu0 %v1354_v0  ;;  %1306 = vmatpush3.bf16.msra.mxu1 %v1354_v0  ;;  %v1362_v4 = vld [vmem:[%s1554_s5] sm:$0xff]   ;;  %v1360_v8 = vld [vmem:[%s1543_s26 + $0x30] sm:$0xff]   ;;  %v1361_v9 = vld [vmem:[%s1543_s26 + $0x38] sm:$0xff]   ;;  %s1619_s15 = scalar_lea.vmem %s1710_s4, %s1196_s12 }
  0x16   : > { %1252 = vmatprep.subr.bf16.mxu0 %v1355_v1  ;;  %1299 = vmatprep.subr.bf16.mxu1 %v1355_v1  ;;  %v1363_v5 = vld [vmem:[%s1554_s5 + $0x40] sm:$0xff]   ;;  %v1364_v10 = vld [vmem:[%s1554_s5 + $0x8] sm:$0xff]   ;;  %v1366_v12 = vld [vmem:[%s1554_s5 + $0x10] sm:$0xff]  }
  0x17   : > { %1266 = vmatprep.mubr.bf16.mxu0 %v1362_v4  ;;  %1282 = vmatprep.mubr.bf16.mxu1 %v1363_v5  ;;  %v1365_v11 = vld [vmem:[%s1554_s5 + $0x48] sm:$0xff]   ;;  %v1367_v13 = vld [vmem:[%s1554_s5 + $0x50] sm:$0xff]   ;;  %v1368_v14 = vld [vmem:[%s1554_s5 + $0x18] sm:$0xff]  }
  0x18   : > { %v1369_v15 = vld [vmem:[%s1554_s5 + $0x58] sm:$0xff]   ;;  %v1370_v16 = vld [vmem:[%s1554_s5 + $0x20] sm:$0xff]   ;;  %v1372_v18 = vld [vmem:[%s1554_s5 + $0x28] sm:$0xff]  }
  0x19   : > { %1253 = vmatpush3.bf16.msra.mxu0 %v1355_v1  ;;  %1307 = vmatpush3.bf16.msra.mxu1 %v1355_v1  ;;  %v1371_v17 = vld [vmem:[%s1554_s5 + $0x60] sm:$0xff]   ;;  %v1373_v19 = vld [vmem:[%s1554_s5 + $0x68] sm:$0xff]   ;;  %v1374_v20 = vld [vmem:[%s1554_s5 + $0x30] sm:$0xff]  }
  0x1a   : > { %1254 = vmatprep.subr.bf16.mxu0 %v1356_v2  ;;  %1300 = vmatprep.subr.bf16.mxu1 %v1356_v2  ;;  %v1375_v21 = vld [vmem:[%s1554_s5 + $0x70] sm:$0xff]   ;;  %v1376_v22 = vld [vmem:[%s1554_s5 + $0x38] sm:$0xff]   ;;  %v1587_v25 = vld [vmem:[%s353_s11] ss:$0 sm:$0xff] }
  0x1b   : > { %v1377_v23 = vld [vmem:[%s1554_s5 + $0x78] sm:$0xff]  }
  0x1d   : > { %1255 = vmatpush3.bf16.msra.mxu0 %v1356_v2  ;;  %1308 = vmatpush3.bf16.msra.mxu1 %v1356_v2 }
  0x1e   : > { %1256 = vmatprep.subr.bf16.mxu0 %v1357_v3  ;;  %1301 = vmatprep.subr.bf16.mxu1 %v1357_v3 }
  0x21   : > { %1257 = vmatpush3.bf16.msra.mxu0 %v1357_v3  ;;  %1309 = vmatpush3.bf16.msra.mxu1 %v1357_v3 }
  0x22   : > { %1258 = vmatprep.subr.bf16.mxu0 %v1358_v6  ;;  %1302 = vmatprep.subr.bf16.mxu1 %v1358_v6 }
  0x25   : > { %1259 = vmatpush3.bf16.msra.mxu0 %v1358_v6  ;;  %1310 = vmatpush3.bf16.msra.mxu1 %v1358_v6 }
  0x26   : > { %1260 = vmatprep.subr.bf16.mxu0 %v1359_v7  ;;  %1303 = vmatprep.subr.bf16.mxu1 %v1359_v7 }
  0x29   : > { %1261 = vmatpush3.bf16.msra.mxu0 %v1359_v7  ;;  %1311 = vmatpush3.bf16.msra.mxu1 %v1359_v7 }
  0x2a   : > { %1262 = vmatprep.subr.bf16.mxu0 %v1360_v8  ;;  %1304 = vmatprep.subr.bf16.mxu1 %v1360_v8 }
  0x2d   : > { %1263 = vmatpush3.bf16.msra.mxu0 %v1360_v8  ;;  %1312 = vmatpush3.bf16.msra.mxu1 %v1360_v8 }
  0x2e   : > { %1264 = vmatprep.subr.bf16.mxu0 %v1361_v9  ;;  %1305 = vmatprep.subr.bf16.mxu1 %v1361_v9 }
  0x31   : > { %1265 = vmatpush3.bf16.msra.mxu0 %v1361_v9  ;;  %1313 = vmatpush3.bf16.msra.mxu1 %v1361_v9 }
  0x34   : > { %1267 = vmatmul.mubr.bf16.vlgmr.msra.gmra.mrb[0].mxu0 %v1364_v10  ;;  %1283 = vmatmul.mubr.bf16.vlgmr.msra.gmra.mrb[0].mxu1 %v1365_v11 }
  0x35   : > { %1270 = vmatprep.mubr.bf16.mxu0 %v1366_v12  ;;  %1286 = vmatprep.mubr.bf16.mxu1 %v1367_v13 }
  0x3c   : > { %1271 = vmatmul.mubr.bf16.gmra.mrb[4].mxu0 %v1368_v14  ;;  %1287 = vmatmul.mubr.bf16.gmra.mrb[4].mxu1 %v1369_v15 }
  0x3d   : > { %1274 = vmatprep.mubr.bf16.mxu0 %v1370_v16  ;;  %1290 = vmatprep.mubr.bf16.mxu1 %v1371_v17 }
  0x44   : > { %1275 = vmatmul.mubr.bf16.gmra.mrb[8].mxu0 %v1372_v18  ;;  %1291 = vmatmul.mubr.bf16.gmra.mrb[8].mxu1 %v1373_v19 }
  0x45   : > { %1278 = vmatprep.mubr.bf16.mxu0 %v1374_v20  ;;  %1294 = vmatprep.mubr.bf16.mxu1 %v1375_v21 }
  0x4c   : > { %1279 = vmatmul.mubr.bf16.gmra.mrb[12].mxu0 %v1376_v22  ;;  %1295 = vmatmul.mubr.bf16.gmra.mrb[12].mxu1 %v1377_v23 }
 0x107   : > { %v1268_v26 = vpop.f32.mrb[0].mxu0  ;;  %v1284_v27 = vpop.f32.mrb[0].mxu1 }
 0x108   : > { %v897_v28 = vmul.f32 %v1268_v26, %v1585_v24  ;;  %v913_v29 = vmul.f32 %v1284_v27, %v1585_v24  ;;  %v662_v30 = vpop.f32.mrb[1].mxu0  ;;  %v726_v31 = vpop.f32.mrb[1].mxu1 }
 0x109   : > { %v895_v32 = vmul.f32 %v1585_v24, %v662_v30  ;;  %v911_v33 = vmul.f32 %v1585_v24, %v726_v31  ;;  %v1269_v34 = vpop.f32.mrb[2].mxu0  ;;  %v1285_v35 = vpop.f32.mrb[2].mxu1 }
 0x10a   : > { %v936_v36 = vadd.f32 %v1587_v25, %v897_v28  ;;  %v952_v37 = vadd.f32 %v1587_v25, %v913_v29  ;;  %v898_v38 = vmul.f32 %v1269_v34, %v1585_v24  ;;  %v914_v39 = vmul.f32 %v1285_v35, %v1585_v24  ;;  %v665_v40 = vpop.f32.mrb[3].mxu0  ;;  %v729_v41 = vpop.f32.mrb[3].mxu1 }
 0x10b   : > { %v934_v42 = vadd.f32 %v1587_v25, %v895_v32  ;;  %v950_v43 = vadd.f32 %v1587_v25, %v911_v33  ;;  %v896_v44 = vmul.f32 %v1585_v24, %v665_v40  ;;  %v912_v45 = vmul.f32 %v1585_v24, %v729_v41 }
 0x10c   : > { %1378 = vtanh.f32 %v936_v36  ;;  %v937_v46 = vadd.f32 %v1587_v25, %v898_v38  ;;  %v953_v47 = vadd.f32 %v1587_v25, %v914_v39 }
 0x10d   : > { %1380 = vtanh.f32 %v952_v37  ;;  %v935_v48 = vadd.f32 %v1587_v25, %v896_v44  ;;  %v951_v49 = vadd.f32 %v1587_v25, %v912_v45 }
 0x10e   : > { %1382 = vtanh.f32 %v934_v42 }
 0x10f   : > { %1384 = vtanh.f32 %v950_v43  ;;  %v1272_v50 = vpop.f32.mrb[4].mxu0  ;;  %v1288_v51 = vpop.f32.mrb[4].mxu1 }
 0x110   : > { %1386 = vtanh.f32 %v937_v46  ;;  %v901_v52 = vmul.f32 %v1272_v50, %v1585_v24  ;;  %v917_v53 = vmul.f32 %v1288_v51, %v1585_v24  ;;  %v678_v54 = vpop.f32.mrb[5].mxu0  ;;  %v742_v55 = vpop.f32.mrb[5].mxu1 }
 0x111   : > { %1388 = vtanh.f32 %v953_v47  ;;  %v899_v56 = vmul.f32 %v1585_v24, %v678_v54  ;;  %v915_v57 = vmul.f32 %v1585_v24, %v742_v55  ;;  %v1273_v58 = vpop.f32.mrb[6].mxu0  ;;  %v1289_v59 = vpop.f32.mrb[6].mxu1 }
 0x112   : > { %1390 = vtanh.f32 %v935_v48  ;;  %v940_v60 = vadd.f32 %v1587_v25, %v901_v52  ;;  %v956_v61 = vadd.f32 %v1587_v25, %v917_v53  ;;  %v902_v62 = vmul.f32 %v1273_v58, %v1585_v24  ;;  %v681_v63 = vpop.f32.mrb[7].mxu0  ;;  %v745_v0 = vpop.f32.mrb[7].mxu1 }
 0x113   : > { %1392 = vtanh.f32 %v951_v49  ;;  %v938_v1 = vadd.f32 %v1587_v25, %v899_v56  ;;  %v954_v2 = vadd.f32 %v1587_v25, %v915_v57  ;;  %v918_v3 = vmul.f32 %v1289_v59, %v1585_v24 }
 0x114   : > { %1394 = vtanh.f32 %v940_v60  ;;  %v941_v4 = vadd.f32 %v1587_v25, %v902_v62  ;;  %v900_v5 = vmul.f32 %v1585_v24, %v681_v63  ;;  %v916_v6 = vmul.f32 %v1585_v24, %v745_v0 }
 0x115   : > { %1396 = vtanh.f32 %v956_v61  ;;  %v957_v7 = vadd.f32 %v1587_v25, %v918_v3 }
 0x116   : > { %v1379_v8 = vpop.eup %1378  ;;  %1398 = vtanh.f32 %v938_v1  ;;  %v939_v9 = vadd.f32 %v1587_v25, %v900_v5  ;;  %v955_v10 = vadd.f32 %v1587_v25, %v916_v6 }
 0x117   : > { %v1381_v11 = vpop.eup %1380  ;;  %1000 = vst [vmem:[%s1619_s15 + $0x10] sm:$0xff] %v1379_v8  ;;  %1400 = vtanh.f32 %v954_v2  ;;  %v1276_v12 = vpop.f32.mrb[8].mxu0 }
 0x118   : > { %v1292_v13 = vpop.f32.mrb[8].mxu1  ;;  %v1383_v14 = vpop.eup %1382  ;;  %1016 = vst [vmem:[%s1619_s15 + $0x90] sm:$0xff] %v1381_v11  ;;  %1402 = vtanh.f32 %v941_v4  ;;  %v905_v15 = vmul.f32 %v1276_v12, %v1585_v24 }
 0x119   : > { %v921_v16 = vmul.f32 %v1292_v13, %v1585_v24  ;;  %v694_v17 = vpop.f32.mrb[9].mxu0  ;;  %v758_v18 = vpop.f32.mrb[9].mxu1  ;;  %998 = vst [vmem:[%s1619_s15] sm:$0xff] %v1383_v14  ;;  %1404 = vtanh.f32 %v957_v7 }
 0x11a   : > { %v1385_v19 = vpop.eup %1384  ;;  %v903_v20 = vmul.f32 %v1585_v24, %v694_v17  ;;  %v919_v21 = vmul.f32 %v1585_v24, %v758_v18  ;;  %v1277_v22 = vpop.f32.mrb[10].mxu0  ;;  %1406 = vtanh.f32 %v939_v9  ;;  %v944_v27 = vadd.f32 %v1587_v25, %v905_v15 }
 0x11b   : > { %v1293_v23 = vpop.f32.mrb[10].mxu1  ;;  %v1387_v26 = vpop.eup %1386  ;;  %1014 = vst [vmem:[%s1619_s15 + $0x80] sm:$0xff] %v1385_v19  ;;  %v960_v28 = vadd.f32 %v1587_v25, %v921_v16  ;;  %v906_v29 = vmul.f32 %v1277_v22, %v1585_v24  ;;  %1408 = vtanh.f32 %v955_v10 }
 0x11c   : > { %v697_v30 = vpop.f32.mrb[11].mxu0  ;;  %v761_v31 = vpop.f32.mrb[11].mxu1  ;;  %1001 = vst [vmem:[%s1619_s15 + $0x18] sm:$0xff] %v1387_v26  ;;  %v942_v33 = vadd.f32 %v1587_v25, %v903_v20  ;;  %v958_v34 = vadd.f32 %v1587_v25, %v919_v21  ;;  %v922_v35 = vmul.f32 %v1293_v23, %v1585_v24  ;;  %1410 = vtanh.f32 %v944_v27 }
 0x11d   : > { %v1389_v32 = vpop.eup %1388  ;;  %v945_v37 = vadd.f32 %v1587_v25, %v906_v29  ;;  %v904_v38 = vmul.f32 %v1585_v24, %v697_v30  ;;  %v920_v39 = vmul.f32 %v1585_v24, %v761_v31  ;;  %1412 = vtanh.f32 %v960_v28 }
 0x11e   : > { %v1391_v36 = vpop.eup %1390  ;;  %1017 = vst [vmem:[%s1619_s15 + $0x98] sm:$0xff] %v1389_v32  ;;  %v961_v41 = vadd.f32 %v1587_v25, %v922_v35  ;;  %1414 = vtanh.f32 %v942_v33 }
 0x11f   : > { %v1393_v40 = vpop.eup %1392  ;;  %999 = vst [vmem:[%s1619_s15 + $0x8] sm:$0xff] %v1391_v36  ;;  %v943_v43 = vadd.f32 %v1587_v25, %v904_v38  ;;  %v959_v44 = vadd.f32 %v1587_v25, %v920_v39  ;;  %1416 = vtanh.f32 %v958_v34  ;;  %v1280_v46 = vpop.f32.mrb[12].mxu0 }
 0x120   : > { %v1395_v42 = vpop.eup %1394  ;;  %1015 = vst [vmem:[%s1619_s15 + $0x88] sm:$0xff] %v1393_v40  ;;  %v1296_v47 = vpop.f32.mrb[12].mxu1  ;;  %1418 = vtanh.f32 %v945_v37  ;;  %v909_v49 = vmul.f32 %v1280_v46, %v1585_v24 }
 0x121   : > { %v1397_v45 = vpop.eup %1396  ;;  %1004 = vst [vmem:[%s1619_s15 + $0x30] sm:$0xff] %v1395_v42  ;;  %v925_v50 = vmul.f32 %v1296_v47, %v1585_v24  ;;  %v710_v51 = vpop.f32.mrb[13].mxu0  ;;  %1420 = vtanh.f32 %v961_v41 }
 0x122   : > { %v1399_v48 = vpop.eup %1398  ;;  %1020 = vst [vmem:[%s1619_s15 + $0xb0] sm:$0xff] %v1397_v45  ;;  %v774_v52 = vpop.f32.mrb[13].mxu1  ;;  %v907_v54 = vmul.f32 %v1585_v24, %v710_v51  ;;  %1422 = vtanh.f32 %v943_v43  ;;  %v948_v59 = vadd.f32 %v1587_v25, %v909_v49 }
 0x123   : > { %v1401_v53 = vpop.eup %1400  ;;  %1002 = vst [vmem:[%s1619_s15 + $0x20] sm:$0xff] %v1399_v48  ;;  %v923_v55 = vmul.f32 %v1585_v24, %v774_v52  ;;  %v1281_v56 = vpop.f32.mrb[14].mxu0  ;;  %v964_v60 = vadd.f32 %v1587_v25, %v925_v50  ;;  %1424 = vtanh.f32 %v959_v44 }
 0x124   : > { %v1297_v57 = vpop.f32.mrb[14].mxu1  ;;  %v1403_v58 = vpop.eup %1402  ;;  %1018 = vst [vmem:[%s1619_s15 + $0xa0] sm:$0xff] %v1401_v53  ;;  %v910_v61 = vmul.f32 %v1281_v56, %v1585_v24  ;;  %v946_v1 = vadd.f32 %v1587_v25, %v907_v54  ;;  %1426 = vtanh.f32 %v948_v59 }
 0x125   : > { %v713_v62 = vpop.f32.mrb[15].mxu0  ;;  %v777_v63 = vpop.f32.mrb[15].mxu1  ;;  %1005 = vst [vmem:[%s1619_s15 + $0x38] sm:$0xff] %v1403_v58  ;;  %v962_v2 = vadd.f32 %v1587_v25, %v923_v55  ;;  %v926_v3 = vmul.f32 %v1297_v57, %v1585_v24  ;;  %1428 = vtanh.f32 %v964_v60 }
 0x126   : > { %v1405_v0 = vpop.eup %1404  ;;  %v949_v5 = vadd.f32 %v1587_v25, %v910_v61  ;;  %v908_v6 = vmul.f32 %v1585_v24, %v713_v62  ;;  %v924_v7 = vmul.f32 %v1585_v24, %v777_v63  ;;  %1430 = vtanh.f32 %v946_v1 }
 0x127   : > { %v1407_v4 = vpop.eup %1406  ;;  %1021 = vst [vmem:[%s1619_s15 + $0xb8] sm:$0xff] %v1405_v0  ;;  %v965_v9 = vadd.f32 %v1587_v25, %v926_v3  ;;  %1432 = vtanh.f32 %v962_v2 }
 0x128   : > { %v1409_v8 = vpop.eup %1408  ;;  %1003 = vst [vmem:[%s1619_s15 + $0x28] sm:$0xff] %v1407_v4  ;;  %v947_v11 = vadd.f32 %v1587_v25, %v908_v6  ;;  %v963_v12 = vadd.f32 %v1587_v25, %v924_v7  ;;  %1434 = vtanh.f32 %v949_v5 }
 0x129   : > { %v1411_v10 = vpop.eup %1410  ;;  %1019 = vst [vmem:[%s1619_s15 + $0xa8] sm:$0xff] %v1409_v8  ;;  %1436 = vtanh.f32 %v965_v9 }
 0x12a   : > { %v1413_v13 = vpop.eup %1412  ;;  %1008 = vst [vmem:[%s1619_s15 + $0x50] sm:$0xff] %v1411_v10  ;;  %1438 = vtanh.f32 %v947_v11 }
 0x12b   : > { %v1415_v24 = vpop.eup %1414  ;;  %1024 = vst [vmem:[%s1619_s15 + $0xd0] sm:$0xff] %v1413_v13  ;;  %1440 = vtanh.f32 %v963_v12 }
 0x12c   : > { %v1417_v14 = vpop.eup %1416  ;;  %1006 = vst [vmem:[%s1619_s15 + $0x40] sm:$0xff] %v1415_v24 }
 0x12d   : > { %v1419_v15 = vpop.eup %1418  ;;  %1022 = vst [vmem:[%s1619_s15 + $0xc0] sm:$0xff] %v1417_v14 }
 0x12e   : > { %v1421_v16 = vpop.eup %1420  ;;  %1009 = vst [vmem:[%s1619_s15 + $0x58] sm:$0xff] %v1419_v15 }
 0x12f   : > { %v1423_v25 = vpop.eup %1422  ;;  %1025 = vst [vmem:[%s1619_s15 + $0xd8] sm:$0xff] %v1421_v16 }
 0x130   : > { %v1425_v17 = vpop.eup %1424  ;;  %1007 = vst [vmem:[%s1619_s15 + $0x48] sm:$0xff] %v1423_v25 }
 0x131   : > { %v1427_v18 = vpop.eup %1426  ;;  %1023 = vst [vmem:[%s1619_s15 + $0xc8] sm:$0xff] %v1425_v17 }
 0x132   : > { %v1429_v19 = vpop.eup %1428  ;;  %1012 = vst [vmem:[%s1619_s15 + $0x70] sm:$0xff] %v1427_v18 }
 0x133   : > { %v1431_v20 = vpop.eup %1430  ;;  %1028 = vst [vmem:[%s1619_s15 + $0xf0] sm:$0xff] %v1429_v19 }
 0x134   : > { %v1433_v21 = vpop.eup %1432  ;;  %1010 = vst [vmem:[%s1619_s15 + $0x60] sm:$0xff] %v1431_v20 }
 0x135   : > { %v1435_v22 = vpop.eup %1434  ;;  %1026 = vst [vmem:[%s1619_s15 + $0xe0] sm:$0xff] %v1433_v21 }
 0x136   : > { %v1437_v23 = vpop.eup %1436  ;;  %1013 = vst [vmem:[%s1619_s15 + $0x78] sm:$0xff] %v1435_v22 }
 0x137   : > { %v1439_v26 = vpop.eup %1438  ;;  %1029 = vst [vmem:[%s1619_s15 + $0xf8] sm:$0xff] %v1437_v23 }
 0x138   : > { %v1441_v27 = vpop.eup %1440  ;;  %1011 = vst [vmem:[%s1619_s15 + $0x68] sm:$0xff] %v1439_v26 }
 0x139   : > { %1027 = vst [vmem:[%s1619_s15 + $0xe8] sm:$0xff] %v1441_v27 }
 0x13a PF: > { %s14_s19 = sadd.s32 1, %s1480_s19   ;;  %s1711_s15 = smov %s1472_s17 }
 0x13b   : > { %p11_p7 = scmp.ge.s32.totalorder %s14_s19, 10   ;;  %s1712_s16 = smov %s1476_s18 }
 0x13c   : > { %s1713_s17 = smov %s1716_s20  ;;  %s1714_s18 = smov %s1720_s21 }
 0x13d   :  { %13 = sbr.rel (!%p11_p7) target bundleno = 3 (0x3), region = 83 }

</bundles_post_ra>
